<compile_context>
chip_gen: v7x
topology: tpu7x:2x2x1
jax: 0.10.0
libtpu: 0.0.40
codegen_flags: <defaults>
</compile_context>

<pallas_src>
import functools
import numpy as np
import jax
import jax.numpy as jnp
from jax.experimental import pallas as pl
from jax.experimental.pallas import tpu as pltpu

KSIZE = 7
SIGMA = 30.0


# ----------------------------------------------------------------------------
# deterministic parameter construction (matches the scipy DCT init in __init__)
# ----------------------------------------------------------------------------
def _dct2_matrix(k):
    # orthonormal DCT-II matrix: C2[m, n] = s(m) * cos(pi*(2n+1)*m / (2k))
    m = np.arange(k)[:, None].astype(np.float64)
    n = np.arange(k)[None, :].astype(np.float64)
    c = np.cos(np.pi * (2.0 * n + 1.0) * m / (2.0 * k))
    c[0, :] *= np.sqrt(1.0 / k)
    c[1:, :] *= np.sqrt(2.0 / k)
    return c


def make_params(k=KSIZE):
    ch = k * k
    c2 = _dct2_matrix(k)
    # direct_trans.weight[i, 0, p, q]          = C2[r, p] * C2[c, q],  i = r*k + c
    # inv_trans_and_aggreg.weight[i, 0, p, q]  = (1/ch) * C2[r, p] * C2[c, q]
    w_dir = np.einsum("rp,cq->rcpq", c2, c2).reshape(ch, k, k).astype(np.float32)
    w_inv = (w_dir / ch).astype(np.float32)
    thr = np.ones((ch, 1), np.float32)  # self.thr, shape (1, ch, 1, 1) in torch
    return w_dir, w_inv, thr


# ----------------------------------------------------------------------------
# Pallas kernel: one (batch, row-tile) element per grid step.
# Flat tile layout: local padded row y in [0, THE), lane-padded col x in [0, Ws),
# flat index m = y*Ws + x, L = THE*Ws (multiple of 128).
# ----------------------------------------------------------------------------
def dct_denoise_kernel(x_ref, wd_ref, wi_ref, colth_ref, out_ref, patch_ref,
                       *, k, Ws, L, tile_h, H, big):
    p = k // 2
    THE = tile_h + 4 * p

    # ---- in-kernel im2col ---------------------------------------------------
    xf = x_ref[0, 0].astype(jnp.float32)                      # (1, L)
    x8 = jnp.broadcast_to(xf, (8, L))
    # row a <- image shifted by (p - a)*Ws lanes: ONE strided sublane roll
    p7 = pltpu.roll(x8, (p * Ws) % L, axis=1,
                    stride=(L - Ws) % L, stride_axis=0)       # (8, L)
    # pair slab: rows 0..7 lane-shift s, rows 8..15 lane-shift s-1
    p16 = jnp.concatenate([p7, pltpu.roll(p7, L - 1, axis=1)], axis=0)  # (16, L)
    for q in range(4):                                        # col offsets (2q, 2q+1)
        sh = (p - 2 * q) % L
        pair = pltpu.roll(p16, sh, axis=1) if sh else p16
        patch_ref[16 * q:16 * q + 16, :] = pair.astype(jnp.bfloat16)
    # slab row 8*b + a = padded_img[y + a - p, x + b - p]; rows with a==7,
    # b==7 or channel >= 49 only ever meet all-zero weight entries.

    # ---- direct DCT transform (thr folded into the weights) ------------------
    coef = jnp.dot(wd_ref[...], patch_ref[...],
                   preferred_element_type=jnp.float32)        # (64, L) f32

    # ---- hard threshold + validity mask; bf16 operand back into the slab -----
    t = pl.program_id(1)
    lo = jnp.maximum(0, 2 * p - t * tile_h) * Ws              # first valid flat idx
    hi = jnp.minimum(THE, H + 2 * p - t * tile_h) * Ws        # one past last valid
    idx = jax.lax.broadcasted_iota(jnp.int32, (1, L), 1)
    row_ok = (idx >= lo) & (idx < hi)
    thmap = jnp.where(row_ok, colth_ref[...], jnp.float32(big))   # (1, L)
    for c in range(4):                                        # chunked -> bounded temps
        blk = coef[16 * c:16 * c + 16, :]
        patch_ref[16 * c:16 * c + 16, :] = jnp.where(
            jnp.abs(blk) > thmap, blk, 0.0).astype(jnp.bfloat16)

    # ---- inverse transform: channel mixing on the MXU ------------------------
    f_all = jnp.dot(wi_ref[...], patch_ref[...],
                    preferred_element_type=jnp.float32)       # (64, L) f32

    # ---- fold, column offsets b: 7 dense (8, L) lane rolls, 2 accumulators ---
    e_even = None
    e_odd = None
    for b in range(k):
        fb = f_all[8 * b:8 * b + 8, :]                        # (8, L)
        sh = (p - b) % L
        if sh:
            fb = pltpu.roll(fb, sh, axis=1)
        if b % 2 == 0:
            e_even = fb if e_even is None else e_even + fb
        else:
            e_odd = fb if e_odd is None else e_odd + fb
    e = e_even + e_odd                                        # (8, L); row 7 == 0

    # ---- fold, row offsets a: one strided sublane roll + sublane reduce ------
    rolled = pltpu.roll(e, (p * Ws) % L, axis=1,
                        stride=(L - Ws) % L, stride_axis=0)
    off = 2 * p * Ws
    out_ref[0, 0] = jnp.sum(rolled[:, off:off + tile_h * Ws],
                            axis=0, keepdims=True)            # valid rows only


# ----------------------------------------------------------------------------
# wrapper
# ----------------------------------------------------------------------------
def dct_denoise(x, w_dir, w_inv, thr, sigma=SIGMA, k=KSIZE, tile_h=None):
    N, C, H, W = x.shape
    assert C == 1
    p = k // 2
    ch = k * k
    chp = 8 * (k + 1)                      # 64: channel dim padded to 8 groups of 8
    ws = ((W + 2 * p + 127) // 128) * 128  # lane-padded row width
    th = 3.0 * sigma / 255.0
    big = 3.0e38

    # ---- generation-aware VMEM budget -> row-tile height ---------------------
    try:
        cap = int(pltpu.get_tpu_info().vmem_capacity_bytes)
    except Exception:
        cap = 64 * 1024 * 1024             # conservative (v7x-sized) default
    cap = max(cap, 32 * 1024 * 1024)
    usable = max(min(int(cap * 0.72), cap - (12 << 20), 100 << 20), 16 << 20)
    BYTES_PER_L = 768                      # conservative peak VMEM bytes / flat elem
    if tile_h is None:
        max_the = int(usable // (BYTES_PER_L * ws))
        tile_h = max(1, min(H, max_the - 4 * p))
        if tile_h >= 8:
            tile_h = (tile_h // 8) * 8
    tile_h = max(1, min(int(tile_h), H))
    n_tiles = (H + tile_h - 1) // tile_h
    if N * n_tiles < 2 and H >= 2:         # give both v7x TensorCores work
        tile_h = (H + 1) // 2
        n_tiles = (H + tile_h - 1) // tile_h

    the = tile_h + 4 * p                   # tile rows incl. 2p halo each side
    lt = the * ws                          # flat tile length (multiple of 128)
    tout = tile_h * ws                     # flat output length (valid rows only)
    vmem_limit = int(min(cap - (8 << 20), max(usable, BYTES_PER_L * lt)))

    # ---- zero-padded, row-tiled image (bf16, halo included) ------------------
    # TODO(synk): overlapping halo tiles are still materialized in HBM; a
    # manual-DMA (memory_space=pl.ANY) input path would avoid this extra copy.
    pad_bot = n_tiles * tile_h - H + 2 * p
    xe = jnp.pad(x[:, 0], ((0, 0), (2 * p, pad_bot), (p, ws - p - W)))
    xt = jnp.stack([xe[:, t * tile_h: t * tile_h + the, :] for t in range(n_tiles)],
                   axis=1)                                   # (N, nt, the, ws)
    xt = xt.reshape(N, n_tiles, 1, lt).astype(jnp.bfloat16)

    # ---- per-lane column threshold map (th on valid cols, +big elsewhere) ----
    col = np.arange(ws)
    colth_np = np.where((col >= p) & (col < p + W),
                        np.float32(th), np.float32(big)).astype(np.float32)
    colth = jnp.asarray(np.tile(colth_np, the)[None, :])     # (1, lt)

    # ---- weights: channel-padded to 64, (col-offset, row-offset) groups of 8,
    #      thr folded into the direct transform --------------------------------
    wd_m = np.zeros((chp, chp), np.float32)
    wi_m = np.zeros((chp, chp), np.float32)
    wflip = np.ascontiguousarray(w_inv[:, ::-1, ::-1])       # spatially flipped inverse
    for i in range(ch):
        for a in range(k):          # kernel row offset
            for b in range(k):      # kernel col offset
                wd_m[i, 8 * b + a] = thr[i, 0] * w_dir[i, a, b]
                wi_m[8 * b + a, i] = wflip[i, a, b]
    wd_m = jnp.asarray(wd_m, dtype=jnp.bfloat16)
    wi_m = jnp.asarray(wi_m, dtype=jnp.bfloat16)

    kern = functools.partial(dct_denoise_kernel, k=k, Ws=ws, L=lt,
                             tile_h=tile_h, H=H, big=big)

    out = pl.pallas_call(
        kern,
        out_shape=jax.ShapeDtypeStruct((N, n_tiles, 1, tout), jnp.float32),
        grid_spec=pltpu.PrefetchScalarGridSpec(
            num_scalar_prefetch=0,
            grid=(N, n_tiles),
            in_specs=[
                pl.BlockSpec((1, 1, 1, lt), lambda n, t: (n, t, 0, 0)),  # image tile
                pl.BlockSpec((chp, chp), lambda n, t: (0, 0)),           # direct weights
                pl.BlockSpec((chp, chp), lambda n, t: (0, 0)),           # inverse weights
                pl.BlockSpec((1, lt), lambda n, t: (0, 0)),              # column thr map
            ],
            out_specs=pl.BlockSpec((1, 1, 1, tout), lambda n, t: (n, t, 0, 0)),
            scratch_shapes=[
                pltpu.VMEM((chp, lt), jnp.bfloat16),   # patch slab, reused for tmp
            ],
        ),
        compiler_params=pltpu.CompilerParams(
            dimension_semantics=("parallel", "parallel"),
            vmem_limit_bytes=vmem_limit,
        ),
    )(xt, wd_m, wi_m, colth)

    out = out.reshape(N, n_tiles * tile_h, ws)[:, :H, p:p + W]
    return out.reshape(N, 1, H, W)


# ----------------------------------------------------------------------------
# pure-JAX reference (same math, via XLA convs) for a sanity check
# ----------------------------------------------------------------------------
def reference(x, w_dir, w_inv, thr, sigma=SIGMA, k=KSIZE):
    p = k // 2
    wd = jnp.asarray(w_dir)[:, None, :, :]                                 # (ch,1,k,k)
    out = jax.lax.conv_general_dilated(
        x, wd, (1, 1), [(p, p), (p, p)],
        dimension_numbers=("NCHW", "OIHW", "NCHW"),
        precision=jax.lax.Precision.HIGHEST)
    out = out * jnp.asarray(thr).reshape(1, -1, 1, 1)
    th = 3.0 * sigma / 255.0
    tmp = out * (jnp.abs(out) > th).astype(out.dtype)
    # conv_transpose(stride=1, pad=p) == conv with spatially-flipped, channel-swapped weight
    wi = jnp.asarray(np.ascontiguousarray(w_inv[:, ::-1, ::-1]))[None, :, :, :]
    final = jax.lax.conv_general_dilated(
        tmp, wi, (1, 1), [(p, p), (p, p)],
        dimension_numbers=("NCHW", "OIHW", "NCHW"),
        precision=jax.lax.Precision.HIGHEST)
    return final


if __name__ == "__main__":
    key = jax.random.PRNGKey(0)
    N, H, W = 2, 16, 16
    x = jax.random.normal(key, (N, 1, H, W), dtype=jnp.float32)

    w_dir, w_inv, thr = make_params(KSIZE)
    ref = jax.block_until_ready(reference(x, w_dir, w_inv, thr))

    # auto (single-tile) config and a forced ragged multi-tile config (halo +
    # ragged-last-tile code paths).
    for th_cfg in (None, 6):
        out = dct_denoise(x, w_dir, w_inv, thr, tile_h=th_cfg)
        out = jax.block_until_ready(out)
        assert out.shape == (N, 1, H, W)
        if not np.allclose(np.asarray(out), np.asarray(ref), atol=2e-2, rtol=2e-2):
            raise AssertionError(
                f"mismatch vs reference (tile_h={th_cfg}), max abs diff = "
                f"{np.max(np.abs(np.asarray(out) - np.asarray(ref)))}")
    print("KERNEL_OK")
</pallas_src>

<mosaic_0001>
module attributes {stable_mosaic.version = 11 : i64} {
  func.func @dct_denoise_kernel(%arg0: i32, %arg1: i32, %arg2: memref<1x1x1x3584xbf16, #tpu.memory_space<vmem>>, %arg3: memref<64x64xbf16, #tpu.memory_space<vmem>>, %arg4: memref<64x64xbf16, #tpu.memory_space<vmem>>, %arg5: memref<1x3584xf32, #tpu.memory_space<vmem>>, %arg6: memref<1x1x1x2048xf32, #tpu.memory_space<vmem>>, %arg7: memref<64x3584xbf16, #tpu.memory_space<vmem>>) attributes {dimension_semantics = [#tpu.dimension_semantics<parallel>, #tpu.dimension_semantics<parallel>], iteration_bounds = array<i64: 2, 1>, scalar_prefetch = 0 : i64, scratch_operands = 1 : i64, tpu.core_type = #tpu.core_type<tc>, window_params = [{transform_indices = @transform_0, window_bounds = array<i64: 1, 1, 1, 3584>}, {pipeline_mode = #tpu.pipeline_mode<synchronous>, transform_indices = @transform_1, window_bounds = array<i64: 64, 64>}, {pipeline_mode = #tpu.pipeline_mode<synchronous>, transform_indices = @transform_2, window_bounds = array<i64: 64, 64>}, {pipeline_mode = #tpu.pipeline_mode<synchronous>, transform_indices = @transform_3, window_bounds = array<i64: 1, 3584>}, {transform_indices = @transform_4, window_bounds = array<i64: 1, 1, 1, 2048>}]} {
    %c0 = arith.constant 0 : index
    %c0_0 = arith.constant 0 : index
    %c0_1 = arith.constant 0 : index
    %c0_2 = arith.constant 0 : index
    %0 = vector.load %arg2[%c0, %c0_0, %c0_1, %c0_2] : memref<1x1x1x3584xbf16, #tpu.memory_space<vmem>>, vector<1x1x1x3584xbf16>
    %1 = vector.shape_cast %0 : vector<1x1x1x3584xbf16> to vector<1x3584xbf16>
    %2 = arith.extf %1 : vector<1x3584xbf16> to vector<1x3584xf32>
    %3 = vector.shape_cast %2 : vector<1x3584xf32> to vector<1x3584xf32>
    %4 = vector.broadcast %3 : vector<1x3584xf32> to vector<8x3584xf32>
    %c384_i32 = arith.constant 384 : i32
    %5 = tpu.dynamic_rotate %4 by %c384_i32 dim 1 {stride = 3456 : si32, stride_dimension = 0 : si32} : vector<8x3584xf32>, i32 -> vector<8x3584xf32>
    %c3583_i32 = arith.constant 3583 : i32
    %6 = tpu.dynamic_rotate %5 by %c3583_i32 dim 1 : vector<8x3584xf32>, i32 -> vector<8x3584xf32>
    %7 = tpu.concatenate %5, %6 in 0 : vector<8x3584xf32>, vector<8x3584xf32> -> vector<16x3584xf32>
    %c3_i32 = arith.constant 3 : i32
    %8 = tpu.dynamic_rotate %7 by %c3_i32 dim 1 : vector<16x3584xf32>, i32 -> vector<16x3584xf32>
    %9 = arith.truncf %8 : vector<16x3584xf32> to vector<16x3584xbf16>
    %c0_3 = arith.constant 0 : index
    %c0_4 = arith.constant 0 : index
    %10 = vector.load %arg7[%c0_3, %c0_4] : memref<64x3584xbf16, #tpu.memory_space<vmem>>, vector<16x3584xbf16>
    tpu.vector_store %arg7[%c0_3, %c0_4], %9 {strides = array<i32>} : memref<64x3584xbf16, #tpu.memory_space<vmem>>, vector<16x3584xbf16>,
    %c1_i32 = arith.constant 1 : i32
    %11 = tpu.dynamic_rotate %7 by %c1_i32 dim 1 : vector<16x3584xf32>, i32 -> vector<16x3584xf32>
    %12 = arith.truncf %11 : vector<16x3584xf32> to vector<16x3584xbf16>
    %c16 = arith.constant 16 : index
    %c0_5 = arith.constant 0 : index
    %13 = vector.load %arg7[%c16, %c0_5] : memref<64x3584xbf16, #tpu.memory_space<vmem>>, vector<16x3584xbf16>
    tpu.vector_store %arg7[%c16, %c0_5], %12 {strides = array<i32>} : memref<64x3584xbf16, #tpu.memory_space<vmem>>, vector<16x3584xbf16>,
    %c3583_i32_6 = arith.constant 3583 : i32
    %14 = tpu.dynamic_rotate %7 by %c3583_i32_6 dim 1 : vector<16x3584xf32>, i32 -> vector<16x3584xf32>
    %15 = arith.truncf %14 : vector<16x3584xf32> to vector<16x3584xbf16>
    %c32 = arith.constant 32 : index
    %c0_7 = arith.constant 0 : index
    %16 = vector.load %arg7[%c32, %c0_7] : memref<64x3584xbf16, #tpu.memory_space<vmem>>, vector<16x3584xbf16>
    tpu.vector_store %arg7[%c32, %c0_7], %15 {strides = array<i32>} : memref<64x3584xbf16, #tpu.memory_space<vmem>>, vector<16x3584xbf16>,
    %c3581_i32 = arith.constant 3581 : i32
    %17 = tpu.dynamic_rotate %7 by %c3581_i32 dim 1 : vector<16x3584xf32>, i32 -> vector<16x3584xf32>
    %18 = arith.truncf %17 : vector<16x3584xf32> to vector<16x3584xbf16>
    %c48 = arith.constant 48 : index
    %c0_8 = arith.constant 0 : index
    %19 = vector.load %arg7[%c48, %c0_8] : memref<64x3584xbf16, #tpu.memory_space<vmem>>, vector<16x3584xbf16>
    tpu.vector_store %arg7[%c48, %c0_8], %18 {strides = array<i32>} : memref<64x3584xbf16, #tpu.memory_space<vmem>>, vector<16x3584xbf16>,
    %c0_9 = arith.constant 0 : index
    %c0_10 = arith.constant 0 : index
    %20 = vector.load %arg3[%c0_9, %c0_10] : memref<64x64xbf16, #tpu.memory_space<vmem>>, vector<64x64xbf16>
    %c0_11 = arith.constant 0 : index
    %c0_12 = arith.constant 0 : index
    %21 = vector.load %arg7[%c0_11, %c0_12] : memref<64x3584xbf16, #tpu.memory_space<vmem>>, vector<64x3584xbf16>
    %cst = arith.constant dense<0.000000e+00> : vector<64x3584xf32>
    %22 = tpu.matmul %20, %21, %cst {dimension_numbers = #tpu.dot_dimension_numbers<[1], [0], [0], [1], [0, 0, 1, 1], [], []>} : vector<64x64xbf16>, vector<64x3584xbf16>, vector<64x3584xf32> -> vector<64x3584xf32>
    %c16_i32 = arith.constant 16 : i32
    %23 = arith.muli %arg1, %c16_i32 : i32
    %c6_i32 = arith.constant 6 : i32
    %24 = arith.subi %c6_i32, %23 : i32
    %c0_i32 = arith.constant 0 : i32
    %25 = arith.maxsi %c0_i32, %24 : i32
    %c128_i32 = arith.constant 128 : i32
    %26 = arith.muli %25, %c128_i32 : i32
    %c16_i32_13 = arith.constant 16 : i32
    %27 = arith.muli %arg1, %c16_i32_13 : i32
    %c22_i32 = arith.constant 22 : i32
    %28 = arith.subi %c22_i32, %27 : i32
    %c28_i32 = arith.constant 28 : i32
    %29 = arith.minsi %c28_i32, %28 : i32
    %c128_i32_14 = arith.constant 128 : i32
    %30 = arith.muli %29, %c128_i32_14 : i32
    %31 = tpu.iota {dimensions = array<i32: 1>} : vector<1x3584xi32>
    %32 = vector.broadcast %26 : i32 to vector<1x3584xi32>
    %33 = arith.cmpi sge, %31, %32 : vector<1x3584xi32>
    %34 = vector.broadcast %30 : i32 to vector<1x3584xi32>
    %35 = arith.cmpi slt, %31, %34 : vector<1x3584xi32>
    %36 = arith.andi %33, %35 : vector<1x3584xi1>
    %c0_15 = arith.constant 0 : index
    %c0_16 = arith.constant 0 : index
    %37 = vector.load %arg5[%c0_15, %c0_16] : memref<1x3584xf32, #tpu.memory_space<vmem>>, vector<1x3584xf32>
    %cst_17 = arith.constant 3.000000e+38 : f32
    %38 = vector.broadcast %cst_17 : f32 to vector<1x3584xf32>
    %39 = arith.select %36, %37, %38 : vector<1x3584xi1>, vector<1x3584xf32>
    %40 = vector.extract_strided_slice %22 {offsets = [0, 0], sizes = [16, 3584], strides = [1, 1]} : vector<64x3584xf32> to vector<16x3584xf32>
    %41 = math.absf %40 : vector<16x3584xf32>
    %42 = vector.broadcast %39 : vector<1x3584xf32> to vector<16x3584xf32>
    %43 = arith.cmpf ogt, %41, %42 : vector<16x3584xf32>
    %cst_18 = arith.constant 0.000000e+00 : f32
    %44 = vector.broadcast %cst_18 : f32 to vector<16x3584xf32>
    %45 = arith.select %43, %40, %44 : vector<16x3584xi1>, vector<16x3584xf32>
    %46 = arith.truncf %45 : vector<16x3584xf32> to vector<16x3584xbf16>
    %c0_19 = arith.constant 0 : index
    %c0_20 = arith.constant 0 : index
    %47 = vector.load %arg7[%c0_19, %c0_20] : memref<64x3584xbf16, #tpu.memory_space<vmem>>, vector<16x3584xbf16>
    tpu.vector_store %arg7[%c0_19, %c0_20], %46 {strides = array<i32>} : memref<64x3584xbf16, #tpu.memory_space<vmem>>, vector<16x3584xbf16>,
    %48 = vector.extract_strided_slice %22 {offsets = [16, 0], sizes = [16, 3584], strides = [1, 1]} : vector<64x3584xf32> to vector<16x3584xf32>
    %49 = math.absf %48 : vector<16x3584xf32>
    %50 = vector.broadcast %39 : vector<1x3584xf32> to vector<16x3584xf32>
    %51 = arith.cmpf ogt, %49, %50 : vector<16x3584xf32>
    %cst_21 = arith.constant 0.000000e+00 : f32
    %52 = vector.broadcast %cst_21 : f32 to vector<16x3584xf32>
    %53 = arith.select %51, %48, %52 : vector<16x3584xi1>, vector<16x3584xf32>
    %54 = arith.truncf %53 : vector<16x3584xf32> to vector<16x3584xbf16>
    %c16_22 = arith.constant 16 : index
    %c0_23 = arith.constant 0 : index
    %55 = vector.load %arg7[%c16_22, %c0_23] : memref<64x3584xbf16, #tpu.memory_space<vmem>>, vector<16x3584xbf16>
    tpu.vector_store %arg7[%c16_22, %c0_23], %54 {strides = array<i32>} : memref<64x3584xbf16, #tpu.memory_space<vmem>>, vector<16x3584xbf16>,
    %56 = vector.extract_strided_slice %22 {offsets = [32, 0], sizes = [16, 3584], strides = [1, 1]} : vector<64x3584xf32> to vector<16x3584xf32>
    %57 = math.absf %56 : vector<16x3584xf32>
    %58 = vector.broadcast %39 : vector<1x3584xf32> to vector<16x3584xf32>
    %59 = arith.cmpf ogt, %57, %58 : vector<16x3584xf32>
    %cst_24 = arith.constant 0.000000e+00 : f32
    %60 = vector.broadcast %cst_24 : f32 to vector<16x3584xf32>
    %61 = arith.select %59, %56, %60 : vector<16x3584xi1>, vector<16x3584xf32>
    %62 = arith.truncf %61 : vector<16x3584xf32> to vector<16x3584xbf16>
    %c32_25 = arith.constant 32 : index
    %c0_26 = arith.constant 0 : index
    %63 = vector.load %arg7[%c32_25, %c0_26] : memref<64x3584xbf16, #tpu.memory_space<vmem>>, vector<16x3584xbf16>
    tpu.vector_store %arg7[%c32_25, %c0_26], %62 {strides = array<i32>} : memref<64x3584xbf16, #tpu.memory_space<vmem>>, vector<16x3584xbf16>,
    %64 = vector.extract_strided_slice %22 {offsets = [48, 0], sizes = [16, 3584], strides = [1, 1]} : vector<64x3584xf32> to vector<16x3584xf32>
    %65 = math.absf %64 : vector<16x3584xf32>
    %66 = vector.broadcast %39 : vector<1x3584xf32> to vector<16x3584xf32>
    %67 = arith.cmpf ogt, %65, %66 : vector<16x3584xf32>
    %cst_27 = arith.constant 0.000000e+00 : f32
    %68 = vector.broadcast %cst_27 : f32 to vector<16x3584xf32>
    %69 = arith.select %67, %64, %68 : vector<16x3584xi1>, vector<16x3584xf32>
    %70 = arith.truncf %69 : vector<16x3584xf32> to vector<16x3584xbf16>
    %c48_28 = arith.constant 48 : index
    %c0_29 = arith.constant 0 : index
    %71 = vector.load %arg7[%c48_28, %c0_29] : memref<64x3584xbf16, #tpu.memory_space<vmem>>, vector<16x3584xbf16>
    tpu.vector_store %arg7[%c48_28, %c0_29], %70 {strides = array<i32>} : memref<64x3584xbf16, #tpu.memory_space<vmem>>, vector<16x3584xbf16>,
    %c0_30 = arith.constant 0 : index
    %c0_31 = arith.constant 0 : index
    %72 = vector.load %arg4[%c0_30, %c0_31] : memref<64x64xbf16, #tpu.memory_space<vmem>>, vector<64x64xbf16>
    %c0_32 = arith.constant 0 : index
    %c0_33 = arith.constant 0 : index
    %73 = vector.load %arg7[%c0_32, %c0_33] : memref<64x3584xbf16, #tpu.memory_space<vmem>>, vector<64x3584xbf16>
    %cst_34 = arith.constant dense<0.000000e+00> : vector<64x3584xf32>
    %74 = tpu.matmul %72, %73, %cst_34 {dimension_numbers = #tpu.dot_dimension_numbers<[1], [0], [0], [1], [0, 0, 1, 1], [], []>} : vector<64x64xbf16>, vector<64x3584xbf16>, vector<64x3584xf32> -> vector<64x3584xf32>
    %75 = vector.extract_strided_slice %74 {offsets = [0, 0], sizes = [8, 3584], strides = [1, 1]} : vector<64x3584xf32> to vector<8x3584xf32>
    %c3_i32_35 = arith.constant 3 : i32
    %76 = tpu.dynamic_rotate %75 by %c3_i32_35 dim 1 : vector<8x3584xf32>, i32 -> vector<8x3584xf32>
    %77 = vector.extract_strided_slice %74 {offsets = [8, 0], sizes = [8, 3584], strides = [1, 1]} : vector<64x3584xf32> to vector<8x3584xf32>
    %c2_i32 = arith.constant 2 : i32
    %78 = tpu.dynamic_rotate %77 by %c2_i32 dim 1 : vector<8x3584xf32>, i32 -> vector<8x3584xf32>
    %79 = vector.extract_strided_slice %74 {offsets = [16, 0], sizes = [8, 3584], strides = [1, 1]} : vector<64x3584xf32> to vector<8x3584xf32>
    %c1_i32_36 = arith.constant 1 : i32
    %80 = tpu.dynamic_rotate %79 by %c1_i32_36 dim 1 : vector<8x3584xf32>, i32 -> vector<8x3584xf32>
    %81 = arith.addf %76, %80 : vector<8x3584xf32>
    %82 = vector.extract_strided_slice %74 {offsets = [24, 0], sizes = [8, 3584], strides = [1, 1]} : vector<64x3584xf32> to vector<8x3584xf32>
    %83 = arith.addf %78, %82 : vector<8x3584xf32>
    %84 = vector.extract_strided_slice %74 {offsets = [32, 0], sizes = [8, 3584], strides = [1, 1]} : vector<64x3584xf32> to vector<8x3584xf32>
    %c3583_i32_37 = arith.constant 3583 : i32
    %85 = tpu.dynamic_rotate %84 by %c3583_i32_37 dim 1 : vector<8x3584xf32>, i32 -> vector<8x3584xf32>
    %86 = arith.addf %81, %85 : vector<8x3584xf32>
    %87 = vector.extract_strided_slice %74 {offsets = [40, 0], sizes = [8, 3584], strides = [1, 1]} : vector<64x3584xf32> to vector<8x3584xf32>
    %c3582_i32 = arith.constant 3582 : i32
    %88 = tpu.dynamic_rotate %87 by %c3582_i32 dim 1 : vector<8x3584xf32>, i32 -> vector<8x3584xf32>
    %89 = arith.addf %83, %88 : vector<8x3584xf32>
    %90 = vector.extract_strided_slice %74 {offsets = [48, 0], sizes = [8, 3584], strides = [1, 1]} : vector<64x3584xf32> to vector<8x3584xf32>
    %c3581_i32_38 = arith.constant 3581 : i32
    %91 = tpu.dynamic_rotate %90 by %c3581_i32_38 dim 1 : vector<8x3584xf32>, i32 -> vector<8x3584xf32>
    %92 = arith.addf %86, %91 : vector<8x3584xf32>
    %93 = arith.addf %92, %89 : vector<8x3584xf32>
    %c384_i32_39 = arith.constant 384 : i32
    %94 = tpu.dynamic_rotate %93 by %c384_i32_39 dim 1 {stride = 3456 : si32, stride_dimension = 0 : si32} : vector<8x3584xf32>, i32 -> vector<8x3584xf32>
    %95 = vector.extract_strided_slice %94 {offsets = [0, 768], sizes = [8, 2048], strides = [1, 1]} : vector<8x3584xf32> to vector<8x2048xf32>
    %cst_40 = arith.constant dense<0.000000e+00> : vector<2048xf32>
    %96 = vector.multi_reduction <add>, %95, %cst_40 [0] : vector<8x2048xf32> to vector<2048xf32>
    %97 = vector.shape_cast %96 : vector<2048xf32> to vector<1x2048xf32>
    %c0_41 = arith.constant 0 : index
    %c0_42 = arith.constant 0 : index
    %c0_43 = arith.constant 0 : index
    %c0_44 = arith.constant 0 : index
    %98 = vector.load %arg6[%c0_41, %c0_42, %c0_43, %c0_44] : memref<1x1x1x2048xf32, #tpu.memory_space<vmem>>, vector<1x1x1x2048xf32>
    %99 = vector.shape_cast %98 : vector<1x1x1x2048xf32> to vector<1x2048xf32>
    %100 = vector.shape_cast %97 : vector<1x2048xf32> to vector<1x1x1x2048xf32>
    tpu.vector_store %arg6[%c0_41, %c0_42, %c0_43, %c0_44], %100 {strides = array<i32>} : memref<1x1x1x2048xf32, #tpu.memory_space<vmem>>, vector<1x1x1x2048xf32>,
    return
  }
  func.func @transform_0(%arg0: i32, %arg1: i32) -> (i32, i32, i32, i32) {
    %c0_i32 = arith.constant 0 : i32
    %c0_i32_0 = arith.constant 0 : i32
    %c0_i32_1 = arith.constant 0 : i32
    return %arg0, %arg1, %c0_i32, %c0_i32_0 : i32, i32, i32, i32
  }
  func.func @transform_1(%arg0: i32, %arg1: i32) -> (i32, i32) {
    %c0_i32 = arith.constant 0 : i32
    %c0_i32_0 = arith.constant 0 : i32
    %c0_i32_1 = arith.constant 0 : i32
    return %c0_i32, %c0_i32_0 : i32, i32
  }
  func.func @transform_2(%arg0: i32, %arg1: i32) -> (i32, i32) {
    %c0_i32 = arith.constant 0 : i32
    %c0_i32_0 = arith.constant 0 : i32
    %c0_i32_1 = arith.constant 0 : i32
    return %c0_i32, %c0_i32_0 : i32, i32
  }
  func.func @transform_3(%arg0: i32, %arg1: i32) -> (i32, i32) {
    %c0_i32 = arith.constant 0 : i32
    %c0_i32_0 = arith.constant 0 : i32
    %c0_i32_1 = arith.constant 0 : i32
    return %c0_i32, %c0_i32_0 : i32, i32
  }
  func.func @transform_4(%arg0: i32, %arg1: i32) -> (i32, i32, i32, i32) {
    %c0_i32 = arith.constant 0 : i32
    %c0_i32_0 = arith.constant 0 : i32
    %c0_i32_1 = arith.constant 0 : i32
    return %arg0, %arg1, %c0_i32, %c0_i32_0 : i32, i32, i32, i32
  }
}

</mosaic_0001>

<bundles_post_ra>
// kernel: tpu_custom_call.1
= control target key start
LH: loop header
LB: loop body
LE: loop exit
PB: predicated region body
PF: predicated region fallthrough
CT: control target
= control target key end

     0   :  { %9 = vsyncpa [#allocation4], 0  ;;  %s11438_s0 = inlined_call_operand.vmem [shape: bf16[2,1,1,3584], index: 0, kind: input, shape index: {}]   ;;  %s11439_s1 = inlined_call_operand.vmem [shape: bf16[64,64], index: 1, kind: input, shape index: {}]   ;;  %s11440_s2 = inlined_call_operand.vmem [shape: bf16[64,64], index: 2, kind: input, shape index: {}]   ;;  %s11441_s3 = inlined_call_operand.vmem [shape: f32[1,3584], index: 3, kind: input, shape index: {}]   ;;  %s11442_s4 = inlined_call_operand.hbm [shape: f32[2,1,1,2048], index: 4, kind: output, shape index: {}]  }
   0x1   :  { %11 = vsyncpa [#allocation4 + $0x1], 0  ;;  %s6410_s15 = smov 0   ;;  %s6412_s16 = smov 0  }
   0x2   :  { %s6414_s17 = smov 0   ;;  %s6416_s18 = smov 0  }
   0x3   :  { %s6418_s19 = smov 0   ;;  %s6420_s20 = smov 0  }
   0x4 LB: > { %s5323_s21 = sadd.s32 4294967295, %s6373_s20   ;;  %s5324_s22 = sadd.s32 4294967294, %s6373_s20   ;;  %s6373_s20 = sphi %s6420_s20, %s17_s20   ;;  %s6369_s19 = sphi %s6418_s19, %s12998_s19   ;;  %s6365_s18 = sphi %s6416_s18, %s12997_s18   ;;  %s6361_s17 = sphi %s6414_s17, %s12996_s17   ;;  %s6357_s16 = sphi %s6412_s16, %s12995_s16   ;;  %s6353_s15 = sphi %s6410_s15, %s12994_s15  }
   0x5   : > { %s29_s23 = sadd.s32 1, %s6369_s19  ;;  %s129_s24 = sadd.s32 1, %s6361_s17 }
   0x6   : > { %p31_p0 = scmp.ge.s32.totalorder %s29_s23, 2  ;;  %p139_p1 = scmp.ne.s32.totalorder %s6361_s17, %s6357_s16 }
   0x7   : > { %p140_p2 = scmp.eq.s32.totalorder %s5323_s21, 1  ;;  %p145_p3 = scmp.ne.s32.totalorder %s6357_s16, %s6353_s15 }
   0x8   : > { %s13000_s23 = smov (%p31_p0, %s29_s23), 0  ;;  %p146_p5 = scmp.eq.s32.totalorder %s5324_s22, 1 }
   0x9   : > { %p6450_p4 = por %p140_p2, %p139_p1  ;;  %s124_s26 = ssub.s32 %s6369_s19, %s13000_s23 }
   0xa   : > { %p5327_p6 = scmp.ge.s32.totalorder %s6373_s20, 1  ;;  %p127_p7 = scmp.eq.s32.totalorder %s124_s26, 0 }
   0xb   : > { %p6457_p8 = por %p146_p5, %p145_p3  ;;  %p184_p9 = scmp.lt.s32.totalorder %s6373_s20, 3 }
   0xc   : > { %s6463_s28 = scalar_select %p127_p7, %s6361_s17, %s129_s24  }
   0xd   : > { %p185_p10 = pnand %p5327_p6, %p184_p9 }
   0xf   : > { %188 = sbr.rel (%p185_p10) target bundleno = 1385 (0x569), region = 36 }
  0x16   : > { %p213_p11 = scmp.lt.s32.totalorder %s6365_s18, 1  ;;  %v240_v0 = vlaneseq  ;;  %s6375_s8 = smov 127   ;;  %vm11479_vm4 = vcmask 523264  }
  0x17   : > { %s6376_s9 = smov 3   ;;  %s6377_s10 = smov 1  }
  0x18   : > { %s214_s29 = scalar_select %p213_p11, %s6365_s18, 1  ;;  %v6467_v1 = vshrl.u32 %v240_v0, 7  ;;  %v6549_v43 = vand.u32 127, %v240_v0 }
  0x19   : > { %s6378_s11 = smov 125   ;;  %s6381_s14 = smov 2  }
  0x1a   : > { %11816 = vst [vmem:[#allocation6_spill] sm:$0xff] %v6467_v1  ;;  %s5659_s30 = smul.u32 28, %s214_s29  ;;  %v6470_v2 = vsub.s32 2, %v6467_v1  ;;  %v6473_v3 = vsub.s32 4, %v6467_v1  ;;  %v6476_v4 = vsub.s32 6, %v6467_v1  ;;  %v6485_v6 = vsub.s32 0, %v6467_v1 }
  0x1b   : > { %11820 = vst [vmem:[#allocation10_spill] sm:$0xff] %v6549_v43  ;;  %vm11472_vm0 = vcmp.lt.s32.totalorder %v6549_v43, 127  ;;  %vm11478_vm1 = vcmp.lt.s32.totalorder %v6549_v43, 3  ;;  %vm11477_vm2 = vcmp.lt.s32.totalorder %v6549_v43, 1  ;;  %vm11469_vm3 = vcmp.lt.s32.totalorder %v6549_v43, 125  ;;  %s6382_s21 = smov 126  }
  0x1c   : > { %11817 = vst [vmem:[#allocation7_spill] sm:$0xff] %v6470_v2  ;;  %11818 = vst [vmem:[#allocation8_spill] sm:$0xff] %v6476_v4  ;;  %s6481_s7 = scalar_lea.vmem %s11438_s0, %s5659_s30  ;;  %s6384_s5 = smov [#allocation3]  }
  0x1d   : > { %v225_v5 = vld [vmem:[%s6481_s7 + $0x18] sm:$0xf]  ;;  %11819 = vst [vmem:[#allocation9_spill] sm:$0xff] %v6485_v6  ;;  %v222_v7 = vld [vmem:[%s6481_s7] sm:$0xff]  ;;  %v6489_v8 = vld [vmem:[%s6481_s7 + $0x8] sm:$0xff]  ;;  %s6299_s6 = sshll.u32 %s6384_s5, 4  ;;  %s6300_s6 = int_to_ptr.vmem [resolvable:$false] %s6299_s6 }
  0x1e   : > { %v232_v9 = vunpack.c.l.bf16 %v225_v5  ;;  %v226_v10 = vunpack.c.l.bf16 %v222_v7  ;;  %v227_v11 = vunpack.c.h.bf16 %v222_v7  ;;  %v6492_v12 = vunpack.c.l.bf16 %v6489_v8 }
  0x20   : > { %v343_v13 = vrot.slane %v232_v9, %v6470_v2  ;;  %v347_v14 = vrot.slane %v232_v9, %v6473_v3  ;;  %v339_v15 = vrot.slane %v232_v9, %v6485_v6  ;;  %v351_v16 = vrot.slane %v232_v9, %v6476_v4 }
  0x21   : > { %v243_v17 = vrot.slane %v226_v10, %v6485_v6  ;;  %v247_v18 = vrot.slane %v226_v10, %v6470_v2  ;;  %v251_v19 = vrot.slane %v226_v10, %v6473_v3  ;;  %v255_v20 = vrot.slane %v226_v10, %v6476_v4 }
  0x22   : > { %v483_v21 = vrot.slane %v343_v13, %v6485_v6  ;;  %v487_v22 = vrot.slane %v347_v14, %v6485_v6  ;;  %v479_v23 = vrot.slane %v339_v15, %v6485_v6  ;;  %v491_v24 = vrot.slane %v351_v16, %v6485_v6 }
  0x23   : > { %v6507_v25 = vrot.slane %v243_v17, %v6485_v6  ;;  %v6510_v26 = vrot.slane %v247_v18, %v6485_v6  ;;  %v6513_v27 = vrot.slane %v251_v19, %v6485_v6  ;;  %v6516_v28 = vrot.slane %v255_v20, %v6485_v6 }
  0x24   : > { %v5724_v29 = vpack.i.bf16 %v487_v22, %v483_v21  ;;  %v259_v30 = vrot.slane %v227_v11, %v6485_v6  ;;  %v263_v31 = vrot.slane %v227_v11, %v6470_v2  ;;  %v5729_v32 = vpack.i.bf16 %v479_v23, %v491_v24 }
  0x25   : > { %v5734_v33 = vpack.i.bf16 %v6510_v26, %v6507_v25  ;;  %v271_v36 = vrot.slane %v227_v11, %v6476_v4  ;;  %v275_v37 = vrot.slane %v6492_v12, %v6485_v6  ;;  %v5739_v38 = vpack.i.bf16 %v6516_v28, %v6513_v27 }
  0x26   : > { %5725 = vrot.lane.b32.xlu0 %v5724_v29, %s6375_s8  ;;  %v6524_v34 = vrot.slane %v259_v30, %v6485_v6  ;;  %v6527_v35 = vrot.slane %v263_v31, %v6485_v6  ;;  %v267_v45 = vrot.slane %v227_v11, %v6473_v3  ;;  %v283_v5 = vrot.slane %v6492_v12, %v6473_v3 }
  0x27   : > { %5735 = vrot.lane.b32.xlu1 %v5734_v33, %s6375_s8  ;;  %v6539_v40 = vrot.slane %v271_v36, %v6485_v6  ;;  %v6542_v41 = vrot.slane %v275_v37, %v6485_v6  ;;  %v11460_v14 = vmov 0   ;;  %v279_v19 = vrot.slane %v6492_v12, %v6470_v2 }
  0x28   : > { %v5744_v39 = vpack.i.bf16 %v6527_v35, %v6524_v34  ;;  %v6561_v51 = vrot.slane %v267_v45, %v6485_v6  ;;  %v6604_v10 = vrot.slane %v283_v5, %v6485_v6  ;;  %1599 = vmatprep.mubr.bf16.mxu1 %v11460_v14  ;;  %1579 = vmatprep.mubr.bf16.mxu0 %v11460_v14  ;;  %v229_v20 = vunpack.c.h.bf16 %v6489_v8 }
  0x29   : > { %v5749_v42 = vpack.i.bf16 %v6542_v41, %v6539_v40  ;;  %v287_v29 = vrot.slane %v6492_v12, %v6476_v4 }
  0x2a   : > { %5730 = vrot.lane.b32.xlu0 %v5729_v32, %s6375_s8  ;;  %v291_v30 = vrot.slane %v229_v20, %v6485_v6  ;;  %v295_v36 = vrot.slane %v229_v20, %v6470_v2 }
  0x2b   : > { %5740 = vrot.lane.b32.xlu1 %v5739_v38, %s6375_s8 }
  0x2c   : > { %v6661_v12 = vrot.slane %v291_v30, %v6485_v6 }
  0x2e   : > { %5745 = vrot.lane.b32.xlu0 %v5744_v39, %s6375_s8 }
  0x32   : > { %5750 = vrot.lane.b32.xlu0 %v5749_v42, %s6375_s8  ;;  %v6687_v42 = vld [vmem:[%s6481_s7 + $0x10] sm:$0xff]  ;;  %s6301_s7 = scalar_lea.vmem %s6300_s6, 512 }
  0x98   : > { %v5726_v44 = vpop.permute.xlu0 %5725 }
  0x99   : > { %v5728_v46 = vunpack.i.h.bf16 %v5726_v44  ;;  %v5727_v47 = vunpack.i.l.bf16 %v5726_v44  ;;  %v5736_v54 = vpop.permute.xlu1 %5735  ;;  %v6691_v44 = vunpack.c.l.bf16 %v6687_v42 }
  0x9a   : > { %v5737_v59 = vunpack.i.l.bf16 %v5736_v54  ;;  %v5738_v7 = vunpack.i.h.bf16 %v5736_v54 }
  0x9b   : > { %v6555_v48 = vsel %vm11472_vm0, %v5727_v47, %v5728_v46 }
  0x9c   : > { %v6557_v49 = vpop.permute.xlu0 %5730  ;;  %v5759_v50 = vpack.i.bf16 %v6555_v48, %v483_v21  ;;  %v6608_v11 = vsel %vm11472_vm0, %v5737_v59, %v5738_v7 }
  0x9d   : > { %v11445_v52 = vunpack.i.h.bf16 %v6557_v49  ;;  %v5732_v53 = vunpack.i.l.bf16 %v6557_v49  ;;  %v5741_v0 = vpop.permute.xlu1 %5740  ;;  %v5814_v16 = vpack.i.bf16 %v6608_v11, %v6507_v25  ;;  %v6638_v25 = vrot.slane %v279_v19, %v6485_v6 }
  0x9e   : > { %5760 = vrot.lane.b32.xlu0 %v5759_v50, %s6376_s9  ;;  %v5742_v9 = vunpack.i.l.bf16 %v5741_v0  ;;  %v5743_v17 = vunpack.i.h.bf16 %v5741_v0 }
  0x9f   : > { %v6570_v55 = vsel %vm11472_vm0, %v11445_v52, %v5727_v47  ;;  %v6574_v56 = vsel %vm11472_vm0, %v5728_v46, %v5732_v53  ;;  %v6587_v61 = vsel %vm11472_vm0, %v5732_v53, %v5737_v59  ;;  %v307_v46 = vrot.slane %v6691_v44, %v6485_v6 }
  0xa0   : > { %v6577_v57 = vpack.i.bf16 %v6570_v55, %v479_v23  ;;  %v5754_v58 = vpack.i.bf16 %v6574_v56, %v6561_v51  ;;  %v5779_v60 = vpack.i.bf16 %v6574_v56, %v487_v22  ;;  %v5789_v62 = vpack.i.bf16 %v6555_v48, %v6587_v61  ;;  %v6622_v18 = vpop.permute.xlu0 %5745 }
  0xa1   : > { %v5799_v63 = vpack.i.bf16 %v6587_v61, %v491_v24  ;;  %v6612_v13 = vsel %vm11472_vm0, %v5738_v7, %v5742_v9  ;;  %v6631_v21 = vsel %vm11472_vm0, %v5742_v9, %v5743_v17  ;;  %v5748_v22 = vunpack.i.h.bf16 %v6622_v18 }
  0xa2   : > { %5770 = vrot.lane.b32.xlu0 %v6577_v57, %s6376_s9  ;;  %5755 = vrot.lane.b32.xlu1 %v5754_v58, %s6375_s8  ;;  %v5834_v15 = vpack.i.bf16 %v6604_v10, %v6612_v13  ;;  %v5747_v23 = vunpack.i.l.bf16 %v6622_v18  ;;  %v5849_v24 = vpack.i.bf16 %v6612_v13, %v6510_v26  ;;  %v5859_v8 = vpack.i.bf16 %v6631_v21, %v6513_v27 }
  0xa3   : > { %v5829_v26 = vpack.i.bf16 %v6608_v11, %v6638_v25  ;;  %v6658_v27 = vrot.slane %v287_v29, %v6485_v6  ;;  %v299_v59 = vrot.slane %v229_v20, %v6473_v3 }
  0xa4   : > { %v6649_v31 = vsel %vm11472_vm0, %v5747_v23, %v5748_v22  ;;  %v6675_v37 = vsel %vm11472_vm0, %v5743_v17, %v5747_v23  ;;  %v6710_v54 = vpop.permute.xlu0 %5750 }
  0xa5   : > { %v5869_v32 = vpack.i.bf16 %v6649_v31, %v6524_v34  ;;  %v5844_v33 = vpack.i.bf16 %v6661_v12, %v6658_v27  ;;  %v6671_v34 = vrot.slane %v295_v36, %v6485_v6  ;;  %v5864_v39 = vpack.i.bf16 %v6675_v37, %v6516_v28 }
  0xa6   : > { %5780 = vrot.lane.b32.xlu0 %v5779_v60, %s6377_s10  ;;  %5765 = vrot.lane.b32.xlu1 %v5779_v60, %s6376_s9  ;;  %v5899_v45 = vpack.i.bf16 %v6649_v31, %v6675_v37  ;;  %v303_v28 = vrot.slane %v229_v20, %v6476_v4  ;;  %v6719_v0 = vrot.slane %v299_v59, %v6485_v6  ;;  %v5752_v5 = vunpack.i.l.bf16 %v6710_v54 }
  0xa7   : > { %v5894_v38 = vpack.i.bf16 %v6631_v21, %v6671_v34 }
  0xa8   : > { %v6701_v47 = vrot.slane %v303_v28, %v6485_v6 }
  0xaa   : > { %5775 = vrot.lane.b32.xlu1 %v5759_v50, %s6377_s10  ;;  %5790 = vrot.lane.b32.xlu0 %v5789_v62, %s6375_s8 }
  0xae   : > { %5785 = vrot.lane.b32.xlu1 %v6577_v57, %s6377_s10  ;;  %5800 = vrot.lane.b32.xlu0 %v5799_v63, %s6378_s11 }
  0xb2   : > { %5795 = vrot.lane.b32.xlu1 %v5779_v60, %s6378_s11  ;;  %5810 = vrot.lane.b32.xlu0 %v5799_v63, %s6376_s9  ;;  %v5753_v60 = vunpack.i.h.bf16 %v6710_v54 }
  0xb4   : > { %v6727_v9 = vsel %vm11472_vm0, %v5752_v5, %v5753_v60 }
  0xb6   : > { %5805 = vrot.lane.b32.xlu1 %v5759_v50, %s6378_s11  ;;  %5820 = vrot.lane.b32.xlu0 %v5799_v63, %s6377_s10  ;;  %v6704_v50 = vrot.slane %v307_v46, %v6485_v6 }
  0xb8   : > { %v5924_v53 = vpack.i.bf16 %v6704_v50, %v6701_v47 }
  0xba   : > { %5835 = vrot.lane.b32.xlu0 %v5834_v15, %s6375_s8  ;;  %5815 = vrot.lane.b32.xlu1 %v5814_v16, %s6376_s9 }
  0xbe   : > { %5850 = vrot.lane.b32.xlu0 %v5849_v24, %s6378_s11  ;;  %5825 = vrot.lane.b32.xlu1 %v5814_v16, %s6377_s10 }
  0xc2   : > { %5860 = vrot.lane.b32.xlu0 %v5859_v8, %s6376_s9  ;;  %5830 = vrot.lane.b32.xlu1 %v5829_v26, %s6375_s8 }
  0xc6   : > { %5870 = vrot.lane.b32.xlu0 %v5869_v32, %s6376_s9  ;;  %5840 = vrot.lane.b32.xlu1 %v5814_v16, %s6378_s11 }
  0xca   : > { %5880 = vrot.lane.b32.xlu0 %v5859_v8, %s6377_s10  ;;  %5845 = vrot.lane.b32.xlu1 %v5844_v33, %s6375_s8 }
  0xce   : > { %5890 = vrot.lane.b32.xlu0 %v5869_v32, %s6377_s10  ;;  %5855 = vrot.lane.b32.xlu1 %v5849_v24, %s6376_s9 }
  0xd2   : > { %5895 = vrot.lane.b32.xlu0 %v5894_v38, %s6375_s8  ;;  %5865 = vrot.lane.b32.xlu1 %v5864_v39, %s6376_s9 }
  0xd6   : > { %5875 = vrot.lane.b32.xlu1 %v5849_v24, %s6377_s10 }
  0xda   : > { %5885 = vrot.lane.b32.xlu1 %v5864_v39, %s6377_s10 }
  0xde   : > { %5900 = vrot.lane.b32.xlu1 %v5899_v45, %s6375_s8 }
  0xe2   : > { %5910 = vrot.lane.b32.xlu1 %v5859_v8, %s6378_s11 }
  0xe6   : > { %5920 = vrot.lane.b32.xlu1 %v5869_v32, %s6378_s11 }
  0xea   : > { %5925 = vrot.lane.b32.xlu1 %v5924_v53, %s6375_s8 }
 0x110   : > { %v5761_v58 = vpop.permute.xlu0 %5760 }
 0x111   : > { %v5763_v24 = vunpack.i.h.bf16 %v5761_v58  ;;  %v5762_v8 = vunpack.i.l.bf16 %v5761_v58 }
 0x114   : > { %v6714_v62 = vpop.permute.xlu0 %5770  ;;  %v6716_v63 = vpop.permute.xlu1 %5755 }
 0x115   : > { %v5757_v7 = vunpack.i.l.bf16 %v6716_v63  ;;  %v11443_v15 = vunpack.i.h.bf16 %v6714_v62  ;;  %v11444_v16 = vunpack.i.l.bf16 %v6714_v62 }
 0x117   : > { %v6733_v17 = vsel %vm11472_vm0, %v5748_v22, %v5757_v7  ;;  %v6750_v22 = vpack.i.bf16 %v6727_v9, %v6539_v40  ;;  %v746_v32 = vsel %vm11478_vm1, %v11444_v16, %v5762_v8  ;;  %v747_v40 = vsel %vm11478_vm1, %v11443_v15, %v5763_v24 }
 0x118   : > { %v6736_v18 = vpop.permute.xlu0 %5780  ;;  %v6738_v19 = vpop.permute.xlu1 %5765  ;;  %v5904_v20 = vpack.i.bf16 %v6719_v0, %v6733_v17  ;;  %v5934_v23 = vpack.i.bf16 %v6733_v17, %v6527_v35  ;;  %v748_v59 = vpack.c.bf16 %v747_v40, %v746_v32 }
 0x119   : > { %v5768_v29 = vunpack.i.h.bf16 %v6738_v19  ;;  %v5767_v30 = vunpack.i.l.bf16 %v6738_v19  ;;  %v5783_v33 = vunpack.i.h.bf16 %v6736_v18  ;;  %v5782_v28 = vunpack.i.l.bf16 %v6736_v18 }
 0x11a   : > { %5905 = vrot.lane.b32.xlu0 %v5904_v20, %s6375_s8  ;;  %5935 = vrot.lane.b32.xlu1 %v5934_v23, %s6376_s9  ;;  %v5758_v20 = vunpack.i.h.bf16 %v6716_v63 }
 0x11b   : > { %v744_v26 = vsel %vm11478_vm1, %v5762_v8, %v5767_v30  ;;  %v745_v35 = vsel %vm11478_vm1, %v5763_v24, %v5768_v29  ;;  %v6777_v24 = vsel %vm11472_vm0, %v5757_v7, %v5752_v5 }
 0x11c   : > { %v5776_v36 = vpop.permute.xlu1 %5775  ;;  %v6770_v38 = vpop.permute.xlu0 %5790  ;;  %v749_v45 = vpack.c.bf16 %v745_v35, %v744_v26 }
 0x11d   : > { %v5778_v46 = vunpack.i.h.bf16 %v5776_v36  ;;  %v5777_v53 = vunpack.i.l.bf16 %v5776_v36  ;;  %v5792_v58 = vunpack.i.l.bf16 %v6770_v38  ;;  %v11447_v7 = vunpack.i.h.bf16 %v6770_v38 }
 0x11e   : > { %1547 = vmatprep.subr.bf16.mxu0 %v749_v45  ;;  %5651 = vmatprep.subr.bf16.mxu1 %v749_v45 }
 0x11f   : > { %5915 = vrot.lane.b32.xlu0 %v5864_v39, %s6378_s11  ;;  %5945 = vrot.lane.b32.xlu1 %v6750_v22, %s6376_s9  ;;  %v969_v8 = vsel %vm11477_vm2, %v5777_v53, %v5782_v28  ;;  %v970_v26 = vsel %vm11477_vm2, %v5778_v46, %v5783_v33  ;;  %v1110_v40 = vsel %vm11472_vm0, %v5758_v20, %v5792_v58 }
 0x120   : > { %1548 = vmatpush1.bf16.msra.mxu0 %v748_v59  ;;  %5655 = vmatpush1.bf16.msra.mxu1 %v748_v59  ;;  %v6790_v63 = vpop.permute.xlu1 %5785  ;;  %v6792_v5 = vpop.permute.xlu0 %5800  ;;  %v974_v39 = vpack.c.bf16 %v970_v26, %v969_v8  ;;  %v1114_v15 = vpack.c.bf16 %v1110_v40, %v6574_v56 }
 0x121   : > { %v11446_v35 = vunpack.i.h.bf16 %v6790_v63  ;;  %v11448_v32 = vunpack.i.l.bf16 %v6790_v63 }
 0x122   : > { %1549 = vmatprep.subr.bf16.mxu0 %v974_v39  ;;  %5652 = vmatprep.subr.bf16.mxu1 %v974_v39  ;;  %v6814_v39 = vpack.i.bf16 %v6777_v24, %v6561_v51 }
 0x123   : > { %5930 = vrot.lane.b32.xlu0 %v5934_v23, %s6378_s11  ;;  %5955 = vrot.lane.b32.xlu1 %v5934_v23, %s6377_s10  ;;  %v971_v36 = vsel %vm11477_vm2, %v11448_v32, %v5777_v53  ;;  %v972_v45 = vsel %vm11477_vm2, %v11446_v35, %v5778_v46  ;;  %v11451_v23 = vunpack.i.l.bf16 %v6792_v5  ;;  %v1111_v53 = vsel %vm11472_vm0, %v11447_v7, %v5758_v20 }
 0x124   : > { %v5796_v59 = vpop.permute.xlu1 %5795  ;;  %v5811_v8 = vpop.permute.xlu0 %5810  ;;  %v973_v26 = vpack.c.bf16 %v972_v45, %v971_v36  ;;  %v5803_v46 = vunpack.i.h.bf16 %v6792_v5  ;;  %v1113_v36 = vpack.c.bf16 %v1111_v53, %v6555_v48 }
 0x125   : > { %v5798_v16 = vunpack.i.h.bf16 %v5796_v59  ;;  %v5797_v52 = vunpack.i.l.bf16 %v5796_v59  ;;  %v5812_v35 = vunpack.i.l.bf16 %v5811_v8 }
 0x126   : > { %1550 = vmatpush1.bf16.msra.mxu0 %v973_v26  ;;  %5656 = vmatpush1.bf16.msra.mxu1 %v973_v26  ;;  %v5813_v26 = vunpack.i.h.bf16 %v5811_v8 }
 0x127   : > { %5940 = vrot.lane.b32.xlu0 %v6814_v39, %s6376_s9  ;;  %1551 = vmatprep.subr.bf16.mxu0 %v1114_v15  ;;  %v1332_v51 = vsel %vm11469_vm3, %v5797_v52, %v11451_v23  ;;  %v1333_v20 = vsel %vm11469_vm3, %v5798_v16, %v5803_v46 }
 0x128   : > { %5653 = vmatprep.subr.bf16.mxu1 %v1114_v15  ;;  %v6829_v56 = vpop.permute.xlu1 %5805  ;;  %v5821_v40 = vpop.permute.xlu0 %5820  ;;  %5965 = vrot.lane.b32.xlu1 %v6750_v22, %s6377_s10  ;;  %v1339_v15 = vpack.c.bf16 %v1333_v20, %v1332_v51  ;;  %v743_v20 = vsel %vm11478_vm1, %v5768_v29, %v5813_v26 }
 0x129   : > { %11821 = vst [vmem:[#allocation11_spill] sm:$0xff] %v6829_v56  ;;  %v11449_v45 = vunpack.i.h.bf16 %v6829_v56  ;;  %v11450_v59 = vunpack.i.l.bf16 %v6829_v56 }
 0x12a   : > { %1552 = vmatpush1.bf16.msra.mxu0 %v1113_v36  ;;  %5657 = vmatpush1.bf16.msra.mxu1 %v1113_v36 }
 0x12b   : > { %v1334_v48 = vsel %vm11469_vm3, %v11450_v59, %v5797_v52  ;;  %v1335_v53 = vsel %vm11469_vm3, %v11449_v45, %v5798_v16  ;;  %1553 = vmatprep.subr.bf16.mxu0 %v1339_v15  ;;  %5654 = vmatprep.subr.bf16.mxu1 %v1339_v15  ;;  %v6857_v52 = vld [vmem:[%s11439_s1 + $0x10] sm:$0xff]   ;;  %v6862_v16 = vld [vmem:[%s11439_s1] sm:$0xff]   ;;  %v742_v15 = vsel %vm11478_vm1, %v5767_v30, %v5812_v35 }
 0x12c   : > { %v6848_v7 = vpop.permute.xlu0 %5835  ;;  %v6850_v32 = vpop.permute.xlu1 %5815  ;;  %v1338_v8 = vpack.c.bf16 %v1335_v53, %v1334_v48  ;;  %v5823_v48 = vunpack.i.h.bf16 %v5821_v40  ;;  %v5822_v53 = vunpack.i.l.bf16 %v5821_v40 }
 0x12d   : > { %v11454_v36 = vunpack.i.h.bf16 %v6850_v32  ;;  %v5817_v51 = vunpack.i.l.bf16 %v6850_v32 }
 0x12e   : > { %1554 = vmatpush1.bf16.msra.mxu0 %v1338_v8  ;;  %5658 = vmatpush1.bf16.msra.mxu1 %v1338_v8  ;;  %v750_v8 = vpack.c.bf16 %v743_v20, %v742_v15 }
 0x12f   : > { %v740_v45 = vsel %vm11478_vm1, %v5812_v35, %v5817_v51  ;;  %v741_v59 = vsel %vm11478_vm1, %v5813_v26, %v11454_v36  ;;  %v968_v35 = vsel %vm11477_vm2, %v5783_v33, %v5823_v48 }
 0x130   : > { %v6880_v29 = vpop.permute.xlu0 %5850  ;;  %v6882_v19 = vpop.permute.xlu1 %5825  ;;  %v751_v23 = vpack.c.bf16 %v741_v59, %v740_v45  ;;  %v967_v45 = vsel %vm11477_vm2, %v5782_v28, %v5822_v53 }
 0x131   : > { %v11452_v30 = vunpack.i.h.bf16 %v6882_v19  ;;  %v11453_v40 = vunpack.i.l.bf16 %v6882_v19  ;;  %5335 = vmatmul.mubr.msk.bf16.vlgmr.msra.gmra.mrb[0].mxu1 %vm11479_vm4, %v6857_v52  ;;  %5333 = vmatmul.mubr.msk.bf16.vlgmr.msra.gmra.mrb[0].mxu0 %vm11479_vm4, %v6862_v16  ;;  %v11827_v56 = vunpack.i.l.bf16 %v6882_v19 }
 0x132   : > { %1620 = vmatprep.subr.bf16.mxu1 %v751_v23  ;;  %1609 = vmatprep.mubr.bf16.mxu1 %v11460_v14  ;;  %v11457_v23 = vunpack.i.l.bf16 %v6848_v7 }
 0x133   : > { %1621 = vmatpush1.bf16.msra.mxu1 %v750_v8  ;;  %v965_v59 = vsel %vm11477_vm2, %v5822_v53, %v11453_v40  ;;  %v966_v26 = vsel %vm11477_vm2, %v5823_v48, %v11452_v30  ;;  %1589 = vmatprep.mubr.bf16.mxu0 %v11460_v14  ;;  %v975_v8 = vpack.c.bf16 %v968_v35, %v967_v45  ;;  %v6914_v53 = vld [vmem:[%s11439_s1 + $0x18] sm:$0xff]   ;;  %v6919_v48 = vld [vmem:[%s11439_s1 + $0x8] sm:$0xff]  }
 0x134   : > { %v6908_v18 = vpop.permute.xlu0 %5860  ;;  %v5831_v33 = vpop.permute.xlu1 %5830  ;;  %v976_v28 = vpack.c.bf16 %v966_v26, %v965_v59 }
 0x135   : > { %v5833_v20 = vunpack.i.h.bf16 %v5831_v33  ;;  %v5832_v15 = vunpack.i.l.bf16 %v5831_v33 }
 0x136   : > { %1622 = vmatprep.subr.bf16.mxu1 %v976_v28 }
 0x137   : > { %v1109_v59 = vsel %vm11472_vm0, %v5792_v58, %v5833_v20  ;;  %v6929_v35 = vsel %vm11472_vm0, %v5753_v60, %v5832_v15  ;;  %1623 = vmatpush1.bf16.msra.mxu1 %v975_v8  ;;  %v1108_v45 = vsel %vm11472_vm0, %v5833_v20, %v11457_v23  ;;  %v11456_v60 = vunpack.i.h.bf16 %v6880_v29 }
 0x138   : > { %v5841_v26 = vpop.permute.xlu1 %5840  ;;  %v5979_v33 = vpack.i.bf16 %v6929_v35, %v6727_v9  ;;  %v5949_v28 = vpack.i.bf16 %v6929_v35, %v6542_v41  ;;  %v1116_v58 = vpack.c.bf16 %v1108_v45, %v6608_v11  ;;  %v1115_v54 = vpack.c.bf16 %v1109_v59, %v6587_v61  ;;  %v6943_v30 = vpop.permute.xlu0 %5870 }
 0x139   : > { %v11455_v8 = vunpack.i.l.bf16 %v6880_v29  ;;  %v5843_v40 = vunpack.i.h.bf16 %v5841_v26  ;;  %v5842_v36 = vunpack.i.l.bf16 %v5841_v26  ;;  %5336 = vmatmul.mubr.msk.bf16.gmra.mrb[4].mxu1 %vm11479_vm4, %v6914_v53  ;;  %5334 = vmatmul.mubr.msk.bf16.gmra.mrb[4].mxu0 %vm11479_vm4, %v6919_v48  ;;  %v311_v41 = vrot.slane %v6691_v44, %v6470_v2 }
 0x13a   : > { %5980 = vrot.lane.b32.xlu1 %v5979_v33, %s6375_s8  ;;  %5950 = vrot.lane.b32.xlu0 %v5949_v28, %s6376_s9  ;;  %v11822_v11 = vunpack.i.l.bf16 %v6792_v5  ;;  %v315_v5 = vrot.slane %v6691_v44, %v6473_v3 }
 0x13b   : > { %v1331_v61 = vsel %vm11469_vm3, %v5803_v46, %v5843_v40  ;;  %1624 = vmatprep.subr.bf16.mxu1 %v1116_v58  ;;  %v1328_v59 = vsel %vm11469_vm3, %v5842_v36, %v11455_v8  ;;  %v1329_v45 = vsel %vm11469_vm3, %v5843_v40, %v11456_v60  ;;  %1652 = vmatprep.mubr.bf16.mxu1 %v11460_v14  ;;  %v5863_v40 = vunpack.i.h.bf16 %v6908_v18 }
 0x13c   : > { %v1330_v20 = vsel %vm11469_vm3, %v11822_v11, %v5842_v36  ;;  %1625 = vmatpush1.bf16.msra.mxu1 %v1115_v54  ;;  %v6969_v26 = vpop.permute.xlu1 %5845  ;;  %v1341_v46 = vpack.c.bf16 %v1329_v45, %v1328_v59  ;;  %1725 = vmatprep.mubr.bf16.mxu0 %v11460_v14  ;;  %v6980_v36 = vrot.slane %v311_v41, %v6485_v6  ;;  %v5862_v58 = vunpack.i.l.bf16 %v6908_v18  ;;  %v6984_v54 = vpop.permute.xlu0 %5880 }
 0x13d   : > { %v1340_v33 = vpack.c.bf16 %v1331_v61, %v1330_v20  ;;  %v11458_v61 = vunpack.i.h.bf16 %v6848_v7  ;;  %v6988_v45 = vrot.slane %v315_v5, %v6485_v6  ;;  %v11459_v18 = vunpack.i.h.bf16 %v6969_v26 }
 0x13e   : > { %5990 = vrot.lane.b32.xlu1 %v6814_v39, %s6378_s11  ;;  %5960 = vrot.lane.b32.xlu0 %v6814_v39, %s6377_s10  ;;  %v11823_v5 = vunpack.i.h.bf16 %v6850_v32 }
 0x13f   : > { %1626 = vmatprep.subr.bf16.mxu1 %v1341_v46  ;;  %v6994_v39 = vsel %vm11472_vm0, %v5832_v15, %v11458_v61  ;;  %v5974_v46 = vpack.i.bf16 %v6777_v24, %v6980_v36 }
 0x140   : > { %1627 = vmatpush1.bf16.msra.mxu1 %v1340_v33  ;;  %v5856_v11 = vpop.permute.xlu1 %5855  ;;  %v7019_v32 = vpop.permute.xlu0 %5890 }
 0x141   : > { %v5858_v20 = vunpack.i.h.bf16 %v5856_v11  ;;  %v5857_v59 = vunpack.i.l.bf16 %v5856_v11 }
 0x142   : > { %6000 = vrot.lane.b32.xlu1 %v5949_v28, %s6378_s11  ;;  %5970 = vrot.lane.b32.xlu0 %v5949_v28, %s6377_s10  ;;  %v11824_v28 = vunpack.i.l.bf16 %v6969_v26 }
 0x143   : > { %v738_v33 = vsel %vm11478_vm1, %v5817_v51, %v5857_v59  ;;  %v739_v15 = vsel %vm11478_vm1, %v11823_v5, %v5858_v20  ;;  %v736_v11 = vsel %vm11478_vm1, %v5857_v59, %v5862_v58  ;;  %v737_v8 = vsel %vm11478_vm1, %v5858_v20, %v5863_v40  ;;  %5337 = vmatmul.mubr.msk.bf16.vlgmr.msra.gmra.mrb[8].mxu1 %vm11479_vm4, %v6862_v16 }
 0x144   : > { %v5866_v23 = vpop.permute.xlu1 %5865  ;;  %v753_v51 = vpack.c.bf16 %v737_v8, %v736_v11  ;;  %v752_v61 = vpack.c.bf16 %v739_v15, %v738_v33  ;;  %1662 = vmatprep.mubr.bf16.mxu1 %v11460_v14  ;;  %v6009_v59 = vpack.i.bf16 %v6994_v39, %v6638_v25  ;;  %v5883_v20 = vunpack.i.h.bf16 %v6984_v54  ;;  %v7055_v14 = vpop.permute.xlu0 %5895 }
 0x145   : > { %v5868_v5 = vunpack.i.h.bf16 %v5866_v23  ;;  %v5867_v41 = vunpack.i.l.bf16 %v5866_v23  ;;  %v7030_v60 = vsel %vm11472_vm0, %v11824_v28, %v11459_v18  ;;  %v5882_v8 = vunpack.i.l.bf16 %v6984_v54 }
 0x146   : > { %1693 = vmatprep.subr.bf16.mxu0 %v753_v51  ;;  %5975 = vrot.lane.b32.xlu0 %v5974_v46, %s6375_s8  ;;  %v7041_v33 = vpack.i.bf16 %v7030_v60, %v6658_v27  ;;  %v5984_v11 = vpack.i.bf16 %v6988_v45, %v6994_v39  ;;  %v11825_v46 = vunpack.i.l.bf16 %v6943_v30 }
 0x147   : > { %v735_v23 = vsel %vm11478_vm1, %v5863_v40, %v5868_v5  ;;  %v734_v25 = vsel %vm11478_vm1, %v5862_v58, %v5867_v41  ;;  %6010 = vrot.lane.b32.xlu1 %v6009_v59, %s6376_s9  ;;  %1694 = vmatpush1.bf16.msra.mxu0 %v752_v61  ;;  %v11826_v40 = vunpack.i.h.bf16 %v6943_v30  ;;  %v5892_v61 = vunpack.i.l.bf16 %v7019_v32 }
 0x148   : > { %v5876_v15 = vpop.permute.xlu1 %5875  ;;  %v732_v54 = vsel %vm11478_vm1, %v5867_v41, %v11825_v46  ;;  %v754_v27 = vpack.c.bf16 %v735_v23, %v734_v25  ;;  %v11828_v46 = vunpack.i.h.bf16 %v6882_v19 }
 0x149   : > { %v733_v58 = vsel %vm11478_vm1, %v5868_v5, %v11826_v40  ;;  %v5878_v28 = vunpack.i.h.bf16 %v5876_v15  ;;  %v5877_v51 = vunpack.i.l.bf16 %v5876_v15  ;;  %v5893_v15 = vunpack.i.h.bf16 %v7019_v32 }
 0x14a   : > { %v755_v18 = vpack.c.bf16 %v733_v58, %v732_v54  ;;  %5985 = vrot.lane.b32.xlu0 %v5984_v11, %s6375_s8  ;;  %v11829_v58 = vmov 0  }
 0x14b   : > { %v963_v41 = vsel %vm11477_vm2, %v11827_v56, %v5877_v51  ;;  %v964_v5 = vsel %vm11477_vm2, %v11828_v46, %v5878_v28  ;;  %6020 = vrot.lane.b32.xlu1 %v7041_v33, %s6376_s9  ;;  %v961_v23 = vsel %vm11477_vm2, %v5877_v51, %v5882_v8  ;;  %v962_v25 = vsel %vm11477_vm2, %v5878_v28, %v5883_v20 }
 0x14c   : > { %v5886_v11 = vpop.permute.xlu1 %5885  ;;  %v978_v54 = vpack.c.bf16 %v962_v25, %v961_v23  ;;  %1766 = vmatprep.subr.bf16.mxu1 %v755_v18  ;;  %v977_v56 = vpack.c.bf16 %v964_v5, %v963_v41  ;;  %5338 = vmatmul.mubr.msk.bf16.gmra.mrb[12].mxu1 %vm11479_vm4, %v6919_v48  ;;  %v5898_v46 = vunpack.i.h.bf16 %v7055_v14  ;;  %v11831_v5 = vunpack.i.h.bf16 %v6848_v7 }
 0x14d   : > { %v5888_v19 = vunpack.i.h.bf16 %v5886_v11  ;;  %v5887_v40 = vunpack.i.l.bf16 %v5886_v11  ;;  %1767 = vmatpush1.bf16.msra.mxu1 %v754_v27  ;;  %1672 = vmatprep.mubr.bf16.mxu1 %v11829_v58  ;;  %v5897_v23 = vunpack.i.l.bf16 %v7055_v14 }
 0x14e   : > { %5995 = vrot.lane.b32.xlu0 %v6750_v22, %s6378_s11  ;;  %1695 = vmatprep.subr.bf16.mxu0 %v978_v54  ;;  %v11832_v54 = vunpack.i.l.bf16 %v6848_v7 }
 0x14f   : > { %v960_v28 = vsel %vm11477_vm2, %v5883_v20, %v5888_v19  ;;  %v959_v18 = vsel %vm11477_vm2, %v5882_v8, %v5887_v40  ;;  %6030 = vrot.lane.b32.xlu1 %v6009_v59, %s6377_s10  ;;  %1696 = vmatpush1.bf16.msra.mxu0 %v977_v56  ;;  %v957_v51 = vsel %vm11477_vm2, %v5887_v40, %v5892_v61  ;;  %v11830_v20 = vunpack.i.l.bf16 %v6969_v26 }
 0x150   : > { %v5901_v27 = vpop.permute.xlu1 %5900  ;;  %v958_v22 = vsel %vm11477_vm2, %v5888_v19, %v5893_v15  ;;  %v979_v41 = vpack.c.bf16 %v960_v28, %v959_v18  ;;  %v1107_v56 = vsel %vm11472_vm0, %v11832_v54, %v5898_v46  ;;  %v7110_v40 = vunpack.c.h.bf16 %v6687_v42 }
 0x151   : > { %v7097_v8 = vsel %vm11472_vm0, %v11831_v5, %v11830_v20  ;;  %v5902_v25 = vunpack.i.l.bf16 %v5901_v27  ;;  %v980_v11 = vpack.c.bf16 %v958_v22, %v957_v51  ;;  %v11833_v18 = vunpack.i.h.bf16 %v6969_v26 }
 0x152   : > { %6005 = vrot.lane.b32.xlu0 %v6009_v59, %s6378_s11  ;;  %v6049_v7 = vpack.i.bf16 %v7030_v60, %v7097_v8  ;;  %v6014_v28 = vpack.i.bf16 %v7097_v8, %v6604_v10  ;;  %v1117_v42 = vpack.c.bf16 %v1107_v56, %v6612_v13  ;;  %v319_v10 = vrot.slane %v6691_v44, %v6476_v4 }
 0x153   : > { %6040 = vrot.lane.b32.xlu1 %v7041_v33, %s6377_s10  ;;  %1768 = vmatprep.subr.bf16.mxu1 %v980_v11  ;;  %v1106_v19 = vsel %vm11472_vm0, %v5898_v46, %v5902_v25  ;;  %v7121_v51 = vsel %vm11472_vm0, %v11833_v18, %v5897_v23  ;;  %v323_v13 = vrot.slane %v7110_v40, %v6485_v6 }
 0x154   : > { %1769 = vmatpush1.bf16.msra.mxu1 %v979_v41  ;;  %v5911_v14 = vpop.permute.xlu1 %5910  ;;  %v1118_v59 = vpack.c.bf16 %v1106_v19, %v6631_v21  ;;  %v11834_v21 = vunpack.i.h.bf16 %v6880_v29  ;;  %v11835_v41 = vunpack.i.l.bf16 %v6880_v29  ;;  %v6024_v5 = vpack.i.bf16 %v7121_v51, %v6661_v12 }
 0x155   : > { %v5913_v46 = vunpack.i.h.bf16 %v5911_v14  ;;  %v5912_v22 = vunpack.i.l.bf16 %v5911_v14  ;;  %5339 = vmatmul.mubr.msk.bf16.gmra.mrb[16].mxu1 %vm11479_vm4, %v6857_v52  ;;  %v7146_v29 = vrot.slane %v319_v10, %v6485_v6  ;;  %v7149_v11 = vrot.slane %v323_v13, %v6485_v6 }
 0x156   : > { %6015 = vrot.lane.b32.xlu0 %v6014_v28, %s6376_s9  ;;  %1697 = vmatprep.subr.bf16.mxu0 %v1118_v59  ;;  %v5903_v19 = vunpack.i.h.bf16 %v5901_v27 }
 0x157   : > { %v1327_v26 = vsel %vm11469_vm3, %v11834_v21, %v5913_v46  ;;  %v1326_v20 = vsel %vm11469_vm3, %v11835_v41, %v5912_v22  ;;  %6050 = vrot.lane.b32.xlu1 %v6049_v7, %s6375_s8  ;;  %1698 = vmatpush1.bf16.msra.mxu0 %v1117_v42  ;;  %v6079_v12 = vpack.i.bf16 %v7149_v11, %v7146_v29 }
 0x158   : > { %v1342_v44 = vpack.c.bf16 %v1327_v26, %v1326_v20  ;;  %1682 = vmatprep.mubr.bf16.mxu1 %v11829_v58  ;;  %v5921_v54 = vpop.permute.xlu1 %5920  ;;  %v1105_v18 = vsel %vm11472_vm0, %v5902_v25, %v5903_v19 }
 0x15a   : > { %6025 = vrot.lane.b32.xlu0 %v6024_v5, %s6376_s9 }
 0x15b   : > { %6060 = vrot.lane.b32.xlu1 %v6014_v28, %s6378_s11 }
 0x15c   : > { %v7160_v56 = vpop.permute.xlu1 %5925 }
 0x15d   : > { %5340 = vmatmul.mubr.msk.bf16.gmra.mrb[20].mxu1 %vm11479_vm4, %v6914_v53  ;;  %v5927_v14 = vunpack.i.l.bf16 %v7160_v56 }
 0x15e   : > { %6035 = vrot.lane.b32.xlu0 %v6014_v28, %s6377_s10  ;;  %1798 = vmatprep.mubr.bf16.mxu1 %v11829_v58 }
 0x15f   : > { %6070 = vrot.lane.b32.xlu1 %v6024_v5, %s6378_s11 }
 0x162   : > { %6045 = vrot.lane.b32.xlu0 %v6024_v5, %s6377_s10 }
 0x163   : > { %6080 = vrot.lane.b32.xlu1 %v6079_v12, %s6375_s8 }
 0x18c   : > { %v7163_v7 = vpop.permute.xlu0 %5905 }
 0x18d   : > { %v5908_v28 = vunpack.i.h.bf16 %v7163_v7  ;;  %v5907_v59 = vunpack.i.l.bf16 %v7163_v7 }
 0x18f   : > { %v7171_v42 = vsel %vm11472_vm0, %v5908_v28, %v5927_v14  ;;  %v7175_v10 = vsel %vm11472_vm0, %v5897_v23, %v5908_v28  ;;  %v1104_v25 = vsel %vm11472_vm0, %v5903_v19, %v5907_v59  ;;  %v5936_v23 = vpop.permute.xlu1 %5935  ;;  %v5923_v19 = vunpack.i.h.bf16 %v5921_v54 }
 0x190   : > { %v7179_v27 = vpack.i.bf16 %v7171_v42, %v6719_v0  ;;  %v6054_v21 = vpack.i.bf16 %v7175_v10, %v7121_v51  ;;  %v1120_v41 = vpack.c.bf16 %v1104_v25, %v6649_v31  ;;  %v1119_v0 = vpack.c.bf16 %v1105_v18, %v6675_v37 }
 0x191   : > { %v5916_v26 = vpop.permute.xlu0 %5915  ;;  %v5922_v31 = vunpack.i.l.bf16 %v5921_v54  ;;  %v5938_v37 = vunpack.i.h.bf16 %v5936_v23  ;;  %v5937_v18 = vunpack.i.l.bf16 %v5936_v23  ;;  %v6074_v54 = vpack.i.bf16 %v7175_v10, %v6671_v34 }
 0x192   : > { %v5918_v20 = vunpack.i.h.bf16 %v5916_v26  ;;  %v5917_v13 = vunpack.i.l.bf16 %v5916_v26  ;;  %6090 = vrot.lane.b32.xlu1 %v7179_v27, %s6376_s9  ;;  %6055 = vrot.lane.b32.xlu0 %v6054_v21, %s6375_s8  ;;  %v11836_v34 = vunpack.i.h.bf16 %v6943_v30 }
 0x193   : > { %1770 = vmatprep.subr.bf16.mxu1 %v1120_v41 }
 0x194   : > { %1771 = vmatpush1.bf16.msra.mxu1 %v1119_v0  ;;  %v1324_v5 = vsel %vm11469_vm3, %v5912_v22, %v5917_v13  ;;  %v1325_v12 = vsel %vm11469_vm3, %v5913_v46, %v5918_v20  ;;  %v1322_v22 = vsel %vm11469_vm3, %v5917_v13, %v5922_v31  ;;  %v1323_v46 = vsel %vm11469_vm3, %v5918_v20, %v5923_v19 }
 0x195   : > { %v7196_v28 = vpop.permute.xlu0 %5930  ;;  %v1343_v25 = vpack.c.bf16 %v1325_v12, %v1324_v5  ;;  %v5928_v13 = vunpack.i.h.bf16 %v7160_v56  ;;  %v731_v12 = vsel %vm11478_vm1, %v11836_v34, %v5938_v37 }
 0x196   : > { %v11467_v26 = vunpack.i.h.bf16 %v7196_v28  ;;  %v11464_v21 = vunpack.i.l.bf16 %v7196_v28  ;;  %6065 = vrot.lane.b32.xlu0 %v7041_v33, %s6378_s11 }
 0x197   : > { %1699 = vmatprep.subr.bf16.mxu0 %v1343_v25 }
 0x198   : > { %1700 = vmatpush1.bf16.msra.mxu0 %v1342_v44  ;;  %v1320_v41 = vsel %vm11469_vm3, %v5922_v31, %v11464_v21  ;;  %v1321_v33 = vsel %vm11469_vm3, %v5923_v19, %v11467_v26  ;;  %v1344_v44 = vpack.c.bf16 %v1323_v46, %v1322_v22  ;;  %v11837_v31 = vunpack.i.l.bf16 %v6943_v30 }
 0x199   : > { %v5941_v0 = vpop.permute.xlu0 %5940  ;;  %v1345_v23 = vpack.c.bf16 %v1321_v33, %v1320_v41  ;;  %v7236_v46 = vsel %vm11472_vm0, %v5927_v14, %v5928_v13  ;;  %v5946_v41 = vpop.permute.xlu1 %5945 }
 0x19a   : > { %v5943_v20 = vunpack.i.h.bf16 %v5941_v0  ;;  %v5942_v5 = vunpack.i.l.bf16 %v5941_v0  ;;  %6075 = vrot.lane.b32.xlu0 %v6074_v54, %s6378_s11  ;;  %v730_v25 = vsel %vm11478_vm1, %v11837_v31, %v5937_v18  ;;  %v7242_v0 = vpack.i.bf16 %v7236_v46, %v6701_v47 }
 0x19b   : > { %1772 = vmatprep.subr.bf16.mxu1 %v1345_v23  ;;  %5341 = vmatmul.mubr.msk.bf16.vlgmr.msra.gmra.mrb[8].mxu0 %vm11479_vm4, %v6862_v16  ;;  %v756_v33 = vpack.c.bf16 %v731_v12, %v730_v25 }
 0x19c   : > { %1773 = vmatpush1.bf16.msra.mxu1 %v1344_v44  ;;  %v728_v19 = vsel %vm11478_vm1, %v5937_v18, %v5942_v5  ;;  %v729_v22 = vsel %vm11478_vm1, %v5938_v37, %v5943_v20  ;;  %1735 = vmatprep.mubr.bf16.mxu0 %v11829_v58  ;;  %v5948_v37 = vunpack.i.h.bf16 %v5946_v41  ;;  %v5947_v18 = vunpack.i.l.bf16 %v5946_v41 }
 0x19d   : > { %v757_v30 = vpack.c.bf16 %v729_v22, %v728_v19  ;;  %v5956_v14 = vpop.permute.xlu1 %5955 }
 0x19e   : > { %6085 = vrot.lane.b32.xlu0 %v6074_v54, %s6376_s9  ;;  %v726_v31 = vsel %vm11478_vm1, %v5942_v5, %v5947_v18  ;;  %v727_v25 = vsel %vm11478_vm1, %v5943_v20, %v5948_v37  ;;  %v5958_v19 = vunpack.i.h.bf16 %v5956_v14  ;;  %v5957_v22 = vunpack.i.l.bf16 %v5956_v14 }
 0x19f   : > { %1839 = vmatprep.subr.bf16.mxu0 %v757_v30  ;;  %5345 = vmatmul.mubr.msk.bf16.vlgmr.msra.gmra.mrb[24].mxu1 %vm11479_vm4, %v6862_v16  ;;  %v758_v21 = vpack.c.bf16 %v727_v25, %v726_v31 }
 0x1a0   : > { %1840 = vmatpush1.bf16.msra.mxu0 %v756_v33  ;;  %1808 = vmatprep.mubr.bf16.mxu1 %v11829_v58 }
 0x1a1   : > { %v5966_v47 = vpop.permute.xlu1 %5965 }
 0x1a2   : > { %6095 = vrot.lane.b32.xlu0 %v7242_v0, %s6376_s9 }
 0x1a3   : > { %5342 = vmatmul.mubr.msk.bf16.gmra.mrb[12].mxu0 %vm11479_vm4, %v6919_v48 }
 0x1a4   : > { %1745 = vmatprep.mubr.bf16.mxu0 %v11829_v58 }
 0x1a6   : > { %6105 = vrot.lane.b32.xlu0 %v6074_v54, %s6377_s10  ;;  %v6124_v54 = vpack.i.bf16 %v7236_v46, %v7171_v42 }
 0x1a7   : > { %5346 = vmatmul.mubr.msk.bf16.gmra.mrb[28].mxu1 %vm11479_vm4, %v6919_v48 }
 0x1a8   : > { %1818 = vmatprep.mubr.bf16.mxu1 %v11829_v58 }
 0x1aa   : > { %6115 = vrot.lane.b32.xlu0 %v7242_v0, %s6377_s10 }
 0x1ab   : > { %5343 = vmatmul.mubr.msk.bf16.gmra.mrb[16].mxu0 %vm11479_vm4, %v6857_v52 }
 0x1ac   : > { %v7260_v23 = vpop.permute.xlu1 %5980  ;;  %v7262_v44 = vpop.permute.xlu0 %5950  ;;  %1755 = vmatprep.mubr.bf16.mxu0 %v11829_v58 }
 0x1ad   : > { %v11466_v34 = vunpack.i.h.bf16 %v7262_v44  ;;  %v11465_v12 = vunpack.i.l.bf16 %v7262_v44 }
 0x1ae   : > { %6125 = vrot.lane.b32.xlu0 %v6124_v54, %s6375_s8 }
 0x1af   : > { %v724_v30 = vsel %vm11478_vm1, %v5947_v18, %v11465_v12  ;;  %v725_v41 = vsel %vm11478_vm1, %v5948_v37, %v11466_v34  ;;  %5347 = vmatmul.mubr.msk.bf16.gmra.mrb[32].mxu1 %vm11479_vm4, %v6857_v52  ;;  %v956_v37 = vsel %vm11477_vm2, %v5893_v15, %v5958_v19  ;;  %v955_v18 = vsel %vm11477_vm2, %v5892_v61, %v5957_v22 }
 0x1b0   : > { %v7284_v5 = vpop.permute.xlu1 %5990  ;;  %v5961_v20 = vpop.permute.xlu0 %5960  ;;  %v759_v33 = vpack.c.bf16 %v725_v41, %v724_v30  ;;  %1828 = vmatprep.mubr.bf16.mxu1 %v11829_v58  ;;  %v5968_v30 = vunpack.i.h.bf16 %v5966_v47  ;;  %v5967_v41 = vunpack.i.l.bf16 %v5966_v47  ;;  %v327_v15 = vrot.slane %v7110_v40, %v6470_v2 }
 0x1b1   : > { %v5963_v14 = vunpack.i.h.bf16 %v5961_v20  ;;  %v5962_v54 = vunpack.i.l.bf16 %v5961_v20 }
 0x1b2   : > { %6135 = vrot.lane.b32.xlu0 %v7179_v27, %s6378_s11  ;;  %1912 = vmatprep.subr.bf16.mxu1 %v759_v33  ;;  %v981_v33 = vpack.c.bf16 %v956_v37, %v955_v18  ;;  %v5982_v37 = vunpack.i.l.bf16 %v7260_v23 }
 0x1b3   : > { %1913 = vmatpush1.bf16.msra.mxu1 %v758_v21  ;;  %v953_v25 = vsel %vm11477_vm2, %v5957_v22, %v5962_v54  ;;  %v954_v20 = vsel %vm11477_vm2, %v5958_v19, %v5963_v14  ;;  %5344 = vmatmul.mubr.msk.bf16.gmra.mrb[20].mxu0 %vm11479_vm4, %v6914_v53  ;;  %v952_v21 = vsel %vm11477_vm2, %v5963_v14, %v5968_v30 }
 0x1b4   : > { %v7297_v12 = vpop.permute.xlu1 %6000  ;;  %v7299_v31 = vpop.permute.xlu0 %5970  ;;  %1871 = vmatprep.mubr.bf16.mxu0 %v11829_v58  ;;  %v951_v47 = vsel %vm11477_vm2, %v5962_v54, %v5967_v41  ;;  %v982_v22 = vpack.c.bf16 %v954_v20, %v953_v25  ;;  %v331_v19 = vrot.slane %v7110_v40, %v6473_v3 }
 0x1b5   : > { %v5973_v32 = vunpack.i.h.bf16 %v7299_v31  ;;  %v11468_v61 = vunpack.i.l.bf16 %v7299_v31 }
 0x1b6   : > { %1841 = vmatprep.subr.bf16.mxu0 %v982_v22  ;;  %v5983_v22 = vunpack.i.h.bf16 %v7260_v23 }
 0x1b7   : > { %v949_v34 = vsel %vm11477_vm2, %v5967_v41, %v11468_v61  ;;  %v950_v26 = vsel %vm11477_vm2, %v5968_v30, %v5973_v32  ;;  %5348 = vmatmul.mubr.msk.bf16.gmra.mrb[36].mxu1 %vm11479_vm4, %v6914_v53  ;;  %1842 = vmatpush1.bf16.msra.mxu0 %v981_v33  ;;  %v983_v41 = vpack.c.bf16 %v952_v21, %v951_v47 }
 0x1b8   : > { %v5976_v14 = vpop.permute.xlu0 %5975  ;;  %v984_v54 = vpack.c.bf16 %v950_v26, %v949_v34  ;;  %1944 = vmatprep.mubr.bf16.mxu1 %v11829_v58  ;;  %v7333_v61 = vrot.slane %v327_v15, %v6485_v6  ;;  %v7336_v30 = vrot.slane %v331_v19, %v6485_v6  ;;  %v5993_v19 = vunpack.i.h.bf16 %v7284_v5 }
 0x1b9   : > { %v5978_v18 = vunpack.i.h.bf16 %v5976_v14  ;;  %v5977_v25 = vunpack.i.l.bf16 %v5976_v14  ;;  %v7330_v20 = vpop.permute.xlu1 %6010  ;;  %v5992_v14 = vunpack.i.l.bf16 %v7284_v5 }
 0x1ba   : > { %1914 = vmatprep.subr.bf16.mxu1 %v984_v54  ;;  %v6154_v33 = vpack.i.bf16 %v7336_v30, %v7333_v61 }
 0x1bb   : > { %v1103_v26 = vsel %vm11472_vm0, %v5907_v59, %v5978_v18  ;;  %v7347_v34 = vsel %vm11472_vm0, %v5928_v13, %v5977_v25  ;;  %1915 = vmatpush1.bf16.msra.mxu1 %v983_v41  ;;  %v1102_v15 = vsel %vm11472_vm0, %v5978_v18, %v5982_v37 }
 0x1bc   : > { %v7351_v21 = vpop.permute.xlu0 %5985  ;;  %v6099_v23 = vpack.i.bf16 %v7347_v34, %v6704_v50  ;;  %v1122_v56 = vpack.c.bf16 %v1102_v15, %v6777_v24  ;;  %v1121_v13 = vpack.c.bf16 %v1103_v26, %v6733_v17  ;;  %v1101_v50 = vsel %vm11472_vm0, %v5982_v37, %v5983_v22 }
 0x1bd   : > { %v7355_v47 = vpop.permute.xlu1 %6020  ;;  %v5988_v7 = vunpack.i.h.bf16 %v7351_v21  ;;  %v5987_v59 = vunpack.i.l.bf16 %v7351_v21  ;;  %v11838_v26 = vunpack.i.h.bf16 %v7196_v28 }
 0x1be   : > { %6100 = vrot.lane.b32.xlu1 %v6099_v23, %s6376_s9  ;;  %6145 = vrot.lane.b32.xlu0 %v6099_v23, %s6378_s11 }
 0x1bf   : > { %1843 = vmatprep.subr.bf16.mxu0 %v1122_v56  ;;  %v1100_v17 = vsel %vm11472_vm0, %v5983_v22, %v5987_v59  ;;  %v7378_v18 = vsel %vm11472_vm0, %v5977_v25, %v5988_v7  ;;  %v1319_v15 = vsel %vm11469_vm3, %v11838_v26, %v5993_v19  ;;  %v11839_v22 = vunpack.i.l.bf16 %v7196_v28 }
 0x1c0   : > { %1844 = vmatpush1.bf16.msra.mxu0 %v1121_v13  ;;  %v5996_v24 = vpop.permute.xlu0 %5995  ;;  %v1124_v54 = vpack.c.bf16 %v1100_v17, %v6929_v35  ;;  %v1123_v35 = vpack.c.bf16 %v1101_v50, %v6727_v9  ;;  %v6003_v56 = vunpack.i.h.bf16 %v7297_v12  ;;  %v7402_v9 = vpack.i.bf16 %v7378_v18, %v6980_v36 }
 0x1c1   : > { %v7380_v41 = vpop.permute.xlu1 %6030  ;;  %v5998_v37 = vunpack.i.h.bf16 %v5996_v24  ;;  %v5997_v5 = vunpack.i.l.bf16 %v5996_v24  ;;  %v1318_v25 = vsel %vm11469_vm3, %v11839_v22, %v5992_v14  ;;  %v6013_v50 = vunpack.i.h.bf16 %v7330_v20 }
 0x1c2   : > { %6110 = vrot.lane.b32.xlu1 %v7179_v27, %s6377_s10  ;;  %6155 = vrot.lane.b32.xlu0 %v6154_v33, %s6375_s8  ;;  %v6002_v27 = vunpack.i.l.bf16 %v7297_v12  ;;  %v6012_v24 = vunpack.i.l.bf16 %v7330_v20  ;;  %v1346_v12 = vpack.c.bf16 %v1319_v15, %v1318_v25  ;;  %v11840_v15 = vunpack.i.h.bf16 %v7262_v44 }
 0x1c3   : > { %1916 = vmatprep.subr.bf16.mxu1 %v1124_v54  ;;  %v1316_v13 = vsel %vm11469_vm3, %v5992_v14, %v5997_v5  ;;  %v1317_v17 = vsel %vm11469_vm3, %v5993_v19, %v5998_v37  ;;  %v1315_v19 = vsel %vm11469_vm3, %v5998_v37, %v6003_v56 }
 0x1c4   : > { %1917 = vmatpush1.bf16.msra.mxu1 %v1123_v35  ;;  %v6006_v33 = vpop.permute.xlu0 %6005  ;;  %v1347_v28 = vpack.c.bf16 %v1317_v17, %v1316_v13  ;;  %v1314_v36 = vsel %vm11469_vm3, %v5997_v5, %v6002_v27  ;;  %v723_v37 = vsel %vm11478_vm1, %v11840_v15, %v6013_v50  ;;  %v11841_v5 = vunpack.i.l.bf16 %v7262_v44 }
 0x1c5   : > { %v7406_v54 = vpop.permute.xlu1 %6040  ;;  %v6008_v26 = vunpack.i.h.bf16 %v6006_v33  ;;  %v6007_v14 = vunpack.i.l.bf16 %v6006_v33  ;;  %v6023_v33 = vunpack.i.h.bf16 %v7355_v47 }
 0x1c6   : > { %6120 = vrot.lane.b32.xlu1 %v6099_v23, %s6377_s10  ;;  %6160 = vrot.lane.b32.xlu0 %v7402_v9, %s6376_s9  ;;  %v6129_v23 = vpack.i.bf16 %v7378_v18, %v7347_v34  ;;  %v722_v25 = vsel %vm11478_vm1, %v11841_v5, %v6012_v24 }
 0x1c7   : > { %1845 = vmatprep.subr.bf16.mxu0 %v1347_v28  ;;  %v1312_v20 = vsel %vm11469_vm3, %v6002_v27, %v6007_v14  ;;  %v1313_v35 = vsel %vm11469_vm3, %v6003_v56, %v6008_v26  ;;  %v6022_v28 = vunpack.i.l.bf16 %v7355_v47  ;;  %v760_v15 = vpack.c.bf16 %v723_v37, %v722_v25 }
 0x1c8   : > { %1846 = vmatpush1.bf16.msra.mxu0 %v1346_v12  ;;  %v6016_v22 = vpop.permute.xlu0 %6015  ;;  %v1349_v13 = vpack.c.bf16 %v1313_v35, %v1312_v20  ;;  %v1348_v12 = vpack.c.bf16 %v1315_v19, %v1314_v36  ;;  %v335_v35 = vrot.slane %v7110_v40, %v6476_v4  ;;  %v6033_v19 = vunpack.i.h.bf16 %v7380_v41 }
 0x1c9   : > { %v7429_v17 = vpop.permute.xlu1 %6050  ;;  %v6018_v27 = vunpack.i.h.bf16 %v6016_v22  ;;  %v6017_v56 = vunpack.i.l.bf16 %v6016_v22  ;;  %v6032_v36 = vunpack.i.l.bf16 %v7380_v41 }
 0x1ca   : > { %6170 = vrot.lane.b32.xlu0 %v7402_v9, %s6377_s10  ;;  %6130 = vrot.lane.b32.xlu1 %v6129_v23, %s6375_s8  ;;  %v6053_v41 = vunpack.i.h.bf16 %v7429_v17  ;;  %v6052_v25 = vunpack.i.l.bf16 %v7429_v17 }
 0x1cb   : > { %1918 = vmatprep.subr.bf16.mxu1 %v1349_v13  ;;  %v720_v44 = vsel %vm11478_vm1, %v6012_v24, %v6017_v56  ;;  %v721_v20 = vsel %vm11478_vm1, %v6013_v50, %v6018_v27  ;;  %5349 = vmatmul.mubr.msk.bf16.vlgmr.msra.gmra.mrb[24].mxu0 %vm11479_vm4, %v6862_v16  ;;  %v719_v40 = vsel %vm11478_vm1, %v6018_v27, %v6023_v33 }
 0x1cc   : > { %1919 = vmatpush1.bf16.msra.mxu1 %v1348_v12  ;;  %v7442_v22 = vpop.permute.xlu0 %6025  ;;  %v761_v47 = vpack.c.bf16 %v721_v20, %v720_v44  ;;  %1881 = vmatprep.mubr.bf16.mxu0 %v11829_v58  ;;  %v718_v13 = vsel %vm11478_vm1, %v6017_v56, %v6022_v28 }
 0x1cd   : > { %v7448_v23 = vpop.permute.xlu1 %6060  ;;  %v6028_v24 = vunpack.i.h.bf16 %v7442_v22  ;;  %v6027_v50 = vunpack.i.l.bf16 %v7442_v22 }
 0x1ce   : > { %v6063_v37 = vunpack.i.h.bf16 %v7448_v23  ;;  %v6062_v5 = vunpack.i.l.bf16 %v7448_v23  ;;  %6140 = vrot.lane.b32.xlu1 %v7242_v0, %s6378_s11  ;;  %1985 = vmatprep.subr.bf16.mxu0 %v761_v47  ;;  %v762_v47 = vpack.c.bf16 %v719_v40, %v718_v13  ;;  %v7502_v40 = vrot.slane %v335_v35, %v6485_v6 }
 0x1cf   : > { %1986 = vmatpush1.bf16.msra.mxu0 %v760_v15  ;;  %v716_v27 = vsel %vm11478_vm1, %v6022_v28, %v6027_v50  ;;  %v717_v56 = vsel %vm11478_vm1, %v6023_v33, %v6028_v24  ;;  %5353 = vmatmul.mubr.msk.bf16.vlgmr.msra.gmra.mrb[40].mxu1 %vm11479_vm4, %v6862_v16  ;;  %v6042_v13 = vunpack.i.l.bf16 %v7406_v54 }
 0x1d0   : > { %v7477_v0 = vsel %vm11469_vm3, %v6007_v14, %v6062_v5  ;;  %v7483_v12 = vsel %vm11469_vm3, %v6008_v26, %v6063_v37  ;;  %v6036_v28 = vpop.permute.xlu0 %6035  ;;  %v763_v44 = vpack.c.bf16 %v717_v56, %v716_v27  ;;  %1954 = vmatprep.mubr.bf16.mxu1 %v11829_v58  ;;  %v948_v14 = vsel %vm11477_vm2, %v5973_v32, %v6033_v19 }
 0x1d1   : > { %v7486_v33 = vpop.permute.xlu1 %6070  ;;  %v6038_v20 = vunpack.i.h.bf16 %v6036_v28  ;;  %v6037_v16 = vunpack.i.l.bf16 %v6036_v28  ;;  %v1350_v15 = vpack.c.bf16 %v7483_v12, %v7477_v0  ;;  %v11842_v26 = vunpack.i.l.bf16 %v7299_v31 }
 0x1d2   : > { %v6043_v56 = vunpack.i.h.bf16 %v7406_v54  ;;  %6150 = vrot.lane.b32.xlu1 %v7402_v9, %s6378_s11  ;;  %2058 = vmatprep.subr.bf16.mxu1 %v763_v44  ;;  %v1098_v28 = vsel %vm11472_vm0, %v6052_v25, %v6053_v41  ;;  %v1099_v54 = vsel %vm11472_vm0, %v5987_v59, %v6052_v25 }
 0x1d3   : > { %v947_v27 = vsel %vm11477_vm2, %v11842_v26, %v6032_v36  ;;  %2059 = vmatpush1.bf16.msra.mxu1 %v762_v47  ;;  %v945_v32 = vsel %vm11477_vm2, %v6032_v36, %v6037_v16  ;;  %v946_v31 = vsel %vm11477_vm2, %v6033_v19, %v6038_v20  ;;  %5350 = vmatmul.mubr.msk.bf16.gmra.mrb[28].mxu0 %vm11479_vm4, %v6919_v48 }
 0x1d4   : > { %v7513_v26 = vpop.permute.xlu0 %6045  ;;  %v986_v9 = vpack.c.bf16 %v946_v31, %v945_v32  ;;  %v985_v44 = vpack.c.bf16 %v948_v14, %v947_v27  ;;  %1891 = vmatprep.mubr.bf16.mxu0 %v11829_v58  ;;  %v944_v47 = vsel %vm11477_vm2, %v6038_v20, %v6043_v56  ;;  %v1126_v59 = vpack.c.bf16 %v1098_v28, %v7097_v8 }
 0x1d5   : > { %v7521_v35 = vpop.permute.xlu1 %6080  ;;  %v6048_v19 = vunpack.i.h.bf16 %v7513_v26  ;;  %v6047_v36 = vunpack.i.l.bf16 %v7513_v26  ;;  %v943_v25 = vsel %vm11477_vm2, %v6037_v16, %v6042_v13 }
 0x1d6   : > { %v6083_v32 = vunpack.i.h.bf16 %v7521_v35  ;;  %v6082_v31 = vunpack.i.l.bf16 %v7521_v35  ;;  %544 = vrot.lane.b32.xlu1 %v7502_v40, %s6375_s8  ;;  %1987 = vmatprep.subr.bf16.mxu0 %v986_v9  ;;  %v987_v28 = vpack.c.bf16 %v944_v47, %v943_v25 }
 0x1d7   : > { %1988 = vmatpush1.bf16.msra.mxu0 %v985_v44  ;;  %v941_v14 = vsel %vm11477_vm2, %v6042_v13, %v6047_v36  ;;  %v942_v20 = vsel %vm11477_vm2, %v6043_v56, %v6048_v19  ;;  %5354 = vmatmul.mubr.msk.bf16.gmra.mrb[44].mxu1 %vm11479_vm4, %v6919_v48  ;;  %v1125_v13 = vpack.c.bf16 %v1099_v54, %v6994_v39 }
 0x1d8   : > { %v7549_v8 = vsel %vm11472_vm0, %v6082_v31, %v6083_v32  ;;  %v7555_v16 = vsel %vm11472_vm0, %v5988_v7, %v6082_v31  ;;  %1989 = vmatprep.subr.bf16.mxu0 %v1126_v59  ;;  %v988_v27 = vpack.c.bf16 %v942_v20, %v941_v14  ;;  %1964 = vmatprep.mubr.bf16.mxu1 %v11829_v58 }
 0x1d9   : > { %v6179_v56 = vpack.i.bf16 %v7549_v8, %v7555_v16  ;;  %v6164_v48 = vpack.i.bf16 %v7555_v16, %v6988_v45  ;;  %v7567_v21 = vpack.i.bf16 %v7549_v8, %v7146_v29 }
 0x1da   : > { %2060 = vmatprep.subr.bf16.mxu1 %v988_v27 }
 0x1db   : > { %6180 = vrot.lane.b32.xlu0 %v6179_v56, %s6375_s8  ;;  %6165 = vrot.lane.b32.xlu1 %v6164_v48, %s6376_s9 }
 0x1dc   : > { %1990 = vmatpush1.bf16.msra.mxu0 %v1125_v13  ;;  %2061 = vmatpush1.bf16.msra.mxu1 %v987_v28  ;;  %v6072_v13 = vunpack.i.l.bf16 %v7486_v33 }
 0x1dd   : > { %5351 = vmatmul.mubr.msk.bf16.gmra.mrb[32].mxu0 %vm11479_vm4, %v6857_v52 }
 0x1de   : > { %1901 = vmatprep.mubr.bf16.mxu0 %v11829_v58 }
 0x1df   : > { %6175 = vrot.lane.b32.xlu1 %v6164_v48, %s6377_s10  ;;  %6190 = vrot.lane.b32.xlu0 %v7567_v21, %s6378_s11 }
 0x1e0   : > { %5355 = vmatmul.mubr.msk.bf16.gmra.mrb[48].mxu1 %vm11479_vm4, %v6857_v52 }
 0x1e1   : > { %1974 = vmatprep.mubr.bf16.mxu1 %v11829_v58 }
 0x1e3   : > { %6185 = vrot.lane.b32.xlu1 %v6164_v48, %s6378_s11 }
 0x1e5   : > { %5352 = vmatmul.mubr.msk.bf16.gmra.mrb[36].mxu0 %vm11479_vm4, %v6914_v53 }
 0x1e6   : > { %2017 = vmatprep.mubr.bf16.mxu0 %v11829_v58 }
 0x1e7   : > { %6195 = vrot.lane.b32.xlu1 %v7567_v21, %s6376_s9 }
 0x1e8   : > { %5356 = vmatmul.mubr.msk.bf16.gmra.mrb[52].mxu1 %vm11479_vm4, %v6914_v53 }
 0x1e9   : > { %2090 = vmatprep.mubr.bf16.mxu1 %v11829_v58 }
 0x204   : > { %v7587_v45 = vpop.permute.xlu0 %6055  ;;  %v1601_v29 = vpop.f32.mrb[0].mxu1 }
 0x205   : > { %v6058_v52 = vunpack.i.h.bf16 %v7587_v45  ;;  %v6057_v39 = vunpack.i.l.bf16 %v7587_v45  ;;  %v1581_v7 = vpop.f32.mrb[0].mxu0  ;;  %v1603_v9 = vpop.f32.mrb[1].mxu1 }
 0x206   : > { %v1583_v54 = vpop.f32.mrb[1].mxu0  ;;  %v1605_v47 = vpop.f32.mrb[2].mxu1 }
 0x207   : > { %v1097_v44 = vsel %vm11472_vm0, %v6053_v41, %v6057_v39  ;;  %v1096_v53 = vsel %vm11472_vm0, %v6057_v39, %v6058_v52  ;;  %v1585_v31 = vpop.f32.mrb[2].mxu0  ;;  %v1607_v20 = vpop.f32.mrb[3].mxu1 }
 0x208   : > { %v6066_v59 = vpop.permute.xlu0 %6065  ;;  %v1128_v25 = vpack.c.bf16 %v1096_v53, %v7121_v51  ;;  %v1127_v14 = vpack.c.bf16 %v1097_v44, %v7030_v60  ;;  %v1587_v48 = vpop.f32.mrb[3].mxu0  ;;  %v6073_v60 = vunpack.i.h.bf16 %v7486_v33 }
 0x209   : > { %v6068_v27 = vunpack.i.h.bf16 %v6066_v59  ;;  %v6067_v56 = vunpack.i.l.bf16 %v6066_v59  ;;  %v7601_v17 = vpop.permute.xlu1 %6090  ;;  %v7637_v48 = vld [vmem:[%s11439_s1] sm:$0xff]  }
 0x20a   : > { %2062 = vmatprep.subr.bf16.mxu1 %v1128_v25  ;;  %v6093_v25 = vunpack.i.h.bf16 %v7601_v17  ;;  %v6092_v0 = vunpack.i.l.bf16 %v7601_v17 }
 0x20b   : > { %2063 = vmatpush1.bf16.msra.mxu1 %v1127_v14  ;;  %v1308_v41 = vsel %vm11469_vm3, %v6062_v5, %v6067_v56  ;;  %v1309_v51 = vsel %vm11469_vm3, %v6063_v37, %v6068_v27  ;;  %v1307_v23 = vsel %vm11469_vm3, %v6068_v27, %v6073_v60  ;;  %v1306_v37 = vsel %vm11469_vm3, %v6067_v56, %v6072_v13 }
 0x20c   : > { %v7613_v28 = vpop.permute.xlu0 %6075  ;;  %v1351_v39 = vpack.c.bf16 %v1309_v51, %v1308_v41  ;;  %v1611_v29 = vpop.f32.mrb[4].mxu1  ;;  %v1352_v56 = vpack.c.bf16 %v1307_v23, %v1306_v37  ;;  %v7684_v23 = vld [vmem:[%s11439_s1 + $0x18] sm:$0xff]  }
 0x20d   : > { %v6078_v7 = vunpack.i.h.bf16 %v7613_v28  ;;  %v6077_v9 = vunpack.i.l.bf16 %v7613_v28  ;;  %v1613_v54 = vpop.f32.mrb[5].mxu1  ;;  %v1591_v44 = vpop.f32.mrb[4].mxu0 }
 0x20e   : > { %1991 = vmatprep.subr.bf16.mxu0 %v1351_v39  ;;  %v1615_v5 = vpop.f32.mrb[6].mxu1  ;;  %v1593_v53 = vpop.f32.mrb[5].mxu0  ;;  %v7671_v54 = vld [vmem:[%s11439_s1 + $0x10] sm:$0xff]  }
 0x20f   : > { %1992 = vmatpush1.bf16.msra.mxu0 %v1350_v15  ;;  %v1304_v33 = vsel %vm11469_vm3, %v6072_v13, %v6077_v9  ;;  %v1305_v47 = vsel %vm11469_vm3, %v6073_v60, %v6078_v7  ;;  %v1617_v31 = vpop.f32.mrb[7].mxu1  ;;  %v1595_v59 = vpop.f32.mrb[6].mxu0 }
 0x210   : > { %v6086_v14 = vpop.permute.xlu0 %6085  ;;  %v1353_v20 = vpack.c.bf16 %v1305_v47, %v1304_v33  ;;  %v1597_v27 = vpop.f32.mrb[7].mxu0 }
 0x211   : > { %v6088_v12 = vunpack.i.h.bf16 %v6086_v14  ;;  %v6087_v15 = vunpack.i.l.bf16 %v6086_v14 }
 0x212   : > { %2064 = vmatprep.subr.bf16.mxu1 %v1353_v20  ;;  %5357 = vmatmul.mubr.msk.bf16.vlgmr.msra.gmra.mrb[40].mxu0 %vm11479_vm4, %v7637_v48 }
 0x213   : > { %v714_v41 = vsel %vm11478_vm1, %v6027_v50, %v6087_v15  ;;  %v715_v17 = vsel %vm11478_vm1, %v6028_v24, %v6088_v12  ;;  %2065 = vmatpush1.bf16.msra.mxu1 %v1352_v56  ;;  %v712_v51 = vsel %vm11478_vm1, %v6087_v15, %v6092_v0  ;;  %v713_v60 = vsel %vm11478_vm1, %v6088_v12, %v6093_v25  ;;  %v7660_v24 = vld [vmem:[%s11439_s1 + $0x8] sm:$0xff]  }
 0x214   : > { %v6096_v13 = vpop.permute.xlu0 %6095  ;;  %v765_v39 = vpack.c.bf16 %v713_v60, %v712_v51  ;;  %v764_v29 = vpack.c.bf16 %v715_v17, %v714_v41  ;;  %2027 = vmatprep.mubr.bf16.mxu0 %v11829_v58 }
 0x215   : > { %v6098_v5 = vunpack.i.h.bf16 %v6096_v13  ;;  %v6097_v53 = vunpack.i.l.bf16 %v6096_v13 }
 0x216   : > { %2131 = vmatprep.subr.bf16.mxu0 %v765_v39  ;;  %5361 = vmatmul.mubr.msk.bf16.vlgmr.msra.gmra.mrb[56].mxu1 %vm11479_vm4, %v7637_v48 }
 0x217   : > { %2132 = vmatpush1.bf16.msra.mxu0 %v764_v29  ;;  %2100 = vmatprep.mubr.bf16.mxu1 %v11829_v58  ;;  %v711_v31 = vsel %vm11478_vm1, %v6093_v25, %v6098_v5  ;;  %v710_v59 = vsel %vm11478_vm1, %v6092_v0, %v6097_v53 }
 0x218   : > { %v6106_v22 = vpop.permute.xlu0 %6105  ;;  %v766_v60 = vpack.c.bf16 %v711_v31, %v710_v59 }
 0x219   : > { %v6107_v27 = vunpack.i.l.bf16 %v6106_v22  ;;  %v6108_v12 = vunpack.i.h.bf16 %v6106_v22 }
 0x21a   : > { %5358 = vmatmul.mubr.msk.bf16.gmra.mrb[44].mxu0 %vm11479_vm4, %v7660_v24 }
 0x21b   : > { %2037 = vmatprep.mubr.bf16.mxu0 %v11829_v58 }
 0x21c   : > { %v6116_v50 = vpop.permute.xlu0 %6115 }
 0x21e   : > { %5362 = vmatmul.mubr.msk.bf16.gmra.mrb[60].mxu1 %vm11479_vm4, %v7660_v24 }
 0x21f   : > { %2110 = vmatprep.mubr.bf16.mxu1 %v11829_v58 }
 0x220   : > { %v7676_v44 = vpop.permute.xlu0 %6125 }
 0x221   : > { %v6128_v25 = vunpack.i.h.bf16 %v7676_v44  ;;  %v6127_v0 = vunpack.i.l.bf16 %v7676_v44  ;;  %v940_v44 = vsel %vm11477_vm2, %v6048_v19, %v6108_v12 }
 0x222   : > { %5359 = vmatmul.mubr.msk.bf16.gmra.mrb[48].mxu0 %vm11479_vm4, %v7671_v54 }
 0x223   : > { %2047 = vmatprep.mubr.bf16.mxu0 %v11829_v58 }
 0x224   : > { %v7689_v37 = vpop.permute.xlu0 %6135 }
 0x226   : > { %5363 = vmatmul.mubr.msk.bf16.gmra.mrb[64].mxu1 %vm11479_vm4, %v7671_v54 }
 0x227   : > { %2120 = vmatprep.mubr.bf16.mxu1 %v11829_v58 }
 0x22a   : > { %5360 = vmatmul.mubr.msk.bf16.gmra.mrb[52].mxu0 %vm11479_vm4, %v7684_v23 }
 0x22b   : > { %2163 = vmatprep.mubr.bf16.mxu0 %v11829_v58 }
 0x22e   : > { %5364 = vmatmul.mubr.msk.bf16.gmra.mrb[68].mxu1 %vm11479_vm4, %v7684_v23 }
 0x22f   : > { %2236 = vmatprep.mubr.bf16.mxu1 %v11829_v58 }
 0x230   : > { %v7694_v33 = vpop.permute.xlu1 %6100  ;;  %v7696_v47 = vpop.permute.xlu0 %6145 }
 0x231   : > { %v6103_v14 = vunpack.i.h.bf16 %v7694_v33  ;;  %v6102_v20 = vunpack.i.l.bf16 %v7694_v33 }
 0x233   : > { %v708_v15 = vsel %vm11478_vm1, %v6097_v53, %v6102_v20  ;;  %v709_v56 = vsel %vm11478_vm1, %v6098_v5, %v6103_v14  ;;  %v939_v5 = vsel %vm11477_vm2, %v6047_v36, %v6107_v27  ;;  %v6118_v53 = vunpack.i.h.bf16 %v6116_v50 }
 0x234   : > { %v6111_v41 = vpop.permute.xlu1 %6110  ;;  %v7714_v17 = vpop.permute.xlu0 %6155  ;;  %v767_v51 = vpack.c.bf16 %v709_v56, %v708_v15  ;;  %v6117_v56 = vunpack.i.l.bf16 %v6116_v50 }
 0x235   : > { %v6113_v13 = vunpack.i.h.bf16 %v6111_v41  ;;  %v6112_v39 = vunpack.i.l.bf16 %v6111_v41  ;;  %v6158_v29 = vunpack.i.h.bf16 %v7714_v17  ;;  %v6157_v22 = vunpack.i.l.bf16 %v7714_v17 }
 0x236   : > { %2204 = vmatprep.subr.bf16.mxu1 %v767_v51  ;;  %v1094_v51 = vsel %vm11472_vm0, %v6127_v0, %v6128_v25  ;;  %v11843_v17 = vunpack.i.h.bf16 %v6557_v49 }
 0x237   : > { %v7730_v31 = vsel %vm11472_vm0, %v6157_v22, %v6158_v29  ;;  %v7736_v59 = vsel %vm11472_vm0, %v6083_v32, %v6157_v22  ;;  %2205 = vmatpush1.bf16.msra.mxu1 %v766_v60  ;;  %v937_v15 = vsel %vm11477_vm2, %v6107_v27, %v6112_v39  ;;  %v938_v35 = vsel %vm11477_vm2, %v6108_v12, %v6113_v13 }
 0x238   : > { %v7738_v36 = vpop.permute.xlu1 %6120  ;;  %v7742_v26 = vpack.i.bf16 %v7736_v59, %v7149_v11  ;;  %v7746_v19 = vpack.i.bf16 %v7730_v31, %v7333_v61  ;;  %v990_v11 = vpack.c.bf16 %v938_v35, %v937_v15  ;;  %v989_v61 = vpack.c.bf16 %v940_v44, %v939_v5 }
 0x239   : > { %v6123_v32 = vunpack.i.h.bf16 %v7738_v36  ;;  %v6122_v41 = vunpack.i.l.bf16 %v7738_v36  ;;  %v935_v27 = vsel %vm11477_vm2, %v6112_v39, %v6117_v56  ;;  %v936_v50 = vsel %vm11477_vm2, %v6113_v13, %v6118_v53 }
 0x23a   : > { %6200 = vrot.lane.b32.xlu0 %v7742_v26, %s6376_s9  ;;  %6205 = vrot.lane.b32.xlu1 %v7746_v19, %s6376_s9  ;;  %v1095_v22 = vsel %vm11472_vm0, %v6058_v52, %v6127_v0  ;;  %v1130_v13 = vpack.c.bf16 %v1094_v51, %v7171_v42  ;;  %v6138_v35 = vunpack.i.h.bf16 %v7689_v37  ;;  %v991_v45 = vpack.c.bf16 %v936_v50, %v935_v27 }
 0x23b   : > { %v933_v12 = vsel %vm11477_vm2, %v6117_v56, %v6122_v41  ;;  %v934_v60 = vsel %vm11477_vm2, %v6118_v53, %v6123_v32  ;;  %2133 = vmatprep.subr.bf16.mxu0 %v990_v11  ;;  %v6137_v53 = vunpack.i.l.bf16 %v7689_v37  ;;  %v1129_v42 = vpack.c.bf16 %v1095_v22, %v7175_v10 }
 0x23c   : > { %v7776_v39 = vpop.permute.xlu1 %6130  ;;  %v992_v5 = vpack.c.bf16 %v934_v60, %v933_v12  ;;  %2134 = vmatpush1.bf16.msra.mxu0 %v989_v61  ;;  %v1303_v10 = vsel %vm11469_vm3, %v6078_v7, %v6138_v35  ;;  %v6148_v27 = vunpack.i.h.bf16 %v7696_v47  ;;  %v6234_v7 = vpack.i.bf16 %v7730_v31, %v7736_v59 }
 0x23d   : > { %v6133_v44 = vunpack.i.h.bf16 %v7776_v39  ;;  %v6132_v15 = vunpack.i.l.bf16 %v7776_v39  ;;  %2135 = vmatprep.subr.bf16.mxu0 %v1130_v13 }
 0x23e   : > { %6215 = vrot.lane.b32.xlu1 %v7567_v21, %s6377_s10  ;;  %2206 = vmatprep.subr.bf16.mxu1 %v992_v5 }
 0x23f   : > { %v1093_v52 = vsel %vm11472_vm0, %v6128_v25, %v6132_v15  ;;  %v1092_v0 = vsel %vm11472_vm0, %v6132_v15, %v6133_v44  ;;  %2207 = vmatpush1.bf16.msra.mxu1 %v991_v45  ;;  %v1302_v25 = vsel %vm11469_vm3, %v6077_v9, %v6137_v53  ;;  %v6147_v9 = vunpack.i.l.bf16 %v7696_v47 }
 0x240   : > { %v6141_v56 = vpop.permute.xlu1 %6140  ;;  %v1132_v37 = vpack.c.bf16 %v1092_v0, %v7347_v34  ;;  %v1131_v51 = vpack.c.bf16 %v1093_v52, %v7236_v46  ;;  %2136 = vmatpush1.bf16.msra.mxu0 %v1129_v42  ;;  %v6161_v34 = vpop.permute.xlu0 %6160  ;;  %v1354_v22 = vpack.c.bf16 %v1303_v10, %v1302_v25 }
 0x241   : > { %v6143_v21 = vunpack.i.h.bf16 %v6141_v56  ;;  %v6142_v11 = vunpack.i.l.bf16 %v6141_v56  ;;  %v6163_v0 = vunpack.i.h.bf16 %v6161_v34 }
 0x242   : > { %6225 = vrot.lane.b32.xlu1 %v7746_v19, %s6377_s10  ;;  %2208 = vmatprep.subr.bf16.mxu1 %v1132_v37  ;;  %v6162_v37 = vunpack.i.l.bf16 %v6161_v34 }
 0x243   : > { %v1300_v46 = vsel %vm11469_vm3, %v6137_v53, %v6142_v11  ;;  %v1301_v61 = vsel %vm11469_vm3, %v6138_v35, %v6143_v21  ;;  %2209 = vmatpush1.bf16.msra.mxu1 %v1131_v51  ;;  %v1299_v13 = vsel %vm11469_vm3, %v6143_v21, %v6148_v27  ;;  %v1298_v5 = vsel %vm11469_vm3, %v6142_v11, %v6147_v9 }
 0x244   : > { %v7810_v28 = vpop.permute.xlu1 %6150  ;;  %v1355_v50 = vpack.c.bf16 %v1301_v61, %v1300_v46  ;;  %v6171_v45 = vpop.permute.xlu0 %6170  ;;  %v1356_v42 = vpack.c.bf16 %v1299_v13, %v1298_v5  ;;  %v706_v25 = vsel %vm11478_vm1, %v6102_v20, %v6162_v37 }
 0x245   : > { %v6153_v12 = vunpack.i.h.bf16 %v7810_v28  ;;  %v6152_v60 = vunpack.i.l.bf16 %v7810_v28  ;;  %v6173_v10 = vunpack.i.h.bf16 %v6171_v45  ;;  %v6172_v34 = vunpack.i.l.bf16 %v6171_v45 }
 0x246   : > { %6235 = vrot.lane.b32.xlu1 %v6234_v7, %s6375_s8  ;;  %2137 = vmatprep.subr.bf16.mxu0 %v1355_v50 }
 0x247   : > { %2138 = vmatpush1.bf16.msra.mxu0 %v1354_v22  ;;  %v1296_v47 = vsel %vm11469_vm3, %v6147_v9, %v6152_v60  ;;  %v1297_v15 = vsel %vm11469_vm3, %v6148_v27, %v6153_v12  ;;  %v931_v13 = vsel %vm11477_vm2, %v6122_v41, %v6172_v34 }
 0x248   : > { %v545_v35 = vpop.permute.xlu1 %544  ;;  %v1357_v53 = vpack.c.bf16 %v1297_v15, %v1296_v47 }
 0x249   : > { %v7833_v52 = vsel %vm11472_vm0, %v6158_v29, %v545_v35  ;;  %v7845_v29 = vsel %vm11472_vm0, %v545_v35, %v11843_v17 }
 0x24a   : > { %6245 = vrot.lane.b32.xlu1 %v7742_v26, %s6378_s11  ;;  %2210 = vmatprep.subr.bf16.mxu1 %v1357_v53  ;;  %v6209_v56 = vpack.i.bf16 %v7833_v52, %v7336_v30  ;;  %v707_v30 = vsel %vm11478_vm1, %v6103_v14, %v6163_v0  ;;  %v7868_v46 = vpack.i.bf16 %v7845_v29, %v7502_v40 }
 0x24b   : > { %2211 = vmatpush1.bf16.msra.mxu1 %v1356_v42  ;;  %5365 = vmatmul.mubr.msk.bf16.vlgmr.msra.gmra.mrb[56].mxu0 %vm11479_vm4, %v7637_v48  ;;  %v768_v22 = vpack.c.bf16 %v707_v30, %v706_v25 }
 0x24c   : > { %6210 = vrot.lane.b32.xlu0 %v6209_v56, %s6376_s9  ;;  %2173 = vmatprep.mubr.bf16.mxu0 %v11829_v58 }
 0x24d   : > { %v7849_v51 = vpop.permute.xlu0 %6180  ;;  %v7851_v21 = vpop.permute.xlu1 %6165 }
 0x24e   : > { %v6168_v11 = vunpack.i.h.bf16 %v7851_v21  ;;  %v6167_v49 = vunpack.i.l.bf16 %v7851_v21  ;;  %6255 = vrot.lane.b32.xlu1 %v6209_v56, %s6378_s11  ;;  %5369 = vmatmul.mubr.msk.bf16.vlgmr.msra.gmra.mrb[72].mxu1 %vm11479_vm4, %v7637_v48  ;;  %v11473_v14 = vunpack.i.h.bf16 %v7849_v51  ;;  %v6182_v61 = vunpack.i.l.bf16 %v7849_v51 }
 0x24f   : > { %2246 = vmatprep.mubr.bf16.mxu1 %v11829_v58 }
 0x250   : > { %6220 = vrot.lane.b32.xlu0 %v7742_v26, %s6377_s10  ;;  %v704_v33 = vsel %vm11478_vm1, %v6162_v37, %v6167_v49  ;;  %v705_v20 = vsel %vm11478_vm1, %v6163_v0, %v6168_v11  ;;  %v932_v26 = vsel %vm11477_vm2, %v6123_v32, %v6173_v10  ;;  %v1090_v32 = vsel %vm11472_vm0, %v6182_v61, %v11473_v14 }
 0x251   : > { %v7879_v27 = vpop.permute.xlu1 %6175  ;;  %v769_v9 = vpack.c.bf16 %v705_v20, %v704_v33  ;;  %v7881_v40 = vpop.permute.xlu0 %6190  ;;  %v993_v42 = vpack.c.bf16 %v932_v26, %v931_v13  ;;  %v6239_v0 = vpack.i.bf16 %v7845_v29, %v7833_v52  ;;  %v1134_v37 = vpack.c.bf16 %v1090_v32, %v7555_v16 }
 0x252   : > { %v11474_v7 = vunpack.i.h.bf16 %v7879_v27  ;;  %v11475_v50 = vunpack.i.l.bf16 %v7879_v27  ;;  %6265 = vrot.lane.b32.xlu1 %v7868_v46, %s6376_s9  ;;  %v11470_v5 = vunpack.i.l.bf16 %v7881_v40  ;;  %v11471_v41 = vunpack.i.h.bf16 %v7881_v40 }
 0x253   : > { %2277 = vmatprep.subr.bf16.mxu0 %v769_v9  ;;  %5366 = vmatmul.mubr.msk.bf16.gmra.mrb[60].mxu0 %vm11479_vm4, %v7660_v24  ;;  %v11885_v14 = vmov 0 }
 0x254   : > { %2278 = vmatpush1.bf16.msra.mxu0 %v768_v22  ;;  %6230 = vrot.lane.b32.xlu0 %v6209_v56, %s6377_s10  ;;  %v929_v47 = vsel %vm11477_vm2, %v6172_v34, %v11475_v50  ;;  %v930_v36 = vsel %vm11477_vm2, %v6173_v10, %v11474_v7  ;;  %v1091_v56 = vsel %vm11472_vm0, %v6133_v44, %v6182_v61  ;;  %v11893_v50 = vmov 0 }
 0x255   : > { %v6186_v15 = vpop.permute.xlu1 %6185  ;;  %v994_v35 = vpack.c.bf16 %v930_v36, %v929_v47  ;;  %2183 = vmatprep.mubr.bf16.mxu0 %v11829_v58  ;;  %v1133_v30 = vpack.c.bf16 %v1091_v56, %v7378_v18  ;;  %v12204_v47 = vld [vmem:[#allocation11_spill] sm:$0xff] }
 0x256   : > { %v6188_v53 = vunpack.i.h.bf16 %v6186_v15  ;;  %v6187_v45 = vunpack.i.l.bf16 %v6186_v15  ;;  %1083 = vrot.lane.b32.xlu1 %v6570_v55, %s6375_s8  ;;  %5370 = vmatmul.mubr.msk.bf16.gmra.mrb[76].mxu1 %vm11479_vm4, %v7660_v24 }
 0x257   : > { %2279 = vmatprep.subr.bf16.mxu0 %v994_v35  ;;  %2256 = vmatprep.mubr.bf16.mxu1 %v11829_v58 }
 0x258   : > { %2280 = vmatpush1.bf16.msra.mxu0 %v993_v42  ;;  %6240 = vrot.lane.b32.xlu0 %v6239_v0, %s6375_s8  ;;  %v1292_v17 = vsel %vm11469_vm3, %v6187_v45, %v11470_v5  ;;  %v1293_v39 = vsel %vm11469_vm3, %v6188_v53, %v11471_v41  ;;  %v1295_v25 = vsel %vm11469_vm3, %v6153_v12, %v6188_v53 }
 0x259   : > { %v7930_v21 = vpop.permute.xlu1 %6195  ;;  %2281 = vmatprep.subr.bf16.mxu0 %v1134_v37  ;;  %v1294_v10 = vsel %vm11469_vm3, %v6152_v60, %v6187_v45  ;;  %v1359_v34 = vpack.c.bf16 %v1293_v39, %v1292_v17  ;;  %v11856_v17 = vmov 0  ;;  %v12205_v37 = vunpack.i.l.bf16 %v12204_v47 }
 0x25a   : > { %v11476_v16 = vunpack.i.h.bf16 %v7930_v21  ;;  %v11480_v44 = vunpack.i.l.bf16 %v7930_v21  ;;  %v1358_v12 = vpack.c.bf16 %v1295_v25, %v1294_v10 }
 0x25b   : > { %5367 = vmatmul.mubr.msk.bf16.gmra.mrb[64].mxu0 %vm11479_vm4, %v7671_v54 }
 0x25c   : > { %v7953_v61 = vsel %vm11478_vm1, %v6167_v49, %v11480_v44  ;;  %v7959_v18 = vsel %vm11478_vm1, %v6168_v11, %v11476_v16  ;;  %2282 = vmatpush1.bf16.msra.mxu0 %v1133_v30  ;;  %6250 = vrot.lane.b32.xlu0 %v7746_v19, %s6378_s11  ;;  %v7981_v19 = vpop.f32.mrb[8].mxu1  ;;  %v6380_v11 = vmov 3e+38  }
 0x25d   : > { %2283 = vmatprep.subr.bf16.mxu0 %v1359_v34  ;;  %2193 = vmatprep.mubr.bf16.mxu0 %v11829_v58  ;;  %v2869_v60 = vand.u32 2147483647, %v7981_v19  ;;  %v7985_v49 = vrot.slane %v6380_v11, %v6485_v6  ;;  %v7987_v33 = vpop.f32.mrb[9].mxu1 }
 0x25e   : > { %5371 = vmatmul.mubr.msk.bf16.gmra.mrb[80].mxu1 %vm11479_vm4, %v7671_v54  ;;  %v2870_v22 = vand.u32 2147483647, %v7987_v33 }
 0x25f   : > { %2266 = vmatprep.mubr.bf16.mxu1 %v11829_v58  ;;  %vm7994_vm5 = vcmp.gt.f32.partialorder %v2869_v60, %v7985_v49  ;;  %v11864_v60 = vmov 0 }
 0x260   : > { %2284 = vmatpush1.bf16.msra.mxu0 %v1358_v12  ;;  %6260 = vrot.lane.b32.xlu0 %v7868_v46, %s6378_s11  ;;  %vm8017_vm8 = vcmp.gt.f32.partialorder %v2870_v22, %v7985_v49  ;;  %v11861_v12 = vmov 0 }
 0x263   : > { %5368 = vmatmul.mubr.msk.bf16.gmra.mrb[68].mxu0 %vm11479_vm4, %v7684_v23 }
 0x264   : > { %6270 = vrot.lane.b32.xlu0 %v7868_v46, %s6377_s10  ;;  %2309 = vmatprep.mubr.bf16.mxu0 %v11829_v58  ;;  %v7989_v46 = vpop.f32.mrb[10].mxu1 }
 0x266   : > { %5372 = vmatmul.mubr.msk.bf16.gmra.mrb[84].mxu1 %vm11479_vm4, %v7684_v23 }
 0x267   : > { %2382 = vmatprep.mubr.bf16.mxu1 %v11829_v58 }
 0x268   : > { %6275 = vrot.lane.b32.xlu0 %v6577_v57, %s6378_s11  ;;  %v2897_v57 = vand.u32 2147483647, %v7989_v46 }
 0x26a   : > { %vm8004_vm6 = vcmp.gt.f32.partialorder %v2897_v57, %v7985_v49 }
 0x26b   : > { %5373 = vmatmul.mubr.msk.bf16.vlgmr.msra.gmra.mrb[72].mxu0 %vm11479_vm4, %v7637_v48  ;;  %v8012_v48 = vpop.f32.mrb[11].mxu1 }
 0x26c   : > { %2319 = vmatprep.mubr.bf16.mxu0 %v11829_v58  ;;  %v2898_v36 = vand.u32 2147483647, %v8012_v48  ;;  %v8027_v53 = vpop.f32.mrb[12].mxu1 }
 0x26d   : > { %11852 = vst [vmem:[#allocation14_spill] sm:$0xff] %v8027_v53  ;;  %v3205_v0 = vand.u32 2147483647, %v8027_v53  ;;  %v8033_v56 = vpop.f32.mrb[13].mxu1 }
 0x26e   : > { %v8014_v13 = vpop.f32.mrb[8].mxu0  ;;  %vm8038_vm9 = vcmp.gt.f32.partialorder %v2898_v36, %v7985_v49  ;;  %v8052_v10 = vpop.f32.mrb[14].mxu1  ;;  %v3206_v11 = vand.u32 2147483647, %v8033_v56  ;;  %v11867_v36 = vmov 0 }
 0x26f   : > { %11848 = vst [vmem:[#allocation12_spill] sm:$0xff] %v8014_v13  ;;  %v2871_v15 = vand.u32 2147483647, %v8014_v13  ;;  %v8025_v35 = vpop.f32.mrb[9].mxu0  ;;  %11860 = vst [vmem:[#allocation18_spill] sm:$0xff] %v8052_v10  ;;  %vm8059_vm11 = vcmp.gt.f32.partialorder %v3205_v0, %v7985_v49  ;;  %v11873_v0 = vmov 0 }
 0x270   : > { %11851 = vst [vmem:[#allocation13_spill] sm:$0xff] %v8025_v35  ;;  %v2872_v45 = vand.u32 2147483647, %v8025_v35  ;;  %v8030_v42 = vpop.f32.mrb[10].mxu0  ;;  %v11862_v12 = vsel %vm8059_vm11, 4294967295, %v11861_v12  ;;  %vm8104_vm15 = vcmp.gt.f32.partialorder %v3206_v11, %v7985_v49 }
 0x271   : > { %11853 = vst [vmem:[#allocation15_spill] sm:$0xff] %v8030_v42  ;;  %vm8043_vm10 = vcmp.gt.f32.partialorder %v2871_v15, %v7985_v49  ;;  %v2899_v39 = vand.u32 2147483647, %v8030_v42  ;;  %v8050_v25 = vpop.f32.mrb[11].mxu0  ;;  %11863 = vst [vmem:[#allocation19_spill] sm:$0xff] %v11862_v12  ;;  %v11870_v15 = vmov 0 }
 0x272   : > { %v11857_v17 = vsel %vm8043_vm10, 4294967295, %v11856_v17  ;;  %11859 = vst [vmem:[#allocation17_spill] sm:$0xff] %v8050_v25  ;;  %v3233_v57 = vand.u32 2147483647, %v8052_v10  ;;  %vm8077_vm14 = vcmp.gt.f32.partialorder %v2872_v45, %v7985_v49  ;;  %v8099_v45 = vpop.f32.mrb[15].mxu1  ;;  %v11926_v42 = vmov 0 }
 0x273   : > { %5374 = vmatmul.mubr.msk.bf16.gmra.mrb[76].mxu0 %vm11479_vm4, %v7660_v24  ;;  %11858 = vst [vmem:[#allocation16_spill] sm:$0xff] %v11857_v17  ;;  %v2900_v24 = vand.u32 2147483647, %v8050_v25  ;;  %vm8068_vm13 = vcmp.gt.f32.partialorder %v2899_v39, %v7985_v49  ;;  %v11868_v36 = vsel %vm8077_vm14, 4294967295, %v11867_v36  ;;  %v3234_v30 = vand.u32 2147483647, %v8099_v45 }
 0x274   : > { %2329 = vmatprep.mubr.bf16.mxu0 %v11829_v58  ;;  %v11865_v60 = vsel %vm8068_vm13, 4294967295, %v11864_v60  ;;  %11869 = vst [vmem:[#allocation21_spill] sm:$0xff] %v11868_v36  ;;  %vm8091_vm12 = vcmp.gt.f32.partialorder %v3233_v57, %v7985_v49  ;;  %v8118_v9 = vpop.f32.mrb[16].mxu1 }
 0x275   : > { %11866 = vst [vmem:[#allocation20_spill] sm:$0xff] %v11865_v60  ;;  %vm8086_vm7 = vcmp.gt.f32.partialorder %v2900_v24, %v7985_v49  ;;  %v11874_v0 = vsel %vm8091_vm12, 4294967295, %v11873_v0  ;;  %11880 = vst [vmem:[#allocation26_spill] sm:$0xff] %v8118_v9  ;;  %v3429_v5 = vand.u32 2147483647, %v8118_v9  ;;  %v8124_v41 = vpop.f32.mrb[17].mxu1  ;;  %vm8129_vm0 = vcmp.gt.f32.partialorder %v3234_v30, %v7985_v49 }
 0x276   : > { %v11871_v15 = vsel %vm8086_vm7, 4294967295, %v11870_v15  ;;  %11875 = vst [vmem:[#allocation23_spill] sm:$0xff] %v11874_v0  ;;  %v8101_v39 = vpop.f32.mrb[12].mxu0  ;;  %11882 = vst [vmem:[#allocation28_spill] sm:$0xff] %v8124_v41  ;;  %v8143_v16 = vpop.f32.mrb[18].mxu1  ;;  %v11896_v30 = vmov 0 }
 0x277   : > { %11872 = vst [vmem:[#allocation22_spill] sm:$0xff] %v11871_v15  ;;  %11876 = vst [vmem:[#allocation24_spill] sm:$0xff] %v8101_v39  ;;  %v3207_v34 = vand.u32 2147483647, %v8101_v39  ;;  %v8116_v22 = vpop.f32.mrb[13].mxu0  ;;  %vm8150_vm2 = vcmp.gt.f32.partialorder %v3429_v5, %v7985_v49  ;;  %v12219_v24 = vld [vmem:[#allocation14_spill] sm:$0xff] }
 0x278   : > { %11879 = vst [vmem:[#allocation25_spill] sm:$0xff] %v8116_v22  ;;  %v3208_v11 = vand.u32 2147483647, %v8116_v22  ;;  %v8121_v32 = vpop.f32.mrb[14].mxu0  ;;  %11889 = vst [vmem:[#allocation31_spill] sm:$0xff] %v8143_v16 }
 0x279   : > { %11881 = vst [vmem:[#allocation27_spill] sm:$0xff] %v8121_v32  ;;  %vm8134_vm3 = vcmp.gt.f32.partialorder %v3207_v34, %v7985_v49  ;;  %v3235_v7 = vand.u32 2147483647, %v8121_v32  ;;  %v8141_v28 = vpop.f32.mrb[15].mxu0  ;;  %v11890_v34 = vmov 0  ;;  %v11902_v32 = vmov 0 }
 0x27a   : > { %v11886_v14 = vsel %vm8134_vm3, 4294967295, %v11885_v14  ;;  %11888 = vst [vmem:[#allocation30_spill] sm:$0xff] %v8141_v28  ;;  %v11891_v34 = vsel %vm8150_vm2, 4294967295, %v11890_v34  ;;  %v3430_v44 = vand.u32 2147483647, %v8124_v41  ;;  %vm8168_vm10 = vcmp.gt.f32.partialorder %v3208_v11, %v7985_v49  ;;  %v8190_v11 = vpop.f32.mrb[19].mxu1 }
 0x27b   : > { %5375 = vmatmul.mubr.msk.bf16.gmra.mrb[80].mxu0 %vm11479_vm4, %v7671_v54  ;;  %11887 = vst [vmem:[#allocation29_spill] sm:$0xff] %v11886_v14  ;;  %v3236_v54 = vand.u32 2147483647, %v8141_v28  ;;  %11892 = vst [vmem:[#allocation32_spill] sm:$0xff] %v11891_v34  ;;  %vm8159_vm4 = vcmp.gt.f32.partialorder %v3235_v7, %v7985_v49  ;;  %v3457_v39 = vand.u32 2147483647, %v8143_v16 }
 0x27c   : > { %2339 = vmatprep.mubr.bf16.mxu0 %v11829_v58  ;;  %v11894_v50 = vsel %vm8159_vm4, 4294967295, %v11893_v50  ;;  %v11897_v30 = vsel %vm8168_vm10, 4294967295, %v11896_v30  ;;  %v11899_v7 = vmov 0  ;;  %11905 = vst [vmem:[#allocation37_spill] sm:$0xff] %v8190_v11  ;;  %vm8195_vm1 = vcmp.gt.f32.partialorder %v3430_v44, %v7985_v49  ;;  %v8209_v28 = vpop.f32.mrb[20].mxu1 }
 0x27d   : > { %11895 = vst [vmem:[#allocation33_spill] sm:$0xff] %v11894_v50  ;;  %11898 = vst [vmem:[#allocation34_spill] sm:$0xff] %v11897_v30  ;;  %vm8177_vm13 = vcmp.gt.f32.partialorder %v3236_v54, %v7985_v49  ;;  %vm8182_vm14 = vcmp.gt.f32.partialorder %v3457_v39, %v7985_v49  ;;  %v11907_v54 = vmov 0  ;;  %v3458_v14 = vand.u32 2147483647, %v8190_v11  ;;  %v8215_v13 = vpop.f32.mrb[21].mxu1 }
 0x27e   : > { %v11900_v7 = vsel %vm8177_vm13, 4294967295, %v11899_v7  ;;  %v11903_v32 = vsel %vm8182_vm14, 4294967295, %v11902_v32  ;;  %v8192_v5 = vpop.f32.mrb[16].mxu0  ;;  %v11908_v54 = vsel %vm8195_vm1, 4294967295, %v11907_v54  ;;  %11911 = vst [vmem:[#allocation41_spill] sm:$0xff] %v8209_v28  ;;  %11913 = vst [vmem:[#allocation43_spill] sm:$0xff] %v8215_v13 }
 0x27f   : > { %11901 = vst [vmem:[#allocation35_spill] sm:$0xff] %v11900_v7  ;;  %11904 = vst [vmem:[#allocation36_spill] sm:$0xff] %v11903_v32  ;;  %v3431_v50 = vand.u32 2147483647, %v8192_v5  ;;  %v8207_v22 = vpop.f32.mrb[17].mxu0  ;;  %vm11914_vm3 = vcmask 523264   ;;  %vm8220_vm4 = vcmp.gt.f32.partialorder %v3458_v14, %v7985_v49 }
 0x280   : > { %11906 = vst [vmem:[#allocation38_spill] sm:$0xff] %v8192_v5  ;;  %11909 = vst [vmem:[#allocation39_spill] sm:$0xff] %v11908_v54  ;;  %v3432_v44 = vand.u32 2147483647, %v8207_v22  ;;  %v8212_v17 = vpop.f32.mrb[18].mxu0  ;;  %v11915_v39 = vmov 0 }
 0x281   : > { %11910 = vst [vmem:[#allocation40_spill] sm:$0xff] %v8207_v22  ;;  %11912 = vst [vmem:[#allocation42_spill] sm:$0xff] %v8212_v17  ;;  %v3653_v60 = vand.u32 2147483647, %v8209_v28  ;;  %v11916_v39 = vsel %vm8220_vm4, 4294967295, %v11915_v39  ;;  %vm8225_vm7 = vcmp.gt.f32.partialorder %v3431_v50, %v7985_v49  ;;  %v11918_v30 = vmov 0 }
 0x282   : > { %11917 = vst [vmem:[#allocation44_spill] sm:$0xff] %v11916_v39  ;;  %v11919_v30 = vsel %vm8225_vm7, 4294967295, %v11918_v30  ;;  %v3459_v7 = vand.u32 2147483647, %v8212_v17  ;;  %v8232_v36 = vpop.f32.mrb[19].mxu0  ;;  %v8234_v15 = vpop.f32.mrb[22].mxu1  ;;  %vm8259_vm2 = vcmp.gt.f32.partialorder %v3432_v44, %v7985_v49 }
 0x283   : > { %5376 = vmatmul.mubr.msk.bf16.gmra.mrb[84].mxu0 %vm11914_vm3, %v7684_v23  ;;  %11920 = vst [vmem:[#allocation45_spill] sm:$0xff] %v11919_v30  ;;  %11921 = vst [vmem:[#allocation46_spill] sm:$0xff] %v8232_v36  ;;  %v3460_v23 = vand.u32 2147483647, %v8232_v36  ;;  %vm8241_vm3 = vcmp.gt.f32.partialorder %v3653_v60, %v7985_v49  ;;  %v11923_v50 = vmov 0  ;;  %v11929_v14 = vmov 0 }
 0x284   : > { %11922 = vst [vmem:[#allocation47_spill] sm:$0xff] %v8234_v15  ;;  %2455 = vmatprep.mubr.bf16.mxu0 %v11829_v58  ;;  %v11924_v50 = vsel %vm8241_vm3, 4294967295, %v11923_v50  ;;  %vm8250_vm13 = vcmp.gt.f32.partialorder %v3459_v7, %v7985_v49  ;;  %v3654_v5 = vand.u32 2147483647, %v8215_v13  ;;  %v3681_v17 = vand.u32 2147483647, %v8234_v15 }
 0x285   : > { %11925 = vst [vmem:[#allocation48_spill] sm:$0xff] %v11924_v50  ;;  %v11927_v42 = vsel %vm8250_vm13, 4294967295, %v11926_v42  ;;  %v11930_v14 = vsel %vm8259_vm2, 4294967295, %v11929_v14  ;;  %vm8268_vm14 = vcmp.gt.f32.partialorder %v3460_v23, %v7985_v49  ;;  %v11932_v7 = vmov 0  ;;  %v8281_v44 = vpop.f32.mrb[23].mxu1 }
 0x286   : > { %11928 = vst [vmem:[#allocation49_spill] sm:$0xff] %v11927_v42  ;;  %11931 = vst [vmem:[#allocation50_spill] sm:$0xff] %v11930_v14  ;;  %v11933_v7 = vsel %vm8268_vm14, 4294967295, %v11932_v7  ;;  %vm8273_vm1 = vcmp.gt.f32.partialorder %v3681_v17, %v7985_v49  ;;  %v11935_v22 = vmov 0  ;;  %v8283_v60 = vpop.f32.mrb[20].mxu0  ;;  %vm8286_vm10 = vcmp.gt.f32.partialorder %v3654_v5, %v7985_v49 }
 0x287   : > { %11934 = vst [vmem:[#allocation51_spill] sm:$0xff] %v11933_v7  ;;  %v11936_v22 = vsel %vm8273_vm1, 4294967295, %v11935_v22  ;;  %11938 = vst [vmem:[#allocation53_spill] sm:$0xff] %v8281_v44  ;;  %v11940_v23 = vmov 0  ;;  %v3682_v30 = vand.u32 2147483647, %v8281_v44 }
 0x288   : > { %11937 = vst [vmem:[#allocation52_spill] sm:$0xff] %v11936_v22  ;;  %11939 = vst [vmem:[#allocation54_spill] sm:$0xff] %v8283_v60  ;;  %v11941_v23 = vsel %vm8286_vm10, 4294967295, %v11940_v23  ;;  %v3655_v42 = vand.u32 2147483647, %v8283_v60  ;;  %v8298_v36 = vpop.f32.mrb[21].mxu0 }
 0x289   : > { %11942 = vst [vmem:[#allocation55_spill] sm:$0xff] %v11941_v23  ;;  %11943 = vst [vmem:[#allocation56_spill] sm:$0xff] %v8298_v36  ;;  %v3656_v50 = vand.u32 2147483647, %v8298_v36  ;;  %v8301_v5 = vpop.f32.mrb[22].mxu0  ;;  %vm8304_vm7 = vcmp.gt.f32.partialorder %v3682_v30, %v7985_v49  ;;  %v11945_v22 = vmov 0 }
 0x28a   : > { %11944 = vst [vmem:[#allocation57_spill] sm:$0xff] %v8301_v5  ;;  %v11946_v22 = vsel %vm8304_vm7, 4294967295, %v11945_v22  ;;  %vm8309_vm13 = vcmp.gt.f32.partialorder %v3655_v42, %v7985_v49  ;;  %v11948_v17 = vmov 0  ;;  %v3683_v14 = vand.u32 2147483647, %v8301_v5  ;;  %v8316_v28 = vpop.f32.mrb[23].mxu0 }
 0x28b   : > { %11947 = vst [vmem:[#allocation58_spill] sm:$0xff] %v11946_v22  ;;  %v11949_v17 = vsel %vm8309_vm13, 4294967295, %v11948_v17  ;;  %11951 = vst [vmem:[#allocation60_spill] sm:$0xff] %v8316_v28  ;;  %v3684_v15 = vand.u32 2147483647, %v8316_v28  ;;  %vm8326_vm2 = vcmp.gt.f32.partialorder %v3656_v50, %v7985_v49  ;;  %v11952_v42 = vmov 0 }
 0x28c   : > { %11950 = vst [vmem:[#allocation59_spill] sm:$0xff] %v11949_v17  ;;  %v11953_v42 = vsel %vm8326_vm2, 4294967295, %v11952_v42  ;;  %vm8331_vm14 = vcmp.gt.f32.partialorder %v3683_v14, %v7985_v49  ;;  %v11955_v7 = vmov 0  ;;  %v11958_v30 = vmov 0  ;;  %v8348_v50 = vpop.f32.mrb[24].mxu1  ;;  %v2691_v14 = vld [vmem:[%s11441_s3] sm:$0xff] }
 0x28d   : > { %11954 = vst [vmem:[#allocation61_spill] sm:$0xff] %v11953_v42  ;;  %v11956_v7 = vsel %vm8331_vm14, 4294967295, %v11955_v7  ;;  %vm8340_vm1 = vcmp.gt.f32.partialorder %v3684_v15, %v7985_v49  ;;  %11961 = vst [vmem:[#allocation64_spill] sm:$0xff] %v8348_v50  ;;  %v2726_v17 = vrot.slane %v2691_v14, %v6476_v4  ;;  %v11534_v49 = vsub.s32 7, %v6467_v1  ;;  %v8372_v28 = vld [vmem:[%s11441_s3 + $0x8] sm:$0xff] }
 0x28e   : > { %11957 = vst [vmem:[#allocation62_spill] sm:$0xff] %v11956_v7  ;;  %v11959_v30 = vsel %vm8340_vm1, 4294967295, %v11958_v30  ;;  %v8354_v7 = vpop.f32.mrb[25].mxu1  ;;  %v2873_v60 = vand.u32 2147483647, %v8348_v50  ;;  %11964 = vst [vmem:[#allocation67_spill] sm:$0xff] %v8372_v28  ;;  %v2734_v23 = vrot.slane %v8372_v28, %v6485_v6 }
 0x28f   : > { %11960 = vst [vmem:[#allocation63_spill] sm:$0xff] %v11959_v30  ;;  %11962 = vst [vmem:[#allocation65_spill] sm:$0xff] %v8354_v7  ;;  %v2730_v15 = vrot.slane %v2691_v14, %v11534_v49  ;;  %v8361_v5 = vrot.slane %v2726_v17, %v6485_v6  ;;  %v2874_v42 = vand.u32 2147483647, %v8354_v7  ;;  %v8367_v36 = vpop.f32.mrb[26].mxu1  ;;  %v11965_v14 = vmov 0 }
 0x290   : > { %11963 = vst [vmem:[#allocation66_spill] sm:$0xff] %v8367_v36  ;;  %v2901_v17 = vand.u32 2147483647, %v8367_v36  ;;  %v8383_v49 = vpop.f32.mrb[27].mxu1  ;;  %v11969_v22 = vmov 0  ;;  %v12038_v54 = vmov 0 }
 0x291   : > { %v8365_v30 = vrot.slane %v2730_v15, %v6485_v6  ;;  %vm8376_vm3 = vcmp.gt.f32.partialorder %v2873_v60, %v8361_v5  ;;  %11968 = vst [vmem:[#allocation69_spill] sm:$0xff] %v8383_v49  ;;  %v2902_v13 = vand.u32 2147483647, %v8383_v49  ;;  %v8395_v44 = vpop.f32.mrb[28].mxu1  ;;  %v11973_v15 = vmov 0 }
 0x292   : > { %v11966_v14 = vsel %vm8376_vm3, 4294967295, %v11965_v14  ;;  %11972 = vst [vmem:[#allocation71_spill] sm:$0xff] %v8395_v44  ;;  %vm8398_vm13 = vcmp.gt.f32.partialorder %v2901_v17, %v8361_v5  ;;  %v3209_v36 = vand.u32 2147483647, %v8395_v44  ;;  %v8406_v35 = vpop.f32.mrb[29].mxu1  ;;  %v11978_v60 = vmov 0 }
 0x293   : > { %11967 = vst [vmem:[#allocation68_spill] sm:$0xff] %v11966_v14  ;;  %vm8386_vm4 = vcmp.gt.f32.partialorder %v2874_v42, %v8365_v30  ;;  %v11974_v15 = vsel %vm8398_vm13, 4294967295, %v11973_v15  ;;  %v11976_v42 = vsub.s32 1, %v6467_v1  ;;  %11977 = vst [vmem:[#allocation73_spill] sm:$0xff] %v8406_v35  ;;  %vm8413_vm2 = vcmp.gt.f32.partialorder %v2902_v13, %v8365_v30  ;;  %v8418_v7 = vpop.f32.mrb[30].mxu1 }
 0x294   : > { %v11970_v22 = vsel %vm8386_vm4, 4294967295, %v11969_v22  ;;  %11975 = vst [vmem:[#allocation72_spill] sm:$0xff] %v11974_v15  ;;  %v11979_v60 = vsel %vm8413_vm2, 4294967295, %v11978_v60  ;;  %v3210_v17 = vand.u32 2147483647, %v8406_v35  ;;  %11981 = vst [vmem:[#allocation75_spill] sm:$0xff] %v8418_v7  ;;  %vm8421_vm1 = vcmp.gt.f32.partialorder %v3209_v36, %v8361_v5 }
 0x295   : > { %11971 = vst [vmem:[#allocation70_spill] sm:$0xff] %v11970_v22  ;;  %v2738_v50 = vrot.slane %v8372_v28, %v11976_v42  ;;  %11980 = vst [vmem:[#allocation74_spill] sm:$0xff] %v11979_v60  ;;  %v11982_v42 = vmov 0  ;;  %v3237_v14 = vand.u32 2147483647, %v8418_v7  ;;  %v8432_v15 = vpop.f32.mrb[31].mxu1  ;;  %v8435_v49 = vrot.slane %v2734_v23, %v6485_v6 }
 0x296   : > { %v11983_v42 = vsel %vm8421_vm1, 4294967295, %v11982_v42  ;;  %11985 = vst [vmem:[#allocation77_spill] sm:$0xff] %v8432_v15  ;;  %vm8438_vm14 = vcmp.gt.f32.partialorder %v3210_v17, %v8365_v30  ;;  %v11986_v36 = vmov 0  ;;  %v3238_v22 = vand.u32 2147483647, %v8432_v15 }
 0x297   : > { %11984 = vst [vmem:[#allocation76_spill] sm:$0xff] %v11983_v42  ;;  %v11987_v36 = vsel %vm8438_vm14, 4294967295, %v11986_v36  ;;  %v8448_v34 = vrot.slane %v2738_v50, %v6485_v6  ;;  %vm8451_vm10 = vcmp.gt.f32.partialorder %v3237_v14, %v8361_v5  ;;  %v11990_v13 = vmov 0  ;;  %v8467_v50 = vpop.f32.mrb[32].mxu1 }
 0x298   : > { %11988 = vst [vmem:[#allocation78_spill] sm:$0xff] %v11987_v36  ;;  %v11991_v13 = vsel %vm8451_vm10, 4294967295, %v11990_v13  ;;  %vm8463_vm13 = vcmp.gt.f32.partialorder %v3238_v22, %v8365_v30  ;;  %v11994_v60 = vmov 0  ;;  %11997 = vst [vmem:[#allocation83_spill] sm:$0xff] %v8467_v50  ;;  %v3433_v7 = vand.u32 2147483647, %v8467_v50 }
 0x299   : > { %11992 = vst [vmem:[#allocation80_spill] sm:$0xff] %v11991_v13  ;;  %v11995_v60 = vsel %vm8463_vm13, 4294967295, %v11994_v60  ;;  %v8477_v42 = vpop.f32.mrb[33].mxu1  ;;  %v12000_v22 = vmov 0  ;;  %v12009_v35 = vmov 0  ;;  %v12101_v11 = vmov 0 }
 0x29a   : > { %11996 = vst [vmem:[#allocation82_spill] sm:$0xff] %v11995_v60  ;;  %11999 = vst [vmem:[#allocation85_spill] sm:$0xff] %v8477_v42  ;;  %v3434_v32 = vand.u32 2147483647, %v8477_v42  ;;  %v8490_v36 = vpop.f32.mrb[34].mxu1  ;;  %v12005_v60 = vmov 0  ;;  %vm8508_vm10 = vcmp.gt.f32.partialorder %v3433_v7, %v8361_v5 }
 0x29b   : > { %12004 = vst [vmem:[#allocation88_spill] sm:$0xff] %v8490_v36  ;;  %v8500_v16 = vpop.f32.mrb[35].mxu1  ;;  %v12018_v7 = vmov 0  ;;  %v12050_v42 = vmov 0 }
 0x29c   : > { %12008 = vst [vmem:[#allocation90_spill] sm:$0xff] %v8500_v16  ;;  %vm8525_vm2 = vcmp.gt.f32.partialorder %v3434_v32, %v8365_v30  ;;  %v3462_v9 = vand.u32 2147483647, %v8500_v16  ;;  %v12025_v32 = vmov 0 }
 0x29d   : > { %v12019_v7 = vsel %vm8525_vm2, 4294967295, %v12018_v7 }
 0x29e   : > { %v8445_v25 = vpop.f32.mrb[24].mxu0  ;;  %12020 = vst [vmem:[#allocation94_spill] sm:$0xff] %v12019_v7  ;;  %vm8548_vm7 = vcmp.gt.f32.partialorder %v3462_v9, %v8365_v30 }
 0x29f   : > { %11989 = vst [vmem:[#allocation79_spill] sm:$0xff] %v8445_v25  ;;  %v2875_v23 = vand.u32 2147483647, %v8445_v25  ;;  %v8456_v17 = vpop.f32.mrb[25].mxu0  ;;  %v12012_v25 = vmov 0  ;;  %v12026_v32 = vsel %vm8548_vm7, 4294967295, %v12025_v32 }
 0x2a0   : > { %11993 = vst [vmem:[#allocation81_spill] sm:$0xff] %v8456_v17  ;;  %v2876_v14 = vand.u32 2147483647, %v8456_v17  ;;  %v8470_v44 = vpop.f32.mrb[26].mxu0  ;;  %v12013_v25 = vsel %vm8508_vm10, 4294967295, %v12012_v25  ;;  %12027 = vst [vmem:[#allocation97_spill] sm:$0xff] %v12026_v32 }
 0x2a1   : > { %11998 = vst [vmem:[#allocation84_spill] sm:$0xff] %v8470_v44  ;;  %vm8480_vm3 = vcmp.gt.f32.partialorder %v2875_v23, %v8435_v49  ;;  %v2903_v13 = vand.u32 2147483647, %v8470_v44  ;;  %v8487_v15 = vpop.f32.mrb[27].mxu0  ;;  %12014 = vst [vmem:[#allocation92_spill] sm:$0xff] %v12013_v25 }
 0x2a2   : > { %v12001_v22 = vsel %vm8480_vm3, 4294967295, %v12000_v22  ;;  %12003 = vst [vmem:[#allocation87_spill] sm:$0xff] %v8487_v15  ;;  %vm8493_vm4 = vcmp.gt.f32.partialorder %v2876_v14, %v8448_v34  ;;  %v2904_v23 = vand.u32 2147483647, %v8487_v15  ;;  %v3461_v14 = vand.u32 2147483647, %v8490_v36 }
 0x2a3   : > { %12002 = vst [vmem:[#allocation86_spill] sm:$0xff] %v12001_v22  ;;  %v12006_v60 = vsel %vm8493_vm4, 4294967295, %v12005_v60  ;;  %vm8503_vm1 = vcmp.gt.f32.partialorder %v2903_v13, %v8435_v49  ;;  %v12015_v13 = vmov 0  ;;  %v12032_v36 = vmov 0 }
 0x2a4   : > { %12007 = vst [vmem:[#allocation89_spill] sm:$0xff] %v12006_v60  ;;  %v12010_v35 = vsel %vm8503_vm1, 4294967295, %v12009_v35  ;;  %vm8520_vm13 = vcmp.gt.f32.partialorder %v2904_v23, %v8448_v34  ;;  %vm8537_vm3 = vcmp.gt.f32.partialorder %v3461_v14, %v8361_v5  ;;  %v12021_v23 = vmov 0  ;;  %v8555_v14 = vpop.f32.mrb[36].mxu1 }
 0x2a5   : > { %12011 = vst [vmem:[#allocation91_spill] sm:$0xff] %v12010_v35  ;;  %v12016_v13 = vsel %vm8520_vm13, 4294967295, %v12015_v13  ;;  %v12022_v23 = vsel %vm8537_vm3, 4294967295, %v12021_v23  ;;  %12029 = vst [vmem:[#allocation99_spill] sm:$0xff] %v8555_v14  ;;  %v3657_v9 = vand.u32 2147483647, %v8555_v14 }
 0x2a6   : > { %12017 = vst [vmem:[#allocation93_spill] sm:$0xff] %v12016_v13  ;;  %12023 = vst [vmem:[#allocation95_spill] sm:$0xff] %v12022_v23  ;;  %v8541_v22 = vpop.f32.mrb[28].mxu0  ;;  %v8565_v50 = vpop.f32.mrb[37].mxu1  ;;  %v12041_v13 = vmov 0  ;;  %vm12057_vm3 = vcmp.lt.s32.totalorder %v6549_v43, 3 }
 0x2a7   : > { %12024 = vst [vmem:[#allocation96_spill] sm:$0xff] %v8541_v22  ;;  %v3211_v44 = vand.u32 2147483647, %v8541_v22  ;;  %v8553_v35 = vpop.f32.mrb[29].mxu0  ;;  %12031 = vst [vmem:[#allocation101_spill] sm:$0xff] %v8565_v50  ;;  %v8578_v7 = vpop.f32.mrb[38].mxu1  ;;  %vm8605_vm4 = vcmp.gt.f32.partialorder %v3657_v9, %v8361_v5 }
 0x2a8   : > { %12028 = vst [vmem:[#allocation98_spill] sm:$0xff] %v8553_v35  ;;  %v3212_v25 = vand.u32 2147483647, %v8553_v35  ;;  %v8562_v23 = vpop.f32.mrb[30].mxu0  ;;  %v3658_v15 = vand.u32 2147483647, %v8565_v50 }
 0x2a9   : > { %12030 = vst [vmem:[#allocation100_spill] sm:$0xff] %v8562_v23  ;;  %vm8568_vm1 = vcmp.gt.f32.partialorder %v3211_v44, %v8435_v49  ;;  %v3239_v60 = vand.u32 2147483647, %v8562_v23  ;;  %v8575_v17 = vpop.f32.mrb[31].mxu0  ;;  %12036 = vst [vmem:[#allocation104_spill] sm:$0xff] %v8578_v7  ;;  %v8583_v44 = vpop.f32.mrb[39].mxu1 }
 0x2aa   : > { %v12033_v36 = vsel %vm8568_vm1, 4294967295, %v12032_v36  ;;  %12035 = vst [vmem:[#allocation103_spill] sm:$0xff] %v8575_v17  ;;  %v3240_v32 = vand.u32 2147483647, %v8575_v17  ;;  %12037 = vst [vmem:[#allocation105_spill] sm:$0xff] %v8583_v44  ;;  %vm8588_vm14 = vcmp.gt.f32.partialorder %v3212_v25, %v8448_v34  ;;  %v12044_v25 = vmov 0 }
 0x2ab   : > { %12034 = vst [vmem:[#allocation102_spill] sm:$0xff] %v12033_v36  ;;  %v12039_v54 = vsel %vm8588_vm14, 4294967295, %v12038_v54  ;;  %vm8593_vm10 = vcmp.gt.f32.partialorder %v3239_v60, %v8435_v49  ;;  %v3685_v22 = vand.u32 2147483647, %v8578_v7  ;;  %v12045_v25 = vsel %vm8605_vm4, 4294967295, %v12044_v25  ;;  %vm12059_vm1 = vmmov %vm12057_vm3 }
 0x2ac   : > { %v6201_v16 = vpop.permute.xlu0 %6200  ;;  %v8585_v4 = vpop.permute.xlu1 %6205  ;;  %12040 = vst [vmem:[#allocation106_spill] sm:$0xff] %v12039_v54  ;;  %v12042_v13 = vsel %vm8593_vm10, 4294967295, %v12041_v13  ;;  %12046 = vst [vmem:[#allocation108_spill] sm:$0xff] %v12045_v25  ;;  %vm8610_vm13 = vcmp.gt.f32.partialorder %v3658_v15, %v8365_v30  ;;  %v12047_v60 = vmov 0  ;;  %vm8615_vm2 = vcmp.gt.f32.partialorder %v3240_v32, %v8448_v34 }
 0x2ad   : > { %12043 = vst [vmem:[#allocation107_spill] sm:$0xff] %v12042_v13  ;;  %v6203_v23 = vunpack.i.h.bf16 %v6201_v16  ;;  %v6202_v35 = vunpack.i.l.bf16 %v6201_v16  ;;  %v12048_v60 = vsel %vm8610_vm13, 4294967295, %v12047_v60  ;;  %v12051_v42 = vsel %vm8615_vm2, 4294967295, %v12050_v42 }
 0x2ae   : > { %12049 = vst [vmem:[#allocation109_spill] sm:$0xff] %v12048_v60  ;;  %12052 = vst [vmem:[#allocation110_spill] sm:$0xff] %v12051_v42  ;;  %vm8620_vm7 = vcmp.gt.f32.partialorder %v3685_v22, %v8361_v5  ;;  %v12053_v16 = vmov 0  ;;  %v3686_v9 = vand.u32 2147483647, %v8583_v44  ;;  %v12056_v15 = vunpack.i.l.bf16 %v7930_v21 }
 0x2af   : > { %v12054_v16 = vsel %vm8620_vm7, 4294967295, %v12053_v16  ;;  %v12058_v32 = vunpack.i.h.bf16 %v7930_v21  ;;  %v12061_v21 = vmov 0  ;;  %v12071_v36 = vmov 0 }
 0x2b0   : > { %12055 = vst [vmem:[#allocation111_spill] sm:$0xff] %v12054_v16  ;;  %v700_v13 = vsel %vm12057_vm3, %v12056_v15, %v6202_v35  ;;  %v8639_v5 = vpop.permute.xlu1 %6215  ;;  %v8641_v14 = vpop.f32.mrb[32].mxu0  ;;  %vm8648_vm11 = vcmp.gt.f32.partialorder %v3686_v9, %v8365_v30  ;;  %v12066_v30 = vpack.c.bf16 %v7959_v18, %v7953_v61  ;;  %v12067_v9 = vmov 0 }
 0x2b1   : > { %v701_v17 = vsel %vm12059_vm1, %v12058_v32, %v6203_v23  ;;  %12060 = vst [vmem:[#allocation112_spill] sm:$0xff] %v8641_v14  ;;  %v12062_v21 = vsel %vm8648_vm11, 4294967295, %v12061_v21  ;;  %v3435_v15 = vand.u32 2147483647, %v8641_v14  ;;  %v8653_v32 = vpop.f32.mrb[33].mxu0  ;;  %v12074_v16 = vmov 0 }
 0x2b2   : > { %v771_v22 = vpack.c.bf16 %v701_v17, %v700_v13  ;;  %12063 = vst [vmem:[#allocation113_spill] sm:$0xff] %v12062_v21  ;;  %12064 = vst [vmem:[#allocation114_spill] sm:$0xff] %v8653_v32  ;;  %v3436_v17 = vand.u32 2147483647, %v8653_v32  ;;  %v8660_v13 = vpop.f32.mrb[34].mxu0  ;;  %v12077_v61 = vmov 0  ;;  %v12084_v14 = vunpack.i.l.bf16 %v8639_v5 }
 0x2b3   : > { %12065 = vst [vmem:[#allocation115_spill] sm:$0xff] %v8660_v13  ;;  %vm8667_vm10 = vcmp.gt.f32.partialorder %v3435_v15, %v8435_v49  ;;  %v3463_v54 = vand.u32 2147483647, %v8660_v13  ;;  %v8672_v42 = vpop.f32.mrb[35].mxu0  ;;  %vm12081_vm7 = vcmp.lt.s32.totalorder %v6549_v43, 3  ;;  %v12085_v13 = vunpack.i.l.bf16 %v7879_v27 }
 0x2b4   : > { %2350 = vmatprep.subr.bf16.mxu1 %v771_v22  ;;  %v12068_v9 = vsel %vm8667_vm10, 4294967295, %v12067_v9  ;;  %12070 = vst [vmem:[#allocation117_spill] sm:$0xff] %v8672_v42  ;;  %v6207_v22 = vunpack.i.l.bf16 %v8585_v4  ;;  %v8675_v25 = vpop.permute.xlu1 %6225  ;;  %vm8678_vm3 = vcmp.gt.f32.partialorder %v3436_v17, %v8448_v34  ;;  %v3464_v18 = vand.u32 2147483647, %v8672_v42  ;;  %vm12082_vm13 = vmmov %vm12081_vm7 }
 0x2b5   : > { %2351 = vmatpush1.bf16.msra.mxu1 %v12066_v30  ;;  %12069 = vst [vmem:[#allocation116_spill] sm:$0xff] %v12068_v9  ;;  %v12072_v36 = vsel %vm8678_vm3, 4294967295, %v12071_v36  ;;  %vm8688_vm1 = vcmp.gt.f32.partialorder %v3463_v54, %v8435_v49  ;;  %v12080_v54 = vunpack.i.h.bf16 %v8585_v4  ;;  %v2742_v9 = vrot.slane %v8372_v28, %v6470_v2 }
 0x2b6   : > { %12073 = vst [vmem:[#allocation118_spill] sm:$0xff] %v12072_v36  ;;  %v12075_v16 = vsel %vm8688_vm1, 4294967295, %v12074_v16  ;;  %vm8699_vm2 = vcmp.gt.f32.partialorder %v3464_v18, %v8448_v34  ;;  %v8715_v15 = vsel %vm12082_vm13, %v6202_v35, %v6207_v22  ;;  %v12087_v35 = vunpack.i.h.bf16 %v8639_v5 }
 0x2b7   : > { %12076 = vst [vmem:[#allocation119_spill] sm:$0xff] %v12075_v16  ;;  %v12078_v61 = vsel %vm8699_vm2, 4294967295, %v12077_v61  ;;  %v8711_v17 = vsel %vm12081_vm7, %v6203_v23, %v12080_v54  ;;  %vm12086_vm7 = vcmp.lt.s32.totalorder %v6549_v43, 1  ;;  %v12088_v54 = vunpack.i.h.bf16 %v7879_v27  ;;  %v8743_v16 = vpop.f32.mrb[40].mxu1 }
 0x2b8   : > { %12079 = vst [vmem:[#allocation120_spill] sm:$0xff] %v12078_v61  ;;  %v8717_v30 = vpop.permute.xlu1 %6235  ;;  %v8719_v18 = vpop.f32.mrb[36].mxu0  ;;  %v8730_v23 = vsel %vm12086_vm7, %v12085_v13, %v12084_v14  ;;  %vm12089_vm13 = vmmov %vm12086_vm7  ;;  %v12094_v13 = vsub.s32 3, %v6467_v1  ;;  %vm12117_vm1 = vcmp.lt.s32.totalorder %v6549_v43, 127  ;;  %vm12128_vm3 = vcmp.lt.s32.totalorder %v6549_v43, 125 }
 0x2b9   : > { %12083 = vst [vmem:[#allocation121_spill] sm:$0xff] %v8719_v18  ;;  %v8738_v36 = vsel %vm12089_vm13, %v12088_v54, %v12087_v35  ;;  %v3659_v61 = vand.u32 2147483647, %v8719_v18  ;;  %v8741_v32 = vpop.f32.mrb[37].mxu0  ;;  %12091 = vst [vmem:[#allocation123_spill] sm:$0xff] %v8743_v16  ;;  %v8748_v14 = vpop.f32.mrb[41].mxu1  ;;  %v772_v35 = vpack.c.bf16 %v8711_v17, %v8715_v15  ;;  %v6237_v41 = vunpack.i.l.bf16 %v8717_v30 }
 0x2ba   : > { %12090 = vst [vmem:[#allocation122_spill] sm:$0xff] %v8741_v32  ;;  %v3660_v42 = vand.u32 2147483647, %v8741_v32  ;;  %v8746_v2 = vpop.f32.mrb[38].mxu0  ;;  %12093 = vst [vmem:[#allocation125_spill] sm:$0xff] %v8748_v14  ;;  %v2746_v27 = vrot.slane %v8372_v28, %v12094_v13  ;;  %v12095_v54 = vmov 0 }
 0x2bb   : > { %12092 = vst [vmem:[#allocation124_spill] sm:$0xff] %v8746_v2  ;;  %vm8756_vm7 = vcmp.gt.f32.partialorder %v3659_v61, %v8435_v49  ;;  %v3687_v7 = vand.u32 2147483647, %v8746_v2  ;;  %v8761_v60 = vpop.f32.mrb[39].mxu0  ;;  %v8763_v21 = vpop.f32.mrb[42].mxu1  ;;  %v8773_v61 = vrot.slane %v2742_v9, %v6485_v6  ;;  %v12104_v9 = vmov 0 }
 0x2bc   : > { %v12096_v54 = vsel %vm8756_vm7, 4294967295, %v12095_v54  ;;  %12098 = vst [vmem:[#allocation127_spill] sm:$0xff] %v8761_v60  ;;  %12099 = vst [vmem:[#allocation128_spill] sm:$0xff] %v8763_v21  ;;  %v8765_v50 = vpop.permute.xlu1 %6245  ;;  %v2877_v15 = vand.u32 2147483647, %v8743_v16  ;;  %v8775_v17 = vpop.f32.mrb[43].mxu1  ;;  %vm8790_vm14 = vcmp.gt.f32.partialorder %v3660_v42, %v8448_v34  ;;  %v8802_v39 = vrot.slane %v2746_v27, %v6485_v6 }
 0x2bd   : > { %12097 = vst [vmem:[#allocation126_spill] sm:$0xff] %v12096_v54  ;;  %12100 = vst [vmem:[#allocation129_spill] sm:$0xff] %v8775_v17  ;;  %vm8780_vm13 = vcmp.gt.f32.partialorder %v3687_v7, %v8435_v49  ;;  %v3688_v44 = vand.u32 2147483647, %v8761_v60  ;;  %v8785_v12 = vpop.f32.mrb[44].mxu1  ;;  %v12105_v9 = vsel %vm8790_vm14, 4294967295, %v12104_v9  ;;  %v6228_v42 = vunpack.i.h.bf16 %v8675_v25 }
 0x2be   : > { %v12102_v11 = vsel %vm8780_vm13, 4294967295, %v12101_v11  ;;  %v8787_v13 = vpop.permute.xlu0 %6210  ;;  %12106 = vst [vmem:[#allocation131_spill] sm:$0xff] %v12105_v9  ;;  %v2878_v7 = vand.u32 2147483647, %v8748_v14  ;;  %v8804_v18 = vpop.f32.mrb[45].mxu1  ;;  %v12107_v49 = vmov 0  ;;  %vm8819_vm7 = vcmp.gt.f32.partialorder %v2877_v15, %v8773_v61 }
 0x2bf   : > { %12103 = vst [vmem:[#allocation130_spill] sm:$0xff] %v12102_v11  ;;  %v6213_v0 = vunpack.i.h.bf16 %v8787_v13  ;;  %v11653_v54 = vunpack.i.l.bf16 %v8787_v13  ;;  %vm8814_vm4 = vcmp.gt.f32.partialorder %v3688_v44, %v8448_v34  ;;  %v12110_v27 = vmov 0  ;;  %v8824_v32 = vpop.f32.mrb[46].mxu1 }
 0x2c0   : > { %v8811_v53 = vpop.permute.xlu1 %6255  ;;  %v12108_v49 = vsel %vm8814_vm4, 4294967295, %v12107_v49  ;;  %v12111_v27 = vsel %vm8819_vm7, 4294967295, %v12110_v27  ;;  %v2905_v2 = vand.u32 2147483647, %v8763_v21  ;;  %vm12113_vm13 = vcmp.lt.s32.totalorder %v6549_v43, 3 }
 0x2c1   : > { %12109 = vst [vmem:[#allocation132_spill] sm:$0xff] %v12108_v49  ;;  %12112 = vst [vmem:[#allocation133_spill] sm:$0xff] %v12111_v27  ;;  %v696_v11 = vsel %vm12113_vm13, %v6207_v22, %v11653_v54  ;;  %v12114_v60 = vunpack.i.h.bf16 %v8585_v4  ;;  %v12116_v44 = vunpack.i.h.bf16 %v8717_v30  ;;  %vm8843_vm2 = vcmp.gt.f32.partialorder %v2878_v7, %v8802_v39  ;;  %v8847_v22 = vpop.f32.mrb[47].mxu1 }
 0x2c2   : > { %vm12115_vm10 = vmmov %vm12113_vm13  ;;  %v12118_v6 = vmov 0  ;;  %v6221_v4 = vpop.permute.xlu0 %6220  ;;  %v2906_v9 = vand.u32 2147483647, %v8775_v17  ;;  %v8857_v49 = vpop.f32.mrb[48].mxu1  ;;  %v6227_v7 = vunpack.i.l.bf16 %v8675_v25  ;;  %v12126_v25 = vunpack.i.h.bf16 %v8765_v50 }
 0x2c3   : > { %v697_v34 = vsel %vm12115_vm10, %v12114_v60, %v6213_v0  ;;  %v1088_v15 = vsel %vm12117_vm1, %v6237_v41, %v12116_v44  ;;  %v12119_v6 = vsel %vm8843_vm2, 4294967295, %v12118_v6  ;;  %vm8850_vm10 = vcmp.gt.f32.partialorder %v2905_v2, %v8773_v61  ;;  %vm12125_vm13 = vmmov %vm12117_vm1 }
 0x2c4   : > { %12120 = vst [vmem:[#allocation134_spill] sm:$0xff] %v12119_v6  ;;  %v773_v54 = vpack.c.bf16 %v697_v34, %v696_v11  ;;  %v12121_v60 = vmov 0  ;;  %v6223_v10 = vunpack.i.h.bf16 %v6221_v4  ;;  %v6222_v28 = vunpack.i.l.bf16 %v6221_v4  ;;  %v8866_v11 = vpop.f32.mrb[49].mxu1  ;;  %vm12131_vm1 = vmmov %vm12128_vm3 }
 0x2c5   : > { %v12122_v60 = vsel %vm8850_vm10, 4294967295, %v12121_v60  ;;  %v12124_v34 = vunpack.i.h.bf16 %v7849_v51  ;;  %v12127_v4 = vunpack.i.h.bf16 %v7881_v40  ;;  %v12130_v2 = vunpack.i.l.bf16 %v7881_v40  ;;  %v6266_v51 = vpop.permute.xlu1 %6265 }
 0x2c6   : > { %12123 = vst [vmem:[#allocation135_spill] sm:$0xff] %v12122_v60  ;;  %v12129_v60 = vunpack.i.l.bf16 %v8765_v50  ;;  %2423 = vmatprep.subr.bf16.mxu0 %v773_v54  ;;  %vm12135_vm14 = vcmp.lt.s32.totalorder %v6549_v43, 1  ;;  %v3213_v40 = vand.u32 2147483647, %v8785_v12  ;;  %v6257_v17 = vunpack.i.l.bf16 %v8811_v53 }
 0x2c7   : > { %v8872_v44 = vsel %vm12125_vm13, %v12124_v34, %v6237_v41  ;;  %v8880_v27 = vsel %vm12128_vm3, %v12127_v4, %v12126_v25  ;;  %vm8891_vm13 = vcmp.gt.f32.partialorder %v2906_v9, %v8802_v39  ;;  %v12132_v41 = vmov 0  ;;  %2424 = vmatpush1.bf16.msra.mxu0 %v772_v35 }
 0x2c8   : > { %v8888_v16 = vsel %vm12131_vm1, %v12130_v2, %v12129_v60  ;;  %v12133_v41 = vsel %vm8891_vm13, 4294967295, %v12132_v41  ;;  %v923_v34 = vsel %vm12135_vm14, %v6222_v28, %v6227_v7  ;;  %v6268_v25 = vunpack.i.h.bf16 %v6266_v51  ;;  %vm12136_vm1 = vmmov %vm12135_vm14  ;;  %v8905_v60 = vpop.permute.xlu0 %6230 }
 0x2c9   : > { %12134 = vst [vmem:[#allocation136_spill] sm:$0xff] %v12133_v41  ;;  %v1136_v4 = vpack.c.bf16 %v1088_v15, %v7736_v59  ;;  %v924_v54 = vsel %vm12136_vm1, %v6223_v10, %v6228_v42  ;;  %v6267_v9 = vunpack.i.l.bf16 %v6266_v51  ;;  %v12137_v2 = vunpack.i.l.bf16 %v8639_v5  ;;  %vm12138_vm14 = vmmov %vm12136_vm1 }
 0x2ca   : > { %v12139_v59 = vunpack.i.h.bf16 %v8639_v5  ;;  %vm12140_vm4 = vmmov %vm12136_vm1  ;;  %v11672_v21 = vunpack.i.h.bf16 %v8905_v60  ;;  %v11669_v6 = vunpack.i.l.bf16 %v8905_v60  ;;  %v1135_v41 = vpack.c.bf16 %v8872_v44, %v7549_v8 }
 0x2cb   : > { %v925_v35 = vsel %vm12138_vm14, %v12137_v2, %v6222_v28  ;;  %v3214_v5 = vand.u32 2147483647, %v8804_v18  ;;  %v8924_v2 = vpop.f32.mrb[50].mxu1  ;;  %vm12142_vm14 = vmmov %vm12136_vm1  ;;  %vm12158_vm10 = vcmp.lt.s32.totalorder %v6549_v43, 3  ;;  %vm12190_vm13 = vcmp.lt.s32.totalorder %v6549_v43, 1 }
 0x2cc   : > { %v926_v15 = vsel %vm12140_vm4, %v12139_v59, %v6223_v10  ;;  %vm12141_vm4 = vcmp.lt.s32.totalorder %v6549_v43, 3  ;;  %v921_v8 = vsel %vm12136_vm1, %v6227_v7, %v11669_v6  ;;  %v922_v44 = vsel %vm12142_vm14, %v6228_v42, %v11672_v21 }
 0x2cd   : > { %v996_v28 = vpack.c.bf16 %v926_v15, %v925_v35  ;;  %v8928_v10 = vsel %vm12141_vm4, %v6213_v0, %v6268_v25  ;;  %v997_v59 = vpack.c.bf16 %v924_v54, %v923_v34  ;;  %v8938_v35 = vpop.f32.mrb[51].mxu1  ;;  %v8940_v15 = vpop.permute.xlu0 %6240  ;;  %v998_v51 = vpack.c.bf16 %v922_v44, %v921_v8  ;;  %vm12145_vm1 = vmmov %vm12141_vm4 }
 0x2ce   : > { %v12143_v0 = vunpack.i.l.bf16 %v6714_v62  ;;  %v12144_v7 = vunpack.i.h.bf16 %v6714_v62  ;;  %vm8955_vm14 = vcmp.gt.f32.partialorder %v3213_v40, %v8773_v61  ;;  %v12146_v42 = vmov 0  ;;  %v8959_v34 = vpop.f32.mrb[52].mxu1 }
 0x2cf   : > { %2352 = vmatprep.subr.bf16.mxu1 %v996_v28  ;;  %v12147_v42 = vsel %vm8955_vm14, 4294967295, %v12146_v42  ;;  %12148 = vst [vmem:[#allocation137_spill] sm:$0xff] %v8959_v34  ;;  %v12149_v54 = vpack.c.bf16 %v8738_v36, %v8730_v23  ;;  %v11676_v28 = vunpack.i.h.bf16 %v8940_v15  ;;  %v6242_v8 = vunpack.i.l.bf16 %v8940_v15  ;;  %v8969_v44 = vpop.f32.mrb[53].mxu1  ;;  %2425 = vmatprep.subr.bf16.mxu0 %v998_v51 }
 0x2d0   : > { %v8946_v14 = vsel %vm12141_vm4, %v6267_v9, %v12143_v0  ;;  %v8952_v6 = vsel %vm12145_vm1, %v6268_v25, %v12144_v7  ;;  %v3241_v62 = vand.u32 2147483647, %v8824_v32  ;;  %vm8972_vm4 = vcmp.gt.f32.partialorder %v3214_v5, %v8802_v39  ;;  %2426 = vmatpush1.bf16.msra.mxu0 %v997_v59  ;;  %v8994_v25 = vpop.f32.mrb[54].mxu1 }
 0x2d1   : > { %2353 = vmatpush1.bf16.msra.mxu1 %v12149_v54  ;;  %v12150_v40 = vmov 0  ;;  %v3242_v36 = vand.u32 2147483647, %v8847_v22  ;;  %v3437_v0 = vand.u32 2147483647, %v8857_v49  ;;  %v12152_v7 = vunpack.i.h.bf16 %v8717_v30  ;;  %v6251_v59 = vpop.permute.xlu0 %6250 }
 0x2d2   : > { %2354 = vmatprep.subr.bf16.mxu1 %v1136_v4  ;;  %v12151_v40 = vsel %vm8972_vm4, 4294967295, %v12150_v40  ;;  %vm12153_vm1 = vcmp.lt.s32.totalorder %v6549_v43, 127  ;;  %vm8989_vm7 = vcmp.gt.f32.partialorder %v3241_v62, %v8773_v61  ;;  %v12155_v51 = vmov 0  ;;  %v9011_v62 = vpop.f32.mrb[55].mxu1 }
 0x2d3   : > { %v1087_v54 = vsel %vm12153_vm1, %v12152_v7, %v6242_v8  ;;  %vm12154_vm3 = vmmov %vm12153_vm1  ;;  %v12156_v51 = vsel %vm8989_vm7, 4294967295, %v12155_v51  ;;  %v3438_v5 = vand.u32 2147483647, %v8866_v11  ;;  %v12157_v30 = vunpack.i.l.bf16 %v8787_v13 }
 0x2d4   : > { %v1086_v4 = vsel %vm12154_vm3, %v6242_v8, %v11676_v28  ;;  %v1137_v21 = vpack.c.bf16 %v1087_v54, %v7730_v31  ;;  %vm9007_vm1 = vcmp.gt.f32.partialorder %v3242_v36, %v8802_v39  ;;  %v12159_v8 = vmov 0 }
 0x2d5   : > { %v694_v7 = vsel %vm12158_vm10, %v12157_v30, %v6267_v9  ;;  %v1138_v23 = vpack.c.bf16 %v1086_v4, %v7833_v52  ;;  %v12160_v8 = vsel %vm9007_vm1, 4294967295, %v12159_v8  ;;  %2355 = vmatpush1.bf16.msra.mxu1 %v1135_v41  ;;  %v6253_v13 = vunpack.i.h.bf16 %v6251_v59 }
 0x2d6   : > { %v6252_v9 = vunpack.i.l.bf16 %v6251_v59  ;;  %v775_v52 = vpack.c.bf16 %v8952_v6, %v8946_v14  ;;  %vm9016_vm10 = vcmp.gt.f32.partialorder %v3437_v0, %v8773_v61  ;;  %v12161_v31 = vmov 0  ;;  %v9051_v6 = vpop.permute.xlu0 %6260 }
 0x2d7   : > { %v12162_v31 = vsel %vm9016_vm10, 4294967295, %v12161_v31  ;;  %2427 = vmatprep.subr.bf16.mxu0 %v1138_v23  ;;  %v3465_v36 = vand.u32 2147483647, %v8924_v2  ;;  %v3466_v54 = vand.u32 2147483647, %v8938_v35  ;;  %vm12164_vm14 = vcmp.lt.s32.totalorder %v6549_v43, 125 }
 0x2d8   : > { %12163 = vst [vmem:[#allocation138_spill] sm:$0xff] %v12162_v31  ;;  %v1286_v14 = vsel %vm12164_vm14, %v6252_v9, %v6257_v17  ;;  %2428 = vmatpush1.bf16.msra.mxu0 %v1137_v21  ;;  %v12165_v0 = vunpack.i.l.bf16 %v8765_v50  ;;  %vm12166_vm3 = vmmov %vm12164_vm14  ;;  %v12167_v4 = vunpack.i.h.bf16 %v8765_v50  ;;  %vm9043_vm4 = vcmp.gt.f32.partialorder %v3438_v5, %v8802_v39 }
 0x2d9   : > { %vm12168_vm7 = vmmov %vm12166_vm3  ;;  %v12169_v59 = vmov 0  ;;  %v12171_v41 = vunpack.i.h.bf16 %v8811_v53  ;;  %v12175_v50 = vmov 0  ;;  %v11682_v5 = vunpack.i.h.bf16 %v9051_v6 }
 0x2da   : > { %v1288_v23 = vsel %vm12166_vm3, %v12165_v0, %v6252_v9  ;;  %v1289_v30 = vsel %vm12168_vm7, %v12167_v4, %v6253_v13  ;;  %v12170_v59 = vsel %vm9043_vm4, 4294967295, %v12169_v59  ;;  %vm12172_vm14 = vmmov %vm12166_vm3  ;;  %vm9054_vm3 = vcmp.gt.f32.partialorder %v3465_v36, %v8773_v61 }
 0x2db   : > { %v1287_v21 = vsel %vm12172_vm14, %v6253_v13, %v12171_v41  ;;  %v1361_v28 = vpack.c.bf16 %v1289_v30, %v1288_v23  ;;  %v12173_v9 = vmov 0  ;;  %vm9059_vm7 = vcmp.gt.f32.partialorder %v3466_v54, %v8802_v39  ;;  %vm12179_vm1 = vmmov %vm12172_vm14 }
 0x2dc   : > { %v12174_v9 = vsel %vm9054_vm3, 4294967295, %v12173_v9  ;;  %v12176_v50 = vsel %vm9059_vm7, 4294967295, %v12175_v50  ;;  %v6262_v0 = vunpack.i.l.bf16 %v9051_v6  ;;  %v3661_v13 = vand.u32 2147483647, %v8959_v34  ;;  %vm12192_vm4 = vmmov %vm12190_vm13 }
 0x2dd   : > { %v3662_v36 = vand.u32 2147483647, %v8969_v44  ;;  %2356 = vmatprep.subr.bf16.mxu1 %v1361_v28  ;;  %v3689_v41 = vand.u32 2147483647, %v8994_v25  ;;  %v3690_v23 = vand.u32 2147483647, %v9011_v62  ;;  %v12177_v30 = vpack.c.bf16 %v8880_v27, %v8888_v16  ;;  %v6271_v27 = vpop.permute.xlu0 %6270 }
 0x2de   : > { %v1284_v28 = vsel %vm12172_vm14, %v6257_v17, %v6262_v0  ;;  %v12178_v31 = vunpack.i.h.bf16 %v8811_v53  ;;  %vm9095_vm10 = vcmp.gt.f32.partialorder %v3661_v13, %v8773_v61  ;;  %v6273_v13 = vunpack.i.h.bf16 %v6271_v27 }
 0x2df   : > { %2357 = vmatpush1.bf16.msra.mxu1 %v12177_v30  ;;  %vm9100_vm3 = vcmp.gt.f32.partialorder %v3662_v36, %v8802_v39  ;;  %vm9105_vm14 = vcmp.gt.f32.partialorder %v3689_v41, %v8773_v61  ;;  %v6272_v4 = vunpack.i.l.bf16 %v6271_v27  ;;  %v1362_v36 = vpack.c.bf16 %v1287_v21, %v1286_v14  ;;  %v9122_v61 = vld [vmem:[%s11439_s1] sm:$0xff]  }
 0x2e0   : > { %v1285_v54 = vsel %vm12179_vm1, %v12178_v31, %v11682_v5  ;;  %2496 = vmatprep.subr.bf16.mxu1 %v775_v52  ;;  %vm9110_vm1 = vcmp.gt.f32.partialorder %v3690_v23, %v8802_v39  ;;  %v1084_v31 = vpop.permute.xlu1 %1083  ;;  %v774_v5 = vpack.c.bf16 %v8928_v10, %v694_v7  ;;  %vm12188_vm7 = vcmask 523264  }
 0x2e1   : > { %v1363_v17 = vpack.c.bf16 %v1285_v54, %v1284_v28  ;;  %v12189_v39 = vunpack.i.l.bf16 %v8905_v60  ;;  %v12191_v7 = vunpack.i.h.bf16 %v8905_v60  ;;  %v12193_v14 = vunpack.i.l.bf16 %v6790_v63  ;;  %v6276_v23 = vpop.permute.xlu0 %6275 }
 0x2e2   : > { %5377 = vmatmul.mubr.msk.bf16.vlgmr.msra.gmra.mrb[88].mxu1 %vm12188_vm7, %v9122_v61  ;;  %vm12194_vm7 = vmmov %vm12192_vm4  ;;  %v12195_v41 = vunpack.i.h.bf16 %v6770_v38  ;;  %vm12196_vm2 = vcmp.lt.s32.totalorder %v6549_v43, 127  ;;  %v12197_v28 = vunpack.i.h.bf16 %v6790_v63  ;;  %v6278_v38 = vunpack.i.h.bf16 %v6276_v23 }
 0x2e3   : > { %2429 = vmatprep.subr.bf16.mxu0 %v1363_v17  ;;  %v919_v10 = vsel %vm12190_vm13, %v12189_v39, %v6272_v4  ;;  %v920_v52 = vsel %vm12192_vm4, %v12191_v7, %v6273_v13  ;;  %2497 = vmatpush1.bf16.msra.mxu1 %v774_v5  ;;  %v917_v21 = vsel %vm12194_vm7, %v6272_v4, %v12193_v14  ;;  %vm12198_vm13 = vmmov %vm12192_vm4  ;;  %v6277_v4 = vunpack.i.l.bf16 %v6276_v23 }
 0x2e4   : > { %2430 = vmatpush1.bf16.msra.mxu0 %v1362_v36  ;;  %v1112_v54 = vsel %vm12196_vm2, %v1084_v31, %v12195_v41  ;;  %v918_v60 = vsel %vm12198_vm13, %v6273_v13, %v12197_v28  ;;  %v999_v27 = vpack.c.bf16 %v920_v52, %v919_v10  ;;  %2392 = vmatprep.mubr.bf16.mxu1 %v11829_v58  ;;  %vm12200_vm4 = vmpackc.low %vm8038_vm9, %vm8017_vm8  ;;  %vm12201_vm2 = vcmask 523264   ;;  %v12228_v41 = vld [vmem:[#allocation44_spill] sm:$0xff]  ;;  %v12234_v28 = vld [vmem:[#allocation9_spill] sm:$0xff] }
 0x2e5   : > { %v12199_v5 = vpack.c.bf16 %v8012_v48, %v7987_v33  ;;  %v1000_v17 = vpack.c.bf16 %v918_v60, %v917_v21  ;;  %v12202_v63 = vunpack.i.h.bf16 %v8940_v15  ;;  %vm12203_vm7 = vcmp.lt.s32.totalorder %v6549_v43, 127  ;;  %vm12210_vm13 = vmpackc.low %vm8004_vm6, %vm7994_vm5 }
 0x2e6   : > { %v1140_v33 = vpack.c.bf16 %v1112_v54, %v6570_v55  ;;  %v2753_v48 = vsub.s32 5, %v6467_v1  ;;  %vm12206_vm8 = vcmp.lt.s32.totalorder %v6549_v43, 125  ;;  %v12207_v39 = vunpack.i.h.bf16 %v12204_v47  ;;  %v9187_v55 = vld [vmem:[%s11439_s1 + $0x8] sm:$0xff]   ;;  %vm12213_vm5 = vmpackc.low %vm8129_vm0, %vm8104_vm15  ;;  %v12230_v54 = vld [vmem:[#allocation39_spill] sm:$0xff] }
 0x2e7   : > { %5437 = vmatprep.subr.msk.bf16.mxu0 %vm12200_vm4, %v12199_v5  ;;  %5381 = vmatmul.mubr.msk.bf16.vlgmr.msra.gmra.mrb[88].mxu0 %vm12201_vm2, %v9122_v61  ;;  %v1085_v13 = vsel %vm12203_vm7, %v12202_v63, %v1084_v31  ;;  %v1336_v36 = vsel %vm12206_vm8, %v6277_v4, %v12205_v37  ;;  %vm12208_vm9 = vmmov %vm12206_vm8  ;;  %v12209_v15 = vpack.c.bf16 %v7989_v46, %v7981_v19  ;;  %v12214_v46 = vld [vmem:[#allocation67_spill] sm:$0xff]  ;;  %v12216_v7 = vunpack.i.h.bf16 %v9051_v6  ;;  %v12225_v6 = vld [vmem:[#allocation37_spill] sm:$0xff] }
 0x2e8   : > { %2498 = vmatprep.subr.bf16.mxu1 %v1000_v17  ;;  %v1337_v10 = vsel %vm12208_vm9, %v6278_v38, %v12207_v39  ;;  %2465 = vmatprep.mubr.bf16.mxu0 %v11829_v58  ;;  %vm12211_vm4 = vmmov %vm12201_vm2  ;;  %v1139_v31 = vpack.c.bf16 %v1085_v13, %v7845_v29  ;;  %v12212_v19 = vpack.c.bf16 %v8099_v45, %v8033_v56  ;;  %v12218_v45 = vld [vmem:[#allocation18_spill] sm:$0xff]  ;;  %v12236_v17 = vsub.s32 7, %v6467_v1  ;;  %v12237_v13 = vld [vmem:[#allocation31_spill] sm:$0xff] }
 0x2e9   : > { %2499 = vmatpush1.bf16.msra.mxu1 %v999_v27  ;;  %5440 = vmatpush1.bf16.msk.msra.mxu0 %vm12210_vm13, %v12209_v15  ;;  %v2750_v20 = vrot.slane %v12214_v46, %v6473_v3  ;;  %vm12215_vm6 = vmmov %vm12206_vm8  ;;  %v1365_v52 = vpack.c.bf16 %v1337_v10, %v1336_v36  ;;  %v2754_v56 = vrot.slane %v12214_v46, %v2753_v48  ;;  %v12222_v3 = vld [vmem:[#allocation19_spill] sm:$0xff]  ;;  %v12235_v27 = vld [vmem:[#allocation8_spill] sm:$0xff]  ;;  %v12319_v43 = vmov 0 }
 0x2ea   : > { %2500 = vmatprep.subr.bf16.mxu1 %v1140_v33  ;;  %5378 = vmatmul.mubr.msk.bf16.gmra.mrb[92].mxu1 %vm12211_vm4, %v9187_v55  ;;  %v1282_v26 = vsel %vm12215_vm6, %v6262_v0, %v6277_v4  ;;  %vm12217_vm2 = vmmov %vm12215_vm6  ;;  %v12220_v57 = vpack.c.bf16 %v12218_v45, %v12219_v24  ;;  %vm12223_vm0 = vnez %v12222_v3  ;;  %v12226_v0 = vld [vmem:[#allocation28_spill] sm:$0xff]  ;;  %vm12229_vm7 = vnez %v12228_v41  ;;  %v12238_v33 = vld [vmem:[#allocation26_spill] sm:$0xff] }
 0x2eb   : > { %5443 = vmatprep.subr.msk.bf16.mxu0 %vm12213_vm5, %v12212_v19  ;;  %v1283_v29 = vsel %vm12217_vm2, %v12216_v7, %v6278_v38  ;;  %2402 = vmatprep.mubr.bf16.mxu1 %v11829_v58  ;;  %vm12224_vm15 = vmpackc.low %vm8091_vm12, %vm12223_vm0  ;;  %v12227_v21 = vpack.c.bf16 %v12225_v6, %v12226_v0  ;;  %vm12231_vm8 = vnez %v12230_v54  ;;  %v9229_v60 = vrot.slane %v2750_v20, %v12234_v28  ;;  %v9234_v38 = vpop.f32.mrb[40].mxu0  ;;  %v12240_v47 = vld [vmem:[#allocation36_spill] sm:$0xff]  ;;  %v12245_v10 = vld [vmem:[#allocation17_spill] sm:$0xff] }
 0x2ec   : > { %vm12232_vm9 = vmpackc.low %vm12229_vm7, %vm12231_vm8  ;;  %v1364_v23 = vpack.c.bf16 %v1283_v29, %v1282_v26  ;;  %v2758_v5 = vrot.slane %v12214_v46, %v12235_v27  ;;  %v9237_v4 = vrot.slane %v2754_v56, %v12234_v28  ;;  %v2762_v63 = vrot.slane %v12214_v46, %v12236_v17  ;;  %v12242_v37 = vld [vmem:[#allocation32_spill] sm:$0xff]  ;;  %v9251_v39 = vpop.f32.mrb[41].mxu0  ;;  %v12246_v15 = vld [vmem:[#allocation13_spill] sm:$0xff] }
 0x2ed   : > { %2501 = vmatpush1.bf16.msra.mxu1 %v1139_v31  ;;  %5446 = vmatpush1.bf16.msk.msra.mxu0 %vm12224_vm15, %v12220_v57  ;;  %vm12233_vm13 = vmmov %vm12211_vm4  ;;  %v12239_v48 = vpack.c.bf16 %v12237_v13, %v12238_v33  ;;  %vm12241_vm12 = vnez %v12240_v47  ;;  %vm12243_vm4 = vnez %v12242_v37  ;;  %v2879_v36 = vand.u32 2147483647, %v9234_v38  ;;  %v12248_v19 = vld [vmem:[#allocation22_spill] sm:$0xff]  ;;  %v12250_v46 = vld [vmem:[#allocation21_spill] sm:$0xff]  ;;  %v9270_v45 = vpop.f32.mrb[42].mxu0 }
 0x2ee   : > { %2502 = vmatprep.subr.bf16.mxu1 %v1365_v52  ;;  %5449 = vmatprep.subr.msk.bf16.mxu0 %vm12232_vm9, %v12227_v21  ;;  %vm12244_vm5 = vmpackc.low %vm12241_vm12, %vm12243_vm4  ;;  %v12247_v31 = vpack.c.bf16 %v12245_v10, %v12246_v15  ;;  %vm12249_vm6 = vnez %v12248_v19  ;;  %vm12251_vm2 = vnez %v12250_v46  ;;  %v12253_v20 = vld [vmem:[#allocation53_spill] sm:$0xff]  ;;  %v12254_v26 = vld [vmem:[#allocation43_spill] sm:$0xff]  ;;  %v2880_v56 = vand.u32 2147483647, %v9251_v39  ;;  %v9287_v6 = vpop.f32.mrb[43].mxu0 }
 0x2ef   : > { %5382 = vmatmul.mubr.msk.bf16.gmra.mrb[92].mxu0 %vm12233_vm13, %v9187_v55  ;;  %vm12252_vm0 = vmpackc.low %vm12249_vm6, %vm12251_vm2  ;;  %v12255_v7 = vpack.c.bf16 %v12253_v20, %v12254_v26  ;;  %v12256_v29 = vld [vmem:[#allocation58_spill] sm:$0xff]  ;;  %v12258_v52 = vld [vmem:[#allocation55_spill] sm:$0xff]  ;;  %v12262_v57 = vmov 0  ;;  %v2907_v14 = vand.u32 2147483647, %v9270_v45  ;;  %v9290_v0 = vrot.slane %v2758_v5, %v12234_v28 }
 0x2f0   : > { %2475 = vmatprep.mubr.bf16.mxu0 %v11829_v58  ;;  %vm12257_vm15 = vnez %v12256_v29  ;;  %vm12259_vm7 = vnez %v12258_v52  ;;  %v9275_v24 = vld [vmem:[%s11439_s1 + $0x10] sm:$0xff]   ;;  %vm12261_vm9 = vmmov %vm12233_vm13  ;;  %vm9280_vm13 = vcmp.gt.f32.partialorder %v2879_v36, %v9229_v60  ;;  %vm9294_vm12 = vcmp.gt.f32.partialorder %v2880_v56, %v9237_v4  ;;  %v12267_v17 = vld [vmem:[#allocation47_spill] sm:$0xff] }
 0x2f1   : > { %2503 = vmatpush1.bf16.msra.mxu1 %v1364_v23  ;;  %5452 = vmatpush1.bf16.msk.msra.mxu0 %vm12244_vm5, %v12239_v48  ;;  %vm12260_vm8 = vmpackc.low %vm12257_vm15, %vm12259_vm7  ;;  %v12263_v57 = vsel %vm9280_vm13, 4294967295, %v12262_v57  ;;  %v2908_v41 = vand.u32 2147483647, %v9287_v6  ;;  %v9301_v23 = vpop.f32.mrb[56].mxu1  ;;  %v9304_v27 = vrot.slane %v2762_v63, %v12234_v28  ;;  %v12268_v5 = vld [vmem:[#allocation41_spill] sm:$0xff]  ;;  %v12270_v33 = vld [vmem:[#allocation52_spill] sm:$0xff]  ;;  %vm9315_vm2 = vcmp.gt.f32.partialorder %v2907_v14, %v9229_v60 }
 0x2f2   : > { %5461 = vmatprep.subr.msk.bf16.mxu1 %vm12252_vm0, %v12247_v31  ;;  %5455 = vmatprep.subr.msk.bf16.mxu0 %vm12260_vm8, %v12255_v7  ;;  %12266 = vst [vmem:[#allocation11_spill] sm:$0xff] %v9301_v23  ;;  %v12269_v13 = vpack.c.bf16 %v12267_v17, %v12268_v5  ;;  %vm12271_vm4 = vnez %v12270_v33  ;;  %v12272_v48 = vld [vmem:[#allocation48_spill] sm:$0xff]  ;;  %v12275_v47 = vmov 0  ;;  %v2881_v37 = vand.u32 2147483647, %v9301_v23  ;;  %v9320_v36 = vpop.f32.mrb[57].mxu1 }
 0x2f3   : > { %5379 = vmatmul.mubr.msk.bf16.gmra.mrb[96].mxu1 %vm12261_vm9, %v9275_v24  ;;  %vm12273_vm5 = vnez %v12272_v48  ;;  %v12276_v47 = vsel %vm9315_vm2, 4294967295, %v12275_v47  ;;  %v12277_v63 = vld [vmem:[#allocation69_spill] sm:$0xff]  ;;  %v12280_v31 = vld [vmem:[#allocation74_spill] sm:$0xff]  ;;  %vm9335_vm9 = vcmp.gt.f32.partialorder %v2908_v41, %v9237_v4  ;;  %v2882_v20 = vand.u32 2147483647, %v9320_v36  ;;  %v9340_v26 = vpop.f32.mrb[58].mxu1 }
 0x2f4   : > { %2412 = vmatprep.mubr.bf16.mxu1 %v11829_v58  ;;  %vm12274_vm6 = vmpackc.low %vm12271_vm4, %vm12273_vm5  ;;  %v12278_v10 = vld [vmem:[#allocation65_spill] sm:$0xff]  ;;  %vm12281_vm0 = vnez %v12280_v31  ;;  %v12282_v19 = vld [vmem:[#allocation70_spill] sm:$0xff]  ;;  %12287 = vst [vmem:[#allocation67_spill] sm:$0xff] %v9340_v26  ;;  %vm12288_vm4 = vcmask 523264   ;;  %v12289_v7 = vmov 0  ;;  %v9356_v56 = vpop.f32.mrb[59].mxu1 }
 0x2f5   : > { %5458 = vmatpush1.bf16.msk.msra.mxu0 %vm12274_vm6, %v12269_v13  ;;  %v12279_v15 = vpack.c.bf16 %v12277_v63, %v12278_v10  ;;  %vm12283_vm15 = vnez %v12282_v19  ;;  %vm9349_vm6 = vcmp.gt.f32.partialorder %v2881_v37, %v9290_v0  ;;  %v2909_v29 = vand.u32 2147483647, %v9340_v26  ;;  %v9359_v14 = vpop.f32.mrb[44].mxu0 }
 0x2f6   : > { %vm12284_vm7 = vmpackc.low %vm12281_vm0, %vm12283_vm15  ;;  %v12290_v7 = vsel %vm9349_vm6, 4294967295, %v12289_v7  ;;  %12292 = vst [vmem:[#allocation14_spill] sm:$0xff] %v9359_v14  ;;  %vm9362_vm0 = vcmp.gt.f32.partialorder %v2882_v20, %v9304_v27  ;;  %v12293_v41 = vmov 0  ;;  %v2910_v17 = vand.u32 2147483647, %v9356_v56  ;;  %v9370_v33 = vpop.f32.mrb[45].mxu0 }
 0x2f7   : > { %5485 = vmatprep.subr.msk.bf16.mxu0 %vm12284_vm7, %v12279_v15  ;;  %5383 = vmatmul.mubr.msk.bf16.gmra.mrb[96].mxu0 %vm12288_vm4, %v9275_v24  ;;  %12291 = vst [vmem:[#allocation18_spill] sm:$0xff] %v12290_v7  ;;  %v12294_v41 = vsel %vm9362_vm0, 4294967295, %v12293_v41  ;;  %v3215_v13 = vand.u32 2147483647, %v9359_v14  ;;  %12295 = vst [vmem:[#allocation23_spill] sm:$0xff] %v9370_v33  ;;  %vm9373_vm15 = vcmp.gt.f32.partialorder %v2909_v29, %v9290_v0  ;;  %v12296_v48 = vmov 0 }
 0x2f8   : > { %2485 = vmatprep.mubr.bf16.mxu0 %v11829_v58  ;;  %v12297_v48 = vsel %vm9373_vm15, 4294967295, %v12296_v48  ;;  %v3216_v37 = vand.u32 2147483647, %v9370_v33  ;;  %v9378_v63 = vpop.f32.mrb[46].mxu0  ;;  %vm9385_vm4 = vcmp.gt.f32.partialorder %v2910_v17, %v9304_v27  ;;  %v12300_v10 = vmov 0  ;;  %v9392_v15 = vld [vmem:[%s11439_s1 + $0x18] sm:$0xff]  }
 0x2f9   : > { %12298 = vst [vmem:[#allocation19_spill] sm:$0xff] %v12297_v48  ;;  %12299 = vst [vmem:[#allocation37_spill] sm:$0xff] %v9378_v63  ;;  %v12301_v10 = vsel %vm9385_vm4, 4294967295, %v12300_v10  ;;  %vm12302_vm8 = vcmask 523264   ;;  %vm9397_vm5 = vcmp.gt.f32.partialorder %v3215_v13, %v9229_v60  ;;  %v12303_v31 = vmov 0  ;;  %v9404_v29 = vpop.f32.mrb[47].mxu0 }
 0x2fa   : > { %v12304_v31 = vsel %vm9397_vm5, 4294967295, %v12303_v31  ;;  %v3243_v19 = vand.u32 2147483647, %v9378_v63  ;;  %v12306_v17 = vmov 0  ;;  %v3244_v13 = vand.u32 2147483647, %v9404_v29 }
 0x2fb   : > { %5380 = vmatmul.mubr.msk.bf16.gmra.mrb[100].mxu1 %vm12302_vm8, %v9392_v15  ;;  %12305 = vst [vmem:[#allocation28_spill] sm:$0xff] %v12304_v31  ;;  %vm9412_vm8 = vcmp.gt.f32.partialorder %v3216_v37, %v9237_v4  ;;  %v9419_v20 = vpop.f32.mrb[60].mxu1  ;;  %v12310_v3 = vmov 0  ;;  %v12314_v37 = vmov 0  ;;  %vm12318_vm13 = vcmask 523264   ;;  %v9458_v23 = vpop.f32.mrb[48].mxu0 }
 0x2fc   : > { %2528 = vmatprep.mubr.bf16.mxu1 %v11829_v58  ;;  %v12307_v17 = vsel %vm9412_vm8, 4294967295, %v12306_v17  ;;  %12309 = vst [vmem:[#allocation39_spill] sm:$0xff] %v9419_v20  ;;  %vm9422_vm6 = vcmp.gt.f32.partialorder %v3243_v19, %v9229_v60  ;;  %v3217_v5 = vand.u32 2147483647, %v9419_v20  ;;  %v9427_v54 = vpop.f32.mrb[61].mxu1  ;;  %vm9434_vm15 = vcmp.gt.f32.partialorder %v3244_v13, %v9237_v4  ;;  %12323 = vst [vmem:[#allocation17_spill] sm:$0xff] %v9458_v23 }
 0x2fd   : > { %12308 = vst [vmem:[#allocation44_spill] sm:$0xff] %v12307_v17  ;;  %v12311_v3 = vsel %vm9422_vm6, 4294967295, %v12310_v3  ;;  %12313 = vst [vmem:[#allocation8_spill] sm:$0xff] %v9427_v54  ;;  %v12315_v37 = vsel %vm9434_vm15, 4294967295, %v12314_v37  ;;  %v3218_v52 = vand.u32 2147483647, %v9427_v54 }
 0x2fe   : > { %12312 = vst [vmem:[#allocation9_spill] sm:$0xff] %v12311_v3  ;;  %12316 = vst [vmem:[#allocation31_spill] sm:$0xff] %v12315_v37  ;;  %v9439_v19 = vpop.f32.mrb[62].mxu1  ;;  %vm9448_vm0 = vcmp.gt.f32.partialorder %v3217_v5, %v9290_v0  ;;  %v12324_v26 = vmov 0  ;;  %v3439_v3 = vand.u32 2147483647, %v9458_v23 }
 0x2ff   : > { %12317 = vst [vmem:[#allocation26_spill] sm:$0xff] %v9439_v19  ;;  %5384 = vmatmul.mubr.msk.bf16.gmra.mrb[100].mxu0 %vm12318_vm13, %v9392_v15  ;;  %v12320_v43 = vsel %vm9448_vm0, 4294967295, %v12319_v43  ;;  %v3245_v13 = vand.u32 2147483647, %v9439_v19  ;;  %v9455_v48 = vpop.f32.mrb[63].mxu1  ;;  %vm9461_vm13 = vcmp.gt.f32.partialorder %v3218_v52, %v9304_v27  ;;  %v9469_v14 = vpop.f32.mrb[49].mxu0 }
 0x300   : > { %12321 = vst [vmem:[#allocation36_spill] sm:$0xff] %v12320_v43  ;;  %12322 = vst [vmem:[#allocation32_spill] sm:$0xff] %v9455_v48  ;;  %4019 = vmatprep.mubr.bf16.mxu0 %v11829_v58  ;;  %v12325_v26 = vsel %vm9461_vm13, 4294967295, %v12324_v26  ;;  %v3246_v5 = vand.u32 2147483647, %v9455_v48  ;;  %v12328_v7 = vmov 0  ;;  %vm9496_vm8 = vcmp.gt.f32.partialorder %v3439_v3, %v9229_v60 }
 0x301   : > { %12326 = vst [vmem:[#allocation13_spill] sm:$0xff] %v12325_v26  ;;  %12327 = vst [vmem:[#allocation22_spill] sm:$0xff] %v9469_v14  ;;  %vm9472_vm7 = vcmp.gt.f32.partialorder %v3245_v13, %v9290_v0  ;;  %v3440_v20 = vand.u32 2147483647, %v9469_v14  ;;  %v9477_v52 = vpop.f32.mrb[50].mxu0  ;;  %v12332_v31 = vmov 0 }
 0x302   : > { %v12329_v7 = vsel %vm9472_vm7, 4294967295, %v12328_v7  ;;  %12331 = vst [vmem:[#allocation53_spill] sm:$0xff] %v9477_v52  ;;  %vm9484_vm5 = vcmp.gt.f32.partialorder %v3246_v5, %v9304_v27  ;;  %vm12335_vm6 = vcmask 523264   ;;  %v9493_v13 = vld [vmem:[%s11440_s2] sm:$0xff]   ;;  %v12336_v19 = vmov 0  ;;  %v12341_v54 = vld [vmem:[#allocation12_spill] sm:$0xff] }
 0x303   : > { %12330 = vst [vmem:[#allocation21_spill] sm:$0xff] %v12329_v7  ;;  %v12333_v31 = vsel %vm9484_vm5, 4294967295, %v12332_v31  ;;  %5385 = vmatmul.mubr.msk.bf16.vlgmr.msra.gmra.mrb[104].mxu1 %vm12335_vm6, %v9122_v61  ;;  %v12337_v19 = vsel %vm9496_vm8, 4294967295, %v12336_v19  ;;  %v3467_v43 = vand.u32 2147483647, %v9477_v52  ;;  %v9503_v7 = vpop.f32.mrb[51].mxu0  ;;  %vm9519_vm15 = vcmp.gt.f32.partialorder %v3440_v20, %v9237_v4 }
 0x304   : > { %12334 = vst [vmem:[#allocation43_spill] sm:$0xff] %v12333_v31  ;;  %12338 = vst [vmem:[#allocation58_spill] sm:$0xff] %v12337_v19  ;;  %v12340_v61 = vld [vmem:[#allocation15_spill] sm:$0xff]  ;;  %v12343_v63 = vld [vmem:[#allocation20_spill] sm:$0xff]  ;;  %2538 = vmatprep.mubr.bf16.mxu1 %v11829_v58  ;;  %v12348_v5 = vmov 0  ;;  %v9526_v26 = vpop.f32.mrb[64].mxu1 }
 0x305   : > { %12339 = vst [vmem:[#allocation55_spill] sm:$0xff] %v9503_v7  ;;  %v12342_v48 = vpack.c.bf16 %v12340_v61, %v12341_v54  ;;  %vm12344_vm2 = vnez %v12343_v63  ;;  %v12345_v3 = vld [vmem:[#allocation16_spill] sm:$0xff]  ;;  %v12349_v5 = vsel %vm9519_vm15, 4294967295, %v12348_v5  ;;  %v3468_v23 = vand.u32 2147483647, %v9503_v7  ;;  %12351 = vst [vmem:[#allocation41_spill] sm:$0xff] %v9526_v26 }
 0x306   : > { %vm12346_vm0 = vnez %v12345_v3  ;;  %12350 = vst [vmem:[#allocation47_spill] sm:$0xff] %v12349_v5  ;;  %v12352_v54 = vld [vmem:[#allocation30_spill] sm:$0xff]  ;;  %v12353_v63 = vld [vmem:[#allocation25_spill] sm:$0xff]  ;;  %v12355_v3 = vld [vmem:[#allocation35_spill] sm:$0xff]  ;;  %vm9537_vm6 = vcmp.gt.f32.partialorder %v3467_v43, %v9229_v60  ;;  %v12360_v20 = vmov 0  ;;  %v9542_v17 = vpop.f32.mrb[65].mxu1 }
 0x307   : > { %vm12347_vm7 = vmpackc.low %vm12344_vm2, %vm12346_vm0  ;;  %v12354_v61 = vpack.c.bf16 %v12352_v54, %v12353_v63  ;;  %vm12356_vm2 = vnez %v12355_v3  ;;  %v12361_v20 = vsel %vm9537_vm6, 4294967295, %v12360_v20  ;;  %v3441_v31 = vand.u32 2147483647, %v9526_v26  ;;  %12363 = vst [vmem:[#allocation48_spill] sm:$0xff] %v9542_v17  ;;  %v9554_v43 = vpop.f32.mrb[66].mxu1  ;;  %v12373_v52 = vld [vmem:[#allocation27_spill] sm:$0xff] }
 0x308   : > { %5464 = vmatpush1.bf16.msk.msra.mxu1 %vm12347_vm7, %v12342_v48  ;;  %v12357_v48 = vld [vmem:[#allocation34_spill] sm:$0xff]  ;;  %12362 = vst [vmem:[#allocation52_spill] sm:$0xff] %v12361_v20  ;;  %vm9549_vm5 = vcmp.gt.f32.partialorder %v3468_v23, %v9237_v4  ;;  %v12364_v54 = vmov 0  ;;  %v3442_v63 = vand.u32 2147483647, %v9542_v17  ;;  %12367 = vst [vmem:[#allocation65_spill] sm:$0xff] %v9554_v43 }
 0x309   : > { %vm12358_vm0 = vnez %v12357_v48  ;;  %v12365_v54 = vsel %vm9549_vm5, 4294967295, %v12364_v54  ;;  %v3469_v23 = vand.u32 2147483647, %v9554_v43  ;;  %v9570_v48 = vpop.f32.mrb[67].mxu1  ;;  %v12374_v19 = vld [vmem:[#allocation24_spill] sm:$0xff]  ;;  %v12376_v14 = vld [vmem:[#allocation33_spill] sm:$0xff] }
 0x30a   : > { %vm12359_vm7 = vmpackc.low %vm12356_vm2, %vm12358_vm0  ;;  %12366 = vst [vmem:[#allocation69_spill] sm:$0xff] %v12365_v54  ;;  %vm12368_vm2 = vcmask 523264   ;;  %v12375_v20 = vpack.c.bf16 %v12373_v52, %v12374_v19  ;;  %v12378_v5 = vld [vmem:[#allocation29_spill] sm:$0xff]  ;;  %v12382_v54 = vld [vmem:[#allocation64_spill] sm:$0xff]  ;;  %v9588_v3 = vpop.f32.mrb[52].mxu0  ;;  %vm9591_vm5 = vcmp.gt.f32.partialorder %v3442_v63, %v9304_v27  ;;  %v12390_v19 = vmov 0 }
 0x30b   : > { %5467 = vmatprep.subr.msk.bf16.mxu1 %vm12359_vm7, %v12354_v61  ;;  %5393 = vmatmul.mubr.msk.bf16.vlgmr.msra.gmra.mrb[104].mxu0 %vm12368_vm2, %v9493_v13  ;;  %vm9563_vm7 = vcmp.gt.f32.partialorder %v3441_v31, %v9290_v0  ;;  %v12369_v61 = vmov 0  ;;  %12372 = vst [vmem:[#allocation70_spill] sm:$0xff] %v9570_v48  ;;  %vm12377_vm2 = vnez %v12376_v14  ;;  %vm12379_vm13 = vnez %v12378_v5  ;;  %v12381_v31 = vld [vmem:[#allocation66_spill] sm:$0xff]  ;;  %v12384_v37 = vld [vmem:[#allocation72_spill] sm:$0xff]  ;;  %12389 = vst [vmem:[#allocation15_spill] sm:$0xff] %v9588_v3  ;;  %v9608_v63 = vpop.f32.mrb[53].mxu0 }
 0x30c   : > { %v12370_v61 = vsel %vm9563_vm7, 4294967295, %v12369_v61  ;;  %vm12380_vm0 = vmpackc.low %vm12377_vm2, %vm12379_vm13  ;;  %v12383_v7 = vpack.c.bf16 %v12381_v31, %v12382_v54  ;;  %vm12385_vm8 = vnez %v12384_v37  ;;  %v12386_v33 = vld [vmem:[#allocation68_spill] sm:$0xff]  ;;  %v12391_v19 = vsel %vm9591_vm5, 4294967295, %v12390_v19  ;;  %v12393_v5 = vld [vmem:[#allocation46_spill] sm:$0xff]  ;;  %4029 = vmatprep.mubr.bf16.mxu0 %v11829_v58  ;;  %12401 = vst [vmem:[#allocation20_spill] sm:$0xff] %v9608_v63 }
 0x30d   : > { %12371 = vst [vmem:[#allocation74_spill] sm:$0xff] %v12370_v61  ;;  %5470 = vmatpush1.bf16.msk.msra.mxu1 %vm12380_vm0, %v12375_v20  ;;  %vm12387_vm6 = vnez %v12386_v33  ;;  %12392 = vst [vmem:[#allocation12_spill] sm:$0xff] %v12391_v19  ;;  %v3470_v14 = vand.u32 2147483647, %v9570_v48  ;;  %v12394_v20 = vld [vmem:[#allocation40_spill] sm:$0xff]  ;;  %v12396_v37 = vld [vmem:[#allocation51_spill] sm:$0xff] }
 0x30e   : > { %vm12388_vm15 = vmpackc.low %vm12385_vm8, %vm12387_vm6  ;;  %v12395_v54 = vpack.c.bf16 %v12393_v5, %v12394_v20  ;;  %vm12397_vm13 = vnez %v12396_v37  ;;  %v12398_v33 = vld [vmem:[#allocation50_spill] sm:$0xff]  ;;  %vm9611_vm6 = vcmp.gt.f32.partialorder %v3469_v23, %v9290_v0  ;;  %v12402_v31 = vmov 0  ;;  %v12405_v52 = vld [vmem:[#allocation77_spill] sm:$0xff] }
 0x30f   : > { %5488 = vmatpush1.bf16.msk.msra.mxu0 %vm12388_vm15, %v12383_v7  ;;  %vm12399_vm8 = vnez %v12398_v33  ;;  %v3663_v7 = vand.u32 2147483647, %v9588_v3  ;;  %v12403_v31 = vsel %vm9611_vm6, 4294967295, %v12402_v31  ;;  %v12406_v26 = vld [vmem:[#allocation73_spill] sm:$0xff]  ;;  %v12408_v20 = vld [vmem:[#allocation82_spill] sm:$0xff]  ;;  %v9624_v33 = vpop.f32.mrb[54].mxu0 }
 0x310   : > { %vm12400_vm15 = vmpackc.low %vm12397_vm13, %vm12399_vm8  ;;  %12404 = vst [vmem:[#allocation16_spill] sm:$0xff] %v12403_v31  ;;  %v12407_v5 = vpack.c.bf16 %v12405_v52, %v12406_v26  ;;  %vm12409_vm0 = vnez %v12408_v20  ;;  %v12410_v37 = vld [vmem:[#allocation78_spill] sm:$0xff]  ;;  %v12414_v23 = vmov 0  ;;  %vm12417_vm4 = vcmask 523264   ;;  %v9640_v26 = vld [vmem:[%s11440_s2 + $0x8] sm:$0xff]   ;;  %v9650_v20 = vpop.f32.mrb[55].mxu0 }
 0x311   : > { %5473 = vmatprep.subr.msk.bf16.mxu1 %vm12400_vm15, %v12395_v54  ;;  %vm12411_vm2 = vnez %v12410_v37  ;;  %v3664_v54 = vand.u32 2147483647, %v9608_v63  ;;  %12413 = vst [vmem:[#allocation30_spill] sm:$0xff] %v9624_v33  ;;  %vm9631_vm15 = vcmp.gt.f32.partialorder %v3470_v14, %v9304_v27  ;;  %5386 = vmatmul.mubr.msk.bf16.gmra.mrb[108].mxu1 %vm12417_vm4, %v9187_v55  ;;  %v12418_v52 = vmov 0  ;;  %v12421_v55 = vld [vmem:[#allocation42_spill] sm:$0xff]  ;;  %v12424_v61 = vld [vmem:[#allocation49_spill] sm:$0xff] }
 0x312   : > { %vm12412_vm13 = vmpackc.low %vm12409_vm0, %vm12411_vm2  ;;  %v12415_v23 = vsel %vm9631_vm15, 4294967295, %v12414_v23  ;;  %vm9643_vm0 = vcmp.gt.f32.partialorder %v3663_v7, %v9229_v60  ;;  %2548 = vmatprep.mubr.bf16.mxu1 %v11829_v58  ;;  %v12422_v37 = vld [vmem:[#allocation38_spill] sm:$0xff]  ;;  %vm12425_vm2 = vnez %v12424_v61  ;;  %v12426_v31 = vld [vmem:[#allocation45_spill] sm:$0xff]  ;;  %v12429_v14 = vmov 0 }
 0x313   : > { %5491 = vmatprep.subr.msk.bf16.mxu0 %vm12412_vm13, %v12407_v5  ;;  %12416 = vst [vmem:[#allocation25_spill] sm:$0xff] %v12415_v23  ;;  %v12419_v52 = vsel %vm9643_vm0, 4294967295, %v12418_v52  ;;  %v3691_v5 = vand.u32 2147483647, %v9624_v33  ;;  %v12423_v7 = vpack.c.bf16 %v12421_v55, %v12422_v37  ;;  %vm12427_vm13 = vnez %v12426_v31  ;;  %v9673_v33 = vpop.f32.mrb[68].mxu1  ;;  %v12432_v19 = vld [vmem:[#allocation60_spill] sm:$0xff] }
 0x314   : > { %12420 = vst [vmem:[#allocation35_spill] sm:$0xff] %v12419_v52  ;;  %vm12428_vm8 = vmpackc.low %vm12425_vm2, %vm12427_vm13  ;;  %vm9666_vm7 = vcmp.gt.f32.partialorder %v3664_v54, %v9237_v4  ;;  %v3692_v43 = vand.u32 2147483647, %v9650_v20  ;;  %v12433_v55 = vld [vmem:[#allocation56_spill] sm:$0xff]  ;;  %v12435_v61 = vld [vmem:[#allocation63_spill] sm:$0xff]  ;;  %v12448_v3 = vmov 0 }
 0x315   : > { %5476 = vmatpush1.bf16.msk.msra.mxu1 %vm12428_vm8, %v12423_v7  ;;  %v12430_v14 = vsel %vm9666_vm7, 4294967295, %v12429_v14  ;;  %12431 = vst [vmem:[#allocation34_spill] sm:$0xff] %v9673_v33  ;;  %v12434_v37 = vpack.c.bf16 %v12432_v19, %v12433_v55  ;;  %vm12436_vm4 = vnez %v12435_v61  ;;  %v12437_v31 = vld [vmem:[#allocation61_spill] sm:$0xff]  ;;  %v12440_v54 = vld [vmem:[#allocation75_spill] sm:$0xff]  ;;  %v12443_v17 = vld [vmem:[#allocation80_spill] sm:$0xff]  ;;  %vm9692_vm15 = vcmp.gt.f32.partialorder %v3691_v5, %v9229_v60  ;;  %v9697_v55 = vpop.f32.mrb[69].mxu1 }
 0x316   : > { %vm12438_vm2 = vnez %v12437_v31  ;;  %v12441_v7 = vld [vmem:[#allocation71_spill] sm:$0xff]  ;;  %vm12444_vm13 = vnez %v12443_v17  ;;  %v12445_v48 = vld [vmem:[#allocation76_spill] sm:$0xff]  ;;  %v12449_v3 = vsel %vm9692_vm15, 4294967295, %v12448_v3  ;;  %v3665_v19 = vand.u32 2147483647, %v9673_v33  ;;  %v12451_v61 = vld [vmem:[#allocation90_spill] sm:$0xff] }
 0x317   : > { %vm12439_vm8 = vmpackc.low %vm12436_vm4, %vm12438_vm2  ;;  %v12442_v23 = vpack.c.bf16 %v12440_v54, %v12441_v7  ;;  %vm12446_vm6 = vnez %v12445_v48  ;;  %12450 = vst [vmem:[#allocation27_spill] sm:$0xff] %v12449_v3  ;;  %v12454_v63 = vld [vmem:[#allocation97_spill] sm:$0xff]  ;;  %v12456_v54 = vld [vmem:[#allocation94_spill] sm:$0xff]  ;;  %v12459_v60 = vmov 0  ;;  %v3666_v17 = vand.u32 2147483647, %v9697_v55 }
 0x318   : > { %5479 = vmatprep.subr.msk.bf16.mxu1 %vm12439_vm8, %v12434_v37  ;;  %vm12447_vm5 = vmpackc.low %vm12444_vm13, %vm12446_vm6  ;;  %v12452_v37 = vld [vmem:[#allocation85_spill] sm:$0xff]  ;;  %vm12455_vm4 = vnez %v12454_v63  ;;  %vm12457_vm2 = vnez %v12456_v54  ;;  %vm9712_vm6 = vcmp.gt.f32.partialorder %v3692_v43, %v9237_v4  ;;  %v9717_v48 = vpop.f32.mrb[70].mxu1  ;;  %vm12462_vm13 = vcmask 523264   ;;  %v12467_v7 = vld [vmem:[#allocation54_spill] sm:$0xff] }
 0x319   : > { %5494 = vmatpush1.bf16.msk.msra.mxu0 %vm12447_vm5, %v12442_v23  ;;  %v12453_v31 = vpack.c.bf16 %v12451_v61, %v12452_v37  ;;  %vm12458_vm8 = vmpackc.low %vm12455_vm4, %vm12457_vm2  ;;  %v12460_v60 = vsel %vm9712_vm6, 4294967295, %v12459_v60  ;;  %12461 = vst [vmem:[#allocation24_spill] sm:$0xff] %v9717_v48  ;;  %vm9726_vm2 = vcmp.gt.f32.partialorder %v3665_v19, %v9290_v0  ;;  %v12463_v63 = vmov 0  ;;  %v9733_v23 = vpop.f32.mrb[71].mxu1  ;;  %v12466_v5 = vld [vmem:[#allocation57_spill] sm:$0xff]  ;;  %v12469_v37 = vld [vmem:[#allocation62_spill] sm:$0xff] }
 0x31a   : > { %5394 = vmatmul.mubr.msk.bf16.gmra.mrb[108].mxu0 %vm12462_vm13, %v9640_v26  ;;  %v12464_v63 = vsel %vm9726_vm2, 4294967295, %v12463_v63  ;;  %v3693_v4 = vand.u32 2147483647, %v9717_v48  ;;  %v12468_v61 = vpack.c.bf16 %v12466_v5, %v12467_v7  ;;  %vm9745_vm4 = vcmp.gt.f32.partialorder %v3666_v17, %v9304_v27  ;;  %v12477_v33 = vld [vmem:[#allocation87_spill] sm:$0xff]  ;;  %v12478_v5 = vld [vmem:[#allocation81_spill] sm:$0xff]  ;;  %v12490_v3 = vld [vmem:[#allocation92_spill] sm:$0xff] }
 0x31b   : > { %5497 = vmatprep.subr.msk.bf16.mxu0 %vm12458_vm8, %v12453_v31  ;;  %12465 = vst [vmem:[#allocation33_spill] sm:$0xff] %v12464_v63  ;;  %vm12470_vm8 = vnez %v12469_v37  ;;  %v12471_v31 = vld [vmem:[#allocation59_spill] sm:$0xff]  ;;  %4038 = vmatprep.mubr.bf16.mxu0 %v11829_v58  ;;  %v12474_v19 = vmov 0  ;;  %v3694_v54 = vand.u32 2147483647, %v9733_v23  ;;  %v12479_v7 = vpack.c.bf16 %v12477_v33, %v12478_v5  ;;  %v12480_v37 = vld [vmem:[#allocation93_spill] sm:$0xff] }
 0x31c   : > { %vm12472_vm13 = vnez %v12471_v31  ;;  %v12475_v19 = vsel %vm9745_vm4, 4294967295, %v12474_v19  ;;  %vm12481_vm0 = vnez %v12480_v37  ;;  %v12482_v31 = vld [vmem:[#allocation89_spill] sm:$0xff]  ;;  %v12486_v48 = vld [vmem:[#allocation83_spill] sm:$0xff]  ;;  %vm12491_vm15 = vnez %v12490_v3 }
 0x31d   : > { %vm12473_vm5 = vmpackc.low %vm12470_vm8, %vm12472_vm13  ;;  %12476 = vst [vmem:[#allocation29_spill] sm:$0xff] %v12475_v19  ;;  %vm12483_vm8 = vnez %v12482_v31  ;;  %v12488_v52 = vld [vmem:[#allocation95_spill] sm:$0xff]  ;;  %vm9769_vm6 = vcmp.gt.f32.partialorder %v3693_v4, %v9290_v0  ;;  %v12493_v43 = vmov 0  ;;  %v12496_v33 = vld [vmem:[#allocation105_spill] sm:$0xff]  ;;  %v12503_v0 = vmov 0 }
 0x31e   : > { %5482 = vmatpush1.bf16.msk.msra.mxu1 %vm12473_vm5, %v12468_v61  ;;  %vm12484_vm5 = vmpackc.low %vm12481_vm0, %vm12483_vm8  ;;  %v12485_v61 = vld [vmem:[#allocation88_spill] sm:$0xff]  ;;  %vm12489_vm13 = vnez %v12488_v52  ;;  %v12494_v43 = vsel %vm9769_vm6, 4294967295, %v12493_v43  ;;  %v12497_v5 = vld [vmem:[#allocation101_spill] sm:$0xff]  ;;  %v12635_v16 = vmov 0  ;;  %v12647_v34 = vmov 0 }
 0x31f   : > { %5509 = vmatprep.subr.msk.bf16.mxu1 %vm12484_vm5, %v12479_v7  ;;  %v12487_v17 = vpack.c.bf16 %v12485_v61, %v12486_v48  ;;  %vm12492_vm7 = vmpackc.low %vm12489_vm13, %vm12491_vm15  ;;  %12495 = vst [vmem:[#allocation66_spill] sm:$0xff] %v12494_v43  ;;  %v12498_v37 = vpack.c.bf16 %v12496_v33, %v12497_v5  ;;  %v12500_v7 = vld [vmem:[#allocation109_spill] sm:$0xff]  ;;  %vm12506_vm5 = vcmask 523264   ;;  %v12507_v52 = vld [vmem:[#allocation104_spill] sm:$0xff]  ;;  %v12673_v21 = vmov 0 }
 0x320   : > { %vm12501_vm0 = vnez %v12500_v7  ;;  %5387 = vmatmul.mubr.msk.bf16.gmra.mrb[112].mxu1 %vm12506_vm5, %v9275_v24  ;;  %v9795_v3 = vld [vmem:[%s11440_s2 + $0x10] sm:$0xff]   ;;  %v12510_v4 = vld [vmem:[#allocation111_spill] sm:$0xff]  ;;  %v12518_v33 = vld [vmem:[#allocation136_spill] sm:$0xff] }
 0x321   : > { %5500 = vmatpush1.bf16.msk.msra.mxu0 %vm12492_vm7, %v12487_v17  ;;  %vm12502_vm8 = vmpackc.low %vm8648_vm11, %vm12501_vm0  ;;  %vm9786_vm7 = vcmp.gt.f32.partialorder %v3694_v54, %v9304_v27  ;;  %2558 = vmatprep.mubr.bf16.mxu1 %v11829_v58  ;;  %v12508_v27 = vld [vmem:[#allocation99_spill] sm:$0xff]  ;;  %vm12511_vm13 = vnez %v12510_v4  ;;  %v12512_v54 = vld [vmem:[#allocation108_spill] sm:$0xff]  ;;  %vm12519_vm5 = vnez %v12518_v33  ;;  %vm12523_vm11 = vcmask 523264  }
 0x322   : > { %5503 = vmatprep.subr.msk.bf16.mxu0 %vm12502_vm8, %v12498_v37  ;;  %v12504_v0 = vsel %vm9786_vm7, 4294967295, %v12503_v0  ;;  %v12509_v48 = vpack.c.bf16 %v12507_v52, %v12508_v27  ;;  %vm12513_vm0 = vnez %v12512_v54  ;;  %v12515_v24 = vld [vmem:[#allocation129_spill] sm:$0xff]  ;;  %v12520_v5 = vld [vmem:[#allocation134_spill] sm:$0xff]  ;;  %5395 = vmatmul.mubr.msk.bf16.gmra.mrb[112].mxu0 %vm12523_vm11, %v9795_v3  ;;  %vm12524_vm6 = vmmov %vm12523_vm11 }
 0x323   : > { %12505 = vst [vmem:[#allocation64_spill] sm:$0xff] %v12504_v0  ;;  %vm12514_vm8 = vmpackc.low %vm12511_vm13, %vm12513_vm0  ;;  %v12516_v61 = vld [vmem:[#allocation125_spill] sm:$0xff]  ;;  %vm12521_vm15 = vnez %v12520_v5  ;;  %4046 = vmatprep.mubr.bf16.mxu0 %v11829_v58  ;;  %v9826_v37 = vld [vmem:[%s11440_s2 + $0x18] sm:$0xff]   ;;  %v12543_v5 = vsub.s32 1, %v6467_v1 }
 0x324   : > { %v12517_v17 = vpack.c.bf16 %v12515_v24, %v12516_v61  ;;  %vm12522_vm2 = vmpackc.low %vm12519_vm5, %vm12521_vm15  ;;  %v2693_v31 = vld [vmem:[%s11441_s3 + $0x10] sm:$0xff]  ;;  %v12528_v7 = vld [vmem:[#allocation79_spill] sm:$0xff] }
 0x325   : > { %5506 = vmatpush1.bf16.msk.msra.mxu0 %vm12514_vm8, %v12509_v48  ;;  %vm12525_vm13 = vmmov %vm12524_vm6  ;;  %v12530_v27 = vld [vmem:[#allocation91_spill] sm:$0xff]  ;;  %v12532_v48 = vld [vmem:[#allocation86_spill] sm:$0xff]  ;;  %v2766_v4 = vrot.slane %v2693_v31, %v12234_v28 }
 0x326   : > { %5533 = vmatprep.subr.msk.bf16.mxu0 %vm12522_vm2, %v12517_v17  ;;  %vm12526_vm2 = vmmov %vm12524_vm6  ;;  %vm12533_vm15 = vnez %v12532_v48  ;;  %v12535_v54 = vld [vmem:[#allocation103_spill] sm:$0xff]  ;;  %v12536_v24 = vld [vmem:[#allocation98_spill] sm:$0xff] }
 0x327   : > { %v12537_v61 = vpack.c.bf16 %v12535_v54, %v12536_v24  ;;  %v12538_v17 = vld [vmem:[#allocation110_spill] sm:$0xff]  ;;  %v12547_v48 = vld [vmem:[#allocation96_spill] sm:$0xff]  ;;  %v12549_v43 = vld [vmem:[#allocation107_spill] sm:$0xff]  ;;  %v9870_v24 = vrot.slane %v2766_v4, %v12234_v28  ;;  %v9890_v4 = vpop.f32.mrb[56].mxu0 }
 0x328   : > { %5388 = vmatmul.mubr.msk.bf16.gmra.mrb[116].mxu1 %vm12524_vm6, %v9392_v15  ;;  %v12527_v15 = vld [vmem:[#allocation84_spill] sm:$0xff]  ;;  %vm12531_vm6 = vnez %v12530_v27  ;;  %vm12539_vm0 = vnez %v12538_v17  ;;  %v12540_v33 = vld [vmem:[#allocation106_spill] sm:$0xff]  ;;  %v12568_v0 = vld [vmem:[#allocation133_spill] sm:$0xff] }
 0x329   : > { %4086 = vmatprep.mubr.bf16.mxu1 %v11829_v58  ;;  %v12529_v52 = vpack.c.bf16 %v12527_v15, %v12528_v7  ;;  %vm12534_vm11 = vmpackc.low %vm12531_vm6, %vm12533_vm15  ;;  %vm12541_vm8 = vnez %v12540_v33  ;;  %v2770_v15 = vrot.slane %v2693_v31, %v12543_v5  ;;  %v12545_v7 = vld [vmem:[#allocation7_spill] sm:$0xff]  ;;  %v12551_v54 = vld [vmem:[#allocation102_spill] sm:$0xff] }
 0x32a   : > { %5396 = vmatmul.mubr.msk.bf16.gmra.mrb[116].mxu0 %vm12525_vm13, %v9826_v37  ;;  %vm12542_vm5 = vmpackc.low %vm12539_vm0, %vm12541_vm8  ;;  %v2774_v27 = vrot.slane %v2693_v31, %v12545_v7  ;;  %vm12552_vm6 = vnez %v12551_v54  ;;  %v12555_v33 = vld [vmem:[#allocation117_spill] sm:$0xff]  ;;  %v12556_v5 = vld [vmem:[#allocation114_spill] sm:$0xff] }
 0x32b   : > { %4157 = vmatprep.mubr.bf16.mxu0 %v11829_v58  ;;  %vm12544_vm13 = vmmov %vm12526_vm2  ;;  %v12557_v7 = vpack.c.bf16 %v12555_v33, %v12556_v5  ;;  %v12558_v19 = vld [vmem:[#allocation120_spill] sm:$0xff]  ;;  %v12566_v54 = vld [vmem:[#allocation135_spill] sm:$0xff]  ;;  %v9904_v33 = vpop.f32.mrb[57].mxu0 }
 0x32c   : > { %v9912_v5 = vrot.slane %v2774_v27, %v12234_v28 }
 0x330   : > { %5397 = vmatmul.mubr.msk.bf16.vlgmr.msra.gmra.mrb[120].mxu1 %vm12526_vm2, %v9493_v13  ;;  %vm12550_vm2 = vnez %v12549_v43  ;;  %v12563_v43 = vld [vmem:[#allocation128_spill] sm:$0xff] }
 0x331   : > { %4096 = vmatprep.mubr.bf16.mxu1 %v11829_v58  ;;  %5512 = vmatpush1.bf16.msk.msra.mxu1 %vm12534_vm11, %v12529_v52  ;;  %v12546_v52 = vld [vmem:[#allocation100_spill] sm:$0xff]  ;;  %vm12553_vm15 = vmpackc.low %vm12550_vm2, %vm12552_vm6  ;;  %vm12559_vm11 = vnez %v12558_v19  ;;  %v12571_v19 = vpack.c.bf16 %v8847_v22, %v8804_v18  ;;  %vm12572_vm6 = vnez %v12160_v8  ;;  %v12576_v18 = vld [vmem:[#allocation115_spill] sm:$0xff] }
 0x332   : > { %5515 = vmatprep.subr.msk.bf16.mxu1 %vm12542_vm5, %v12537_v61  ;;  %5401 = vmatmul.mubr.msk.bf16.vlgmr.msra.gmra.mrb[120].mxu0 %vm12544_vm13, %v9493_v13  ;;  %v12548_v63 = vpack.c.bf16 %v12546_v52, %v12547_v48  ;;  %v12554_v61 = vsub.s32 3, %v6467_v1  ;;  %v12560_v52 = vld [vmem:[#allocation118_spill] sm:$0xff]  ;;  %v12564_v48 = vld [vmem:[#allocation123_spill] sm:$0xff]  ;;  %vm12567_vm5 = vnez %v12566_v54  ;;  %vm12569_vm13 = vnez %v12568_v0  ;;  %v12577_v22 = vld [vmem:[#allocation112_spill] sm:$0xff] }
 0x333   : > { %4167 = vmatprep.mubr.bf16.mxu0 %v11829_v58  ;;  %vm12561_vm0 = vnez %v12560_v52  ;;  %vm12570_vm2 = vmpackc.low %vm12567_vm5, %vm12569_vm13  ;;  %v2884_v0 = vand.u32 2147483647, %v9904_v33  ;;  %v12579_v8 = vld [vmem:[#allocation119_spill] sm:$0xff]  ;;  %v12584_v52 = vmov 0 }
 0x334   : > { %v2778_v17 = vrot.slane %v2693_v31, %v12554_v61  ;;  %vm12562_vm8 = vmpackc.low %vm12559_vm11, %vm12561_vm0  ;;  %v9893_v31 = vrot.slane %v2770_v15, %v12234_v28  ;;  %v2883_v61 = vand.u32 2147483647, %v9890_v4  ;;  %vm12575_vm0 = vcmask 523264   ;;  %v9909_v15 = vpop.f32.mrb[58].mxu0 }
 0x335   : > { %5518 = vmatpush1.bf16.msk.msra.mxu1 %vm12553_vm15, %v12548_v63  ;;  %v12565_v63 = vpack.c.bf16 %v12563_v43, %v12564_v48  ;;  %vm12573_vm15 = vnez %v12151_v40  ;;  %v12578_v40 = vpack.c.bf16 %v12576_v18, %v12577_v22  ;;  %v2911_v43 = vand.u32 2147483647, %v9909_v15  ;;  %v9931_v48 = vpop.f32.mrb[59].mxu0  ;;  %v12587_v18 = vld [vmem:[#allocation122_spill] sm:$0xff] }
 0x336   : > { %5521 = vmatprep.subr.msk.bf16.mxu1 %vm12562_vm8, %v12557_v7  ;;  %vm12574_vm11 = vmpackc.low %vm12572_vm6, %vm12573_vm15  ;;  %vm12580_vm8 = vnez %v12579_v8  ;;  %v12581_v7 = vld [vmem:[#allocation116_spill] sm:$0xff]  ;;  %v9936_v54 = vrot.slane %v2778_v17, %v12234_v28  ;;  %v12594_v8 = vpack.c.bf16 %v8824_v32, %v8785_v12  ;;  %v2912_v17 = vand.u32 2147483647, %v9931_v48 }
 0x337   : > { %5536 = vmatpush1.bf16.msk.msra.mxu0 %vm12570_vm2, %v12565_v63  ;;  %vm12582_vm5 = vnez %v12581_v7  ;;  %vm9924_vm2 = vcmp.gt.f32.partialorder %v2883_v61, %v9870_v24  ;;  %v9933_v63 = vpop.f32.mrb[72].mxu1  ;;  %v12591_v61 = vld [vmem:[#allocation131_spill] sm:$0xff]  ;;  %v12600_v12 = vpack.c.bf16 %v8938_v35, %v8866_v11  ;;  %v12604_v32 = vmov 0 }
 0x338   : > { %5539 = vmatprep.subr.msk.bf16.mxu0 %vm12574_vm11, %v12571_v19  ;;  %5398 = vmatmul.mubr.msk.bf16.gmra.mrb[124].mxu1 %vm12575_vm0, %v9640_v26  ;;  %vm12583_vm13 = vmpackc.low %vm12580_vm8, %vm12582_vm5  ;;  %v12585_v52 = vsel %vm9924_vm2, 4294967295, %v12584_v52  ;;  %v12586_v19 = vld [vmem:[#allocation127_spill] sm:$0xff]  ;;  %vm12592_vm15 = vnez %v12591_v61  ;;  %vm12595_vm0 = vnez %v12156_v51  ;;  %vm12596_vm8 = vnez %v12147_v42  ;;  %v12614_v61 = vld [vmem:[#allocation130_spill] sm:$0xff] }
 0x339   : > { %4106 = vmatprep.mubr.bf16.mxu1 %v11829_v58  ;;  %5524 = vmatpush1.bf16.msk.msra.mxu1 %vm12583_vm13, %v12578_v40  ;;  %v12588_v22 = vpack.c.bf16 %v12586_v19, %v12587_v18  ;;  %v12589_v40 = vld [vmem:[#allocation132_spill] sm:$0xff]  ;;  %vm12597_vm5 = vmpackc.low %vm12595_vm0, %vm12596_vm8  ;;  %vm9955_vm13 = vcmp.gt.f32.partialorder %v2884_v0, %v9893_v31  ;;  %v2885_v19 = vand.u32 2147483647, %v9933_v63  ;;  %v9963_v18 = vpop.f32.mrb[73].mxu1  ;;  %vm9974_vm0 = vcmp.gt.f32.partialorder %v2911_v43, %v9870_v24 }
 0x33a   : > { %vm12590_vm6 = vnez %v12589_v40  ;;  %v12605_v32 = vsel %vm9974_vm0, 4294967295, %v12604_v32  ;;  %v2886_v42 = vand.u32 2147483647, %v9963_v18  ;;  %v9979_v51 = vpop.f32.mrb[74].mxu1  ;;  %vm12606_vm8 = vcmask 523264   ;;  %v12611_v43 = vld [vmem:[#allocation124_spill] sm:$0xff] }
 0x33b   : > { %vm12593_vm11 = vmpackc.low %vm12590_vm6, %vm12592_vm15  ;;  %5542 = vmatpush1.bf16.msk.msra.mxu0 %vm12597_vm5, %v12594_v8  ;;  %vm12601_vm6 = vnez %v12176_v50  ;;  %vm12602_vm15 = vnez %v12170_v59  ;;  %v12609_v35 = vmov 0  ;;  %v2913_v59 = vand.u32 2147483647, %v9979_v51  ;;  %v10000_v0 = vpop.f32.mrb[75].mxu1  ;;  %v12616_v8 = vld [vmem:[#allocation126_spill] sm:$0xff] }
 0x33c   : > { %5527 = vmatprep.subr.msk.bf16.mxu1 %vm12593_vm11, %v12588_v22  ;;  %vm12603_vm11 = vmpackc.low %vm12601_vm6, %vm12602_vm15  ;;  %5402 = vmatmul.mubr.msk.bf16.gmra.mrb[124].mxu0 %vm12606_vm8, %v9640_v26  ;;  %vm9988_vm6 = vcmp.gt.f32.partialorder %v2912_v17, %v9893_v31  ;;  %vm9993_vm15 = vcmp.gt.f32.partialorder %v2885_v19, %v9912_v5  ;;  %v12612_v22 = vld [vmem:[#allocation121_spill] sm:$0xff]  ;;  %vm12617_vm8 = vnez %v12616_v8  ;;  %vm10016_vm0 = vcmp.gt.f32.partialorder %v2886_v42, %v9936_v54 }
 0x33d   : > { %5545 = vmatprep.subr.msk.bf16.mxu0 %vm12603_vm11, %v12600_v12  ;;  %v12610_v35 = vsel %vm9993_vm15, 4294967295, %v12609_v35  ;;  %v12613_v40 = vpack.c.bf16 %v12611_v43, %v12612_v22  ;;  %vm12615_vm11 = vnez %v12614_v61  ;;  %4177 = vmatprep.mubr.bf16.mxu0 %v11829_v58  ;;  %v2914_v19 = vand.u32 2147483647, %v10000_v0  ;;  %v12625_v22 = vld [vmem:[#allocation138_spill] sm:$0xff]  ;;  %v12638_v61 = vld [vmem:[#allocation137_spill] sm:$0xff] }
 0x33e   : > { %vm12618_vm5 = vmpackc.low %vm12615_vm11, %vm12617_vm8  ;;  %v12621_v43 = vpack.c.bf16 %v9287_v6, %v9251_v39  ;;  %v12623_v42 = vpack.c.bf16 %v8924_v2, %v8857_v49  ;;  %vm12624_vm11 = vnez %v12174_v9  ;;  %vm12626_vm8 = vnez %v12625_v22 }
 0x33f   : > { %5530 = vmatpush1.bf16.msk.msra.mxu1 %vm12618_vm5, %v12613_v40  ;;  %vm12622_vm5 = vmpackc.low %vm9335_vm9, %vm9294_vm12  ;;  %v10039_v40 = vpop.f32.mrb[60].mxu0  ;;  %vm10042_vm4 = vcmp.gt.f32.partialorder %v2913_v59, %v9912_v5  ;;  %v12628_v39 = vmov 0  ;;  %v12630_v6 = vpack.c.bf16 %v9011_v62, %v8969_v44  ;;  %v10086_v59 = vpop.f32.mrb[76].mxu1  ;;  %v12639_v8 = vpack.c.bf16 %v8994_v25, %v12638_v61 }
 0x340   : > { %5557 = vmatprep.subr.msk.bf16.mxu1 %vm12622_vm5, %v12621_v43  ;;  %vm12627_vm2 = vmpackc.low %vm12624_vm11, %vm12626_vm8  ;;  %v12629_v39 = vsel %vm10042_vm4, 4294967295, %v12628_v39  ;;  %v3219_v49 = vand.u32 2147483647, %v10039_v40  ;;  %v10055_v2 = vpop.f32.mrb[61].mxu0  ;;  %vm12634_vm5 = vcmask 523264   ;;  %12637 = vst [vmem:[#allocation72_spill] sm:$0xff] %v10086_v59  ;;  %v12643_v25 = vpack.c.bf16 %v9356_v56, %v9320_v36 }
 0x341   : > { %5548 = vmatpush1.bf16.msk.msra.mxu0 %vm12627_vm2, %v12623_v42  ;;  %vm12631_vm12 = vmpackc.low %vm9110_vm1, %vm9100_vm3  ;;  %vm10062_vm2 = vcmp.gt.f32.partialorder %v2914_v19, %v9936_v54  ;;  %5399 = vmatmul.mubr.msk.bf16.gmra.mrb[128].mxu1 %vm12634_vm5, %v9795_v3  ;;  %v3220_v44 = vand.u32 2147483647, %v10055_v2  ;;  %v10069_v62 = vpop.f32.mrb[62].mxu0  ;;  %v12641_v19 = vmov 0  ;;  %v3221_v22 = vand.u32 2147483647, %v10086_v59 }
 0x342   : > { %5551 = vmatprep.subr.msk.bf16.mxu0 %vm12631_vm12, %v12630_v6  ;;  %4116 = vmatprep.mubr.bf16.mxu1 %v11829_v58  ;;  %vm10077_vm1 = vcmp.gt.f32.partialorder %v3219_v49, %v9870_v24  ;;  %v3247_v53 = vand.u32 2147483647, %v10069_v62  ;;  %v10084_v46 = vpop.f32.mrb[63].mxu0  ;;  %vm12640_vm11 = vmpackc.low %vm9105_vm14, %vm9095_vm10  ;;  %v10105_v6 = vpop.f32.mrb[77].mxu1  ;;  %vm12644_vm10 = vnez %v12301_v10  ;;  %vm12645_vm14 = vnez %v12294_v41 }
 0x343   : > { %v12636_v16 = vsel %vm10077_vm1, 4294967295, %v12635_v16  ;;  %vm10097_vm8 = vcmp.gt.f32.partialorder %v3220_v44, %v9893_v31  ;;  %v3248_v43 = vand.u32 2147483647, %v10084_v46  ;;  %vm12646_vm12 = vmpackc.low %vm12644_vm10, %vm12645_vm14  ;;  %v3222_v30 = vand.u32 2147483647, %v10105_v6  ;;  %v10121_v49 = vpop.f32.mrb[78].mxu1 }
 0x344   : > { %v12642_v19 = vsel %vm10097_vm8, 4294967295, %v12641_v19  ;;  %vm10116_vm5 = vcmp.gt.f32.partialorder %v3247_v53, %v9870_v24  ;;  %12649 = vst [vmem:[#allocation68_spill] sm:$0xff] %v10121_v49  ;;  %v12651_v36 = vmov 0  ;;  %vm10135_vm14 = vcmp.gt.f32.partialorder %v3221_v22, %v9912_v5  ;;  %v10142_v44 = vpop.f32.mrb[79].mxu1 }
 0x345   : > { %5554 = vmatpush1.bf16.msk.msra.mxu0 %vm12640_vm11, %v12639_v8  ;;  %v12648_v34 = vsel %vm10116_vm5, 4294967295, %v12647_v34  ;;  %vm12650_vm11 = vcmask 523264   ;;  %vm10130_vm10 = vcmp.gt.f32.partialorder %v3248_v43, %v9893_v31  ;;  %v12653_v56 = vmov 0  ;;  %v10157_v43 = vpop.f32.mrb[64].mxu0  ;;  %v10196_v27 = vpop.f32.mrb[80].mxu1 }
 0x346   : > { %5581 = vmatprep.subr.msk.bf16.mxu0 %vm12646_vm12, %v12643_v25  ;;  %5403 = vmatmul.mubr.msk.bf16.gmra.mrb[128].mxu0 %vm12650_vm11, %v9795_v3  ;;  %v12652_v36 = vsel %vm10130_vm10, 4294967295, %v12651_v36  ;;  %v12654_v56 = vsel %vm10135_vm14, 4294967295, %v12653_v56  ;;  %v3249_v41 = vand.u32 2147483647, %v10121_v49  ;;  %vm10150_vm11 = vcmp.gt.f32.partialorder %v3222_v30, %v9936_v54  ;;  %12658 = vst [vmem:[#allocation40_spill] sm:$0xff] %v10157_v43  ;;  %v10165_v10 = vpop.f32.mrb[65].mxu0 }
 0x347   : > { %12655 = vst [vmem:[#allocation46_spill] sm:$0xff] %v12654_v56  ;;  %4187 = vmatprep.mubr.bf16.mxu0 %v11829_v58  ;;  %v12656_v53 = vmov 0  ;;  %v3250_v61 = vand.u32 2147483647, %v10142_v44  ;;  %v12659_v22 = vmov 0  ;;  %v12662_v30 = vmov 0 }
 0x348   : > { %v12657_v53 = vsel %vm10150_vm11, 4294967295, %v12656_v53  ;;  %vm10160_vm9 = vcmp.gt.f32.partialorder %v3249_v41, %v9912_v5  ;;  %v3443_v25 = vand.u32 2147483647, %v10157_v43  ;;  %vm12664_vm15 = vcmask 523264   ;;  %v10179_v8 = vpop.f32.mrb[66].mxu0  ;;  %12669 = vst [vmem:[#allocation73_spill] sm:$0xff] %v10196_v27 }
 0x349   : > { %v12660_v22 = vsel %vm10160_vm9, 4294967295, %v12659_v22  ;;  %vm10172_vm3 = vcmp.gt.f32.partialorder %v3250_v61, %v9936_v54  ;;  %5400 = vmatmul.mubr.msk.bf16.gmra.mrb[132].mxu1 %vm12664_vm15, %v9826_v37  ;;  %v3444_v41 = vand.u32 2147483647, %v10165_v10  ;;  %12665 = vst [vmem:[#allocation50_spill] sm:$0xff] %v10179_v8  ;;  %v12666_v61 = vmov 0  ;;  %v10194_v42 = vpop.f32.mrb[67].mxu0 }
 0x34a   : > { %12661 = vst [vmem:[#allocation51_spill] sm:$0xff] %v12660_v22  ;;  %v12663_v30 = vsel %vm10172_vm3, 4294967295, %v12662_v30  ;;  %4228 = vmatprep.mubr.bf16.mxu1 %v11829_v58  ;;  %vm10187_vm12 = vcmp.gt.f32.partialorder %v3443_v25, %v9870_v24  ;;  %v3471_v50 = vand.u32 2147483647, %v10179_v8  ;;  %v12670_v12 = vmov 0  ;;  %v10207_v56 = vpop.f32.mrb[81].mxu1 }
 0x34b   : > { %v12667_v61 = vsel %vm10187_vm12, 4294967295, %v12666_v61  ;;  %vm10199_vm15 = vcmp.gt.f32.partialorder %v3444_v41, %v9893_v31  ;;  %v3472_v7 = vand.u32 2147483647, %v10194_v42  ;;  %v3445_v1 = vand.u32 2147483647, %v10196_v27  ;;  %12672 = vst [vmem:[#allocation82_spill] sm:$0xff] %v10207_v56 }
 0x34c   : > { %12668 = vst [vmem:[#allocation77_spill] sm:$0xff] %v12667_v61  ;;  %v12671_v12 = vsel %vm10199_vm15, 4294967295, %v12670_v12  ;;  %vm10210_vm4 = vcmp.gt.f32.partialorder %v3471_v50, %v9870_v24  ;;  %v3446_v22 = vand.u32 2147483647, %v10207_v56  ;;  %v10215_v41 = vpop.f32.mrb[82].mxu1  ;;  %vm12677_vm14 = vcmask 523264  }
 0x34d   : > { %v12674_v21 = vsel %vm10210_vm4, 4294967295, %v12673_v21  ;;  %12676 = vst [vmem:[#allocation42_spill] sm:$0xff] %v10215_v41  ;;  %vm10224_vm11 = vcmp.gt.f32.partialorder %v3472_v7, %v9893_v31  ;;  %v12678_v25 = vmov 0  ;;  %vm10229_vm3 = vcmp.gt.f32.partialorder %v3445_v1, %v9912_v5  ;;  %v10236_v43 = vpop.f32.mrb[83].mxu1  ;;  %v10251_v49 = vpop.f32.mrb[68].mxu0  ;;  %vm12695_vm15 = vmmov %vm12677_vm14  ;;  %v12736_v8 = vld [vmem:[#allocation18_spill] sm:$0xff] }
 0x34e   : > { %12675 = vst [vmem:[#allocation78_spill] sm:$0xff] %v12674_v21  ;;  %5404 = vmatmul.mubr.msk.bf16.gmra.mrb[132].mxu0 %vm12677_vm14, %v9826_v37  ;;  %v12679_v25 = vsel %vm10224_vm11, 4294967295, %v12678_v25  ;;  %v12680_v50 = vmov 0  ;;  %v3473_v59 = vand.u32 2147483647, %v10215_v41  ;;  %12683 = vst [vmem:[#allocation49_spill] sm:$0xff] %v10236_v43  ;;  %vm10244_vm9 = vcmp.gt.f32.partialorder %v3446_v22, %v9936_v54 }
 0x34f   : > { %v12681_v50 = vsel %vm10229_vm3, 4294967295, %v12680_v50  ;;  %4299 = vmatprep.mubr.bf16.mxu0 %v11829_v58  ;;  %v12684_v1 = vmov 0  ;;  %v3474_v7 = vand.u32 2147483647, %v10236_v43  ;;  %12687 = vst [vmem:[#allocation60_spill] sm:$0xff] %v10251_v49  ;;  %v12688_v27 = vmov 0 }
 0x350   : > { %12682 = vst [vmem:[#allocation38_spill] sm:$0xff] %v12681_v50  ;;  %v12685_v1 = vsel %vm10244_vm9, 4294967295, %v12684_v1  ;;  %vm10254_vm12 = vcmp.gt.f32.partialorder %v3473_v59, %v9912_v5  ;;  %v3667_v41 = vand.u32 2147483647, %v10251_v49  ;;  %v10259_v21 = vpop.f32.mrb[69].mxu0  ;;  %v12692_v22 = vmov 0 }
 0x351   : > { %12686 = vst [vmem:[#allocation45_spill] sm:$0xff] %v12685_v1  ;;  %v12689_v27 = vsel %vm10254_vm12, 4294967295, %v12688_v27  ;;  %12691 = vst [vmem:[#allocation63_spill] sm:$0xff] %v10259_v21  ;;  %vm10266_vm4 = vcmp.gt.f32.partialorder %v3474_v7, %v9936_v54  ;;  %5405 = vmatmul.mubr.msk.bf16.vlgmr.msra.gmra.mrb[136].mxu1 %vm12695_vm15, %v9493_v13  ;;  %v3668_v59 = vand.u32 2147483647, %v10259_v21  ;;  %v10273_v61 = vpop.f32.mrb[70].mxu0  ;;  %v12697_v7 = vpack.c.bf16 %v9270_v45, %v9234_v38 }
 0x352   : > { %12690 = vst [vmem:[#allocation56_spill] sm:$0xff] %v12689_v27  ;;  %v12693_v22 = vsel %vm10266_vm4, 4294967295, %v12692_v22  ;;  %12696 = vst [vmem:[#allocation75_spill] sm:$0xff] %v10273_v61  ;;  %4238 = vmatprep.mubr.bf16.mxu1 %v11829_v58  ;;  %vm12698_vm14 = vnez %v12276_v47  ;;  %vm12699_vm3 = vnez %v12263_v57  ;;  %vm10289_vm15 = vcmp.gt.f32.partialorder %v3667_v41, %v9870_v24  ;;  %v10298_v56 = vpop.f32.mrb[84].mxu1  ;;  %v12706_v38 = vld [vmem:[#allocation23_spill] sm:$0xff]  ;;  %v12710_v47 = vld [vmem:[#allocation44_spill] sm:$0xff] }
 0x353   : > { %12694 = vst [vmem:[#allocation61_spill] sm:$0xff] %v12693_v22  ;;  %vm12700_vm12 = vmpackc.low %vm12698_vm14, %vm12699_vm3  ;;  %v12701_v50 = vmov 0  ;;  %v3695_v27 = vand.u32 2147483647, %v10273_v61  ;;  %v10296_v22 = vpop.f32.mrb[71].mxu0  ;;  %v12707_v45 = vpack.c.bf16 %v9404_v29, %v12706_v38  ;;  %v12708_v57 = vld [vmem:[#allocation31_spill] sm:$0xff]  ;;  %vm10309_vm11 = vcmp.gt.f32.partialorder %v3668_v59, %v9893_v31 }
 0x354   : > { %5560 = vmatpush1.bf16.msk.msra.mxu1 %vm12700_vm12, %v12697_v7  ;;  %v12702_v50 = vsel %vm10289_vm15, 4294967295, %v12701_v50  ;;  %12704 = vst [vmem:[#allocation80_spill] sm:$0xff] %v10296_v22  ;;  %12705 = vst [vmem:[#allocation76_spill] sm:$0xff] %v10298_v56  ;;  %vm12709_vm3 = vnez %v12708_v57  ;;  %vm12711_vm12 = vnez %v12710_v47  ;;  %v3696_v7 = vand.u32 2147483647, %v10296_v22  ;;  %v10317_v61 = vpop.f32.mrb[85].mxu1 }
 0x355   : > { %12703 = vst [vmem:[#allocation71_spill] sm:$0xff] %v12702_v50  ;;  %vm12712_vm14 = vmpackc.low %vm12709_vm3, %vm12711_vm12  ;;  %v3669_v49 = vand.u32 2147483647, %v10298_v56  ;;  %vm10320_vm9 = vcmp.gt.f32.partialorder %v3695_v27, %v9870_v24  ;;  %v12715_v29 = vmov 0  ;;  %v3670_v38 = vand.u32 2147483647, %v10317_v61 }
 0x356   : > { %5563 = vmatprep.subr.msk.bf16.mxu1 %vm12712_vm14, %v12707_v45  ;;  %v12716_v29 = vsel %vm10320_vm9, 4294967295, %v12715_v29  ;;  %v10325_v59 = vpop.f32.mrb[86].mxu1  ;;  %vm12718_vm3 = vcmask 523264   ;;  %vm10334_vm14 = vcmp.gt.f32.partialorder %v3696_v7, %v9893_v31  ;;  %v12721_v24 = vmov 0  ;;  %v12723_v1 = vld [vmem:[#allocation37_spill] sm:$0xff]  ;;  %v12724_v50 = vld [vmem:[#allocation14_spill] sm:$0xff] }
 0x357   : > { %12717 = vst [vmem:[#allocation90_spill] sm:$0xff] %v12716_v29  ;;  %5409 = vmatmul.mubr.msk.bf16.vlgmr.msra.gmra.mrb[136].mxu0 %vm12718_vm3, %v9493_v13  ;;  %vm10339_vm4 = vcmp.gt.f32.partialorder %v3669_v49, %v9912_v5  ;;  %v3697_v27 = vand.u32 2147483647, %v10325_v59  ;;  %v10346_v47 = vpop.f32.mrb[87].mxu1  ;;  %v12725_v29 = vpack.c.bf16 %v12723_v1, %v12724_v50  ;;  %v12726_v43 = vld [vmem:[#allocation9_spill] sm:$0xff]  ;;  %v12728_v31 = vld [vmem:[#allocation28_spill] sm:$0xff]  ;;  %vm12737_vm1 = vnez %v12736_v8 }
 0x358   : > { %v12722_v24 = vsel %vm10339_vm4, 4294967295, %v12721_v24  ;;  %vm12727_vm3 = vnez %v12726_v43  ;;  %vm12729_vm12 = vnez %v12728_v31  ;;  %v12731_v49 = vld [vmem:[#allocation67_spill] sm:$0xff]  ;;  %vm10369_vm10 = vcmp.gt.f32.partialorder %v3670_v38, %v9936_v54  ;;  %v12744_v31 = vld [vmem:[#allocation69_spill] sm:$0xff]  ;;  %4309 = vmatprep.mubr.bf16.mxu0 %v11829_v58  ;;  %v12752_v57 = vld [vmem:[#allocation8_spill] sm:$0xff] }
 0x359   : > { %vm12730_vm15 = vmpackc.low %vm12727_vm3, %vm12729_vm12  ;;  %v12732_v7 = vld [vmem:[#allocation11_spill] sm:$0xff]  ;;  %v12739_v43 = vmov 0  ;;  %v3698_v50 = vand.u32 2147483647, %v10346_v47  ;;  %v12749_v38 = vmov 0 }
 0x35a   : > { %5566 = vmatpush1.bf16.msk.msra.mxu1 %vm12730_vm15, %v12725_v29  ;;  %v12733_v21 = vpack.c.bf16 %v12731_v49, %v12732_v7  ;;  %v12734_v22 = vld [vmem:[#allocation19_spill] sm:$0xff]  ;;  %v12740_v43 = vsel %vm10369_vm10, 4294967295, %v12739_v43  ;;  %v12742_v29 = vld [vmem:[#allocation22_spill] sm:$0xff]  ;;  %vm10386_vm15 = vcmp.gt.f32.partialorder %v3697_v27, %v9912_v5  ;;  %v2311_v49 = vpop.f32.mrb[72].mxu0  ;;  %v12751_v7 = vld [vmem:[#allocation32_spill] sm:$0xff]  ;;  %v12759_v5 = vmov 0 }
 0x35b   : > { %vm12735_vm9 = vnez %v12734_v22  ;;  %v12741_v22 = vld [vmem:[#allocation55_spill] sm:$0xff]  ;;  %v12750_v38 = vsel %vm10386_vm15, 4294967295, %v12749_v38  ;;  %v12753_v1 = vpack.c.bf16 %v12751_v7, %v12752_v57  ;;  %v2313_v27 = vpop.f32.mrb[73].mxu0  ;;  %v12762_v57 = vld [vmem:[#allocation53_spill] sm:$0xff]  ;;  %v12775_v49 = vld [vmem:[#allocation26_spill] sm:$0xff] }
 0x35c   : > { %vm12738_vm5 = vmpackc.low %vm12735_vm9, %vm12737_vm1  ;;  %v12743_v8 = vpack.c.bf16 %v12741_v22, %v12742_v29  ;;  %vm12745_vm9 = vnez %v12744_v31  ;;  %v12754_v56 = vld [vmem:[#allocation43_spill] sm:$0xff]  ;;  %v12756_v22 = vld [vmem:[#allocation13_spill] sm:$0xff] }
 0x35d   : > { %5584 = vmatpush1.bf16.msk.msra.mxu0 %vm12738_vm5, %v12733_v21  ;;  %v12746_v21 = vld [vmem:[#allocation47_spill] sm:$0xff]  ;;  %vm12755_vm12 = vnez %v12754_v56  ;;  %vm12757_vm3 = vnez %v12756_v22  ;;  %v2315_v56 = vpop.f32.mrb[74].mxu0  ;;  %v12770_v31 = vld [vmem:[#allocation20_spill] sm:$0xff]  ;;  %v12778_v27 = vld [vmem:[#allocation21_spill] sm:$0xff] }
 0x35e   : > { %vm12747_vm1 = vnez %v12746_v21  ;;  %vm12758_vm8 = vmpackc.low %vm12755_vm12, %vm12757_vm3  ;;  %v12771_v21 = vpack.c.bf16 %v9650_v20, %v12770_v31  ;;  %vm12773_vm12 = vnez %v12430_v14  ;;  %v12776_v7 = vld [vmem:[#allocation39_spill] sm:$0xff]  ;;  %vm12779_vm15 = vnez %v12778_v27  ;;  %v12780_v56 = vld [vmem:[#allocation36_spill] sm:$0xff] }
 0x35f   : > { %vm12748_vm5 = vmpackc.low %vm12745_vm9, %vm12747_vm1  ;;  %5587 = vmatprep.subr.msk.bf16.mxu0 %vm12758_vm8, %v12753_v1  ;;  %vm10403_vm1 = vcmp.gt.f32.partialorder %v3698_v50, %v9936_v54  ;;  %v12763_v1 = vld [vmem:[#allocation17_spill] sm:$0xff]  ;;  %v12767_v54 = vld [vmem:[#allocation58_spill] sm:$0xff]  ;;  %v2317_v50 = vpop.f32.mrb[75].mxu0  ;;  %v12777_v22 = vpack.c.bf16 %v12775_v49, %v12776_v7  ;;  %vm12781_vm10 = vnez %v12780_v56 }
 0x360   : > { %5569 = vmatprep.subr.msk.bf16.mxu1 %vm12748_vm5, %v12743_v8  ;;  %v12760_v5 = vsel %vm10403_vm1, 4294967295, %v12759_v5  ;;  %vm12761_vm5 = vcmask 523264   ;;  %v12764_v29 = vpack.c.bf16 %v12762_v57, %v12763_v1  ;;  %v12765_v8 = vld [vmem:[#allocation52_spill] sm:$0xff]  ;;  %vm12768_vm3 = vnez %v12767_v54  ;;  %vm12782_vm1 = vmpackc.low %vm12779_vm15, %vm12781_vm10  ;;  %v12783_v57 = vld [vmem:[#allocation70_spill] sm:$0xff] }
 0x361   : > { %5406 = vmatmul.mubr.msk.bf16.gmra.mrb[140].mxu1 %vm12761_vm5, %v9640_v26  ;;  %vm12766_vm8 = vnez %v12765_v8  ;;  %vm12772_vm5 = vnez %v12460_v60  ;;  %5590 = vmatpush1.bf16.msk.msra.mxu0 %vm12782_vm1, %v12777_v22  ;;  %v12784_v1 = vld [vmem:[#allocation48_spill] sm:$0xff]  ;;  %v12786_v8 = vld [vmem:[#allocation25_spill] sm:$0xff]  ;;  %v12792_v14 = vld [vmem:[#allocation30_spill] sm:$0xff] }
 0x362   : > { %4248 = vmatprep.mubr.bf16.mxu1 %v11829_v58  ;;  %vm12769_vm9 = vmpackc.low %vm12766_vm8, %vm12768_vm3  ;;  %v12788_v20 = vld [vmem:[#allocation12_spill] sm:$0xff]  ;;  %v12793_v60 = vld [vmem:[#allocation15_spill] sm:$0xff] }
 0x363   : > { %5572 = vmatpush1.bf16.msk.msra.mxu1 %vm12769_vm9, %v12764_v29  ;;  %vm12774_vm4 = vmpackc.low %vm12772_vm5, %vm12773_vm12  ;;  %v12785_v29 = vpack.c.bf16 %v12783_v57, %v12784_v1  ;;  %vm12787_vm9 = vnez %v12786_v8  ;;  %vm12789_vm8 = vnez %v12788_v20  ;;  %v12794_v54 = vpack.c.bf16 %v12792_v14, %v12793_v60  ;;  %v12795_v50 = vld [vmem:[#allocation27_spill] sm:$0xff]  ;;  %v12802_v49 = vld [vmem:[#allocation65_spill] sm:$0xff]  ;;  %v2321_v57 = vpop.f32.mrb[76].mxu0 }
 0x364   : > { %5575 = vmatprep.subr.msk.bf16.mxu1 %vm12774_vm4, %v12771_v21  ;;  %vm12790_vm3 = vmpackc.low %vm12787_vm9, %vm12789_vm8  ;;  %vm12791_vm4 = vcmask 523264   ;;  %vm12796_vm12 = vnez %v12795_v50  ;;  %v12797_v31 = vld [vmem:[#allocation35_spill] sm:$0xff]  ;;  %v12800_v21 = vpack.c.bf16 %v9931_v48, %v9904_v33  ;;  %v12803_v7 = vld [vmem:[#allocation41_spill] sm:$0xff]  ;;  %v12810_v1 = vpack.c.bf16 %v9733_v23, %v9697_v55  ;;  %v2323_v28 = vpop.f32.mrb[77].mxu0 }
 0x365   : > { %5593 = vmatprep.subr.msk.bf16.mxu0 %vm12790_vm3, %v12785_v29  ;;  %5410 = vmatmul.mubr.msk.bf16.gmra.mrb[140].mxu0 %vm12791_vm4, %v9640_v26  ;;  %vm12798_vm10 = vnez %v12797_v31  ;;  %vm12801_vm1 = vmpackc.low %vm9988_vm6, %vm9955_vm13  ;;  %v12804_v22 = vpack.c.bf16 %v12802_v49, %v12803_v7  ;;  %v12805_v27 = vld [vmem:[#allocation16_spill] sm:$0xff]  ;;  %v12807_v56 = vld [vmem:[#allocation74_spill] sm:$0xff]  ;;  %vm12815_vm13 = vcmask 523264   ;;  %v2325_v11 = vpop.f32.mrb[78].mxu0  ;;  %v12824_v23 = vpack.c.bf16 %v10000_v0, %v9963_v18 }
 0x366   : > { %vm12799_vm15 = vmpackc.low %vm12796_vm12, %vm12798_vm10  ;;  %4319 = vmatprep.mubr.bf16.mxu0 %v11829_v58  ;;  %vm12806_vm5 = vnez %v12805_v27  ;;  %vm12808_vm9 = vnez %v12807_v56  ;;  %v12812_v48 = vld [vmem:[#allocation29_spill] sm:$0xff]  ;;  %v2327_v29 = vpop.f32.mrb[79].mxu0  ;;  %v12816_v8 = vld [vmem:[#allocation24_spill] sm:$0xff]  ;;  %v12834_v7 = vpack.c.bf16 %v10084_v46, %v10055_v2 }
 0x367   : > { %5578 = vmatpush1.bf16.msk.msra.mxu1 %vm12799_vm15, %v12794_v54  ;;  %vm12809_vm8 = vmpackc.low %vm12806_vm5, %vm12808_vm9  ;;  %vm12813_vm3 = vnez %v12812_v48  ;;  %v12817_v20 = vld [vmem:[#allocation34_spill] sm:$0xff]  ;;  %v12821_v55 = vld [vmem:[#allocation33_spill] sm:$0xff]  ;;  %v2331_v54 = vpop.f32.mrb[80].mxu0  ;;  %vm12832_vm9 = vnez %v12585_v52  ;;  %v12847_v52 = vpack.c.bf16 %v10194_v42, %v10165_v10  ;;  %v12901_v48 = vpack.c.bf16 %v10346_v47, %v10317_v61 }
 0x368   : > { %5605 = vmatprep.subr.msk.bf16.mxu1 %vm12801_vm1, %v12800_v21  ;;  %5596 = vmatpush1.bf16.msk.msra.mxu0 %vm12809_vm8, %v12804_v22  ;;  %vm12814_vm4 = vmpackc.low %vm9786_vm7, %vm12813_vm3  ;;  %v12818_v14 = vpack.c.bf16 %v12816_v8, %v12817_v20  ;;  %v12819_v60 = vld [vmem:[#allocation66_spill] sm:$0xff]  ;;  %vm12822_vm12 = vnez %v12821_v55  ;;  %v2333_v50 = vpop.f32.mrb[81].mxu0  ;;  %v12830_v21 = vpack.c.bf16 %v9909_v15, %v9890_v4  ;;  %vm12835_vm3 = vnez %v12652_v36  ;;  %v12865_v2 = vld [vmem:[#allocation63_spill] sm:$0xff] }
 0x369   : > { %5599 = vmatprep.subr.msk.bf16.mxu0 %vm12814_vm4, %v12810_v1  ;;  %5407 = vmatmul.mubr.msk.bf16.gmra.mrb[144].mxu1 %vm12815_vm13, %v9795_v3  ;;  %vm12820_vm6 = vnez %v12819_v60  ;;  %vm12825_vm7 = vmpackc.low %vm10062_vm2, %vm10016_vm0  ;;  %v2335_v31 = vpop.f32.mrb[82].mxu0  ;;  %vm12831_vm2 = vnez %v12605_v32  ;;  %vm12836_vm4 = vnez %v12642_v19  ;;  %v12839_v4 = vpack.c.bf16 %v10069_v62, %v10039_v40  ;;  %v12861_v40 = vld [vmem:[#allocation77_spill] sm:$0xff]  ;;  %v12869_v46 = vld [vmem:[#allocation72_spill] sm:$0xff] }
 0x36a   : > { %4258 = vmatprep.mubr.bf16.mxu1 %v11829_v58  ;;  %vm12823_vm10 = vmpackc.low %vm12820_vm6, %vm12822_vm12  ;;  %v2337_v18 = vpop.f32.mrb[83].mxu0  ;;  %vm12840_vm12 = vnez %v12648_v34  ;;  %v12843_v15 = vpack.c.bf16 %v9979_v51, %v9933_v63  ;;  %v12851_v32 = vpack.c.bf16 %v10142_v44, %v10105_v6  ;;  %v12856_v63 = vld [vmem:[#allocation50_spill] sm:$0xff]  ;;  %v12857_v51 = vld [vmem:[#allocation40_spill] sm:$0xff] }
 0x36b   : > { %vm12826_vm15 = vmmov %vm12815_vm13  ;;  %v2341_v0 = vpop.f32.mrb[84].mxu0  ;;  %v12871_v42 = vld [vmem:[#allocation51_spill] sm:$0xff]  ;;  %v12873_v6 = vld [vmem:[#allocation46_spill] sm:$0xff] }
 0x36c   : > { %5602 = vmatpush1.bf16.msk.msra.mxu0 %vm12823_vm10, %v12818_v14  ;;  %vm12827_vm1 = vmmov %vm12815_vm13  ;;  %v2343_v17 = vpop.f32.mrb[85].mxu0  ;;  %vm12841_vm10 = vnez %v12636_v16  ;;  %v12868_v16 = vld [vmem:[#allocation68_spill] sm:$0xff]  ;;  %v12876_v34 = vld [vmem:[#allocation49_spill] sm:$0xff] }
 0x36d   : > { %5629 = vmatprep.subr.msk.bf16.mxu0 %vm12825_vm7, %v12824_v23  ;;  %5411 = vmatmul.mubr.msk.bf16.gmra.mrb[144].mxu0 %vm12826_vm15, %v9795_v3  ;;  %vm12828_vm5 = vmmov %vm12827_vm1  ;;  %v2345_v9 = vpop.f32.mrb[86].mxu0  ;;  %vm12844_vm15 = vnez %v12629_v39  ;;  %v12864_v39 = vld [vmem:[#allocation80_spill] sm:$0xff]  ;;  %v12870_v19 = vpack.c.bf16 %v12868_v16, %v12869_v46  ;;  %v12877_v36 = vld [vmem:[#allocation82_spill] sm:$0xff] }
 0x36e   : > { %4329 = vmatprep.mubr.bf16.mxu0 %v11829_v58  ;;  %vm12829_vm0 = vmmov %vm12827_vm1  ;;  %v2347_v49 = vpop.f32.mrb[87].mxu0  ;;  %v12866_v62 = vpack.c.bf16 %v12864_v39, %v12865_v2  ;;  %v12878_v10 = vpack.c.bf16 %v12876_v34, %v12877_v36  ;;  %v12879_v44 = vld [vmem:[#allocation61_spill] sm:$0xff]  ;;  %v12888_v45 = vld [vmem:[#allocation90_spill] sm:$0xff] }
 0x36f   : > { %vm12833_vm8 = vmpackc.low %vm12831_vm2, %vm12832_vm9  ;;  %vm12849_vm2 = vnez %v12671_v12  ;;  %v12859_v12 = vld [vmem:[#allocation78_spill] sm:$0xff]  ;;  %v12890_v22 = vld [vmem:[#allocation71_spill] sm:$0xff] }
 0x370   : > { %vm12837_vm13 = vmpackc.low %vm12835_vm3, %vm12836_vm4  ;;  %vm12853_vm3 = vnez %v12657_v53  ;;  %v12881_v53 = vld [vmem:[#allocation45_spill] sm:$0xff]  ;;  %v12893_v27 = vld [vmem:[#allocation42_spill] sm:$0xff] }
 0x371   : > { %5408 = vmatmul.mubr.msk.bf16.gmra.mrb[148].mxu1 %vm12827_vm1, %v9826_v37  ;;  %vm12838_vm6 = vmmov %vm12829_vm0  ;;  %vm12845_vm1 = vnez %v12610_v35  ;;  %v12858_v35 = vpack.c.bf16 %v12856_v63, %v12857_v51  ;;  %v12894_v56 = vld [vmem:[#allocation73_spill] sm:$0xff]  ;;  %v12896_v1 = vld [vmem:[#allocation56_spill] sm:$0xff] }
 0x372   : > { %4370 = vmatprep.mubr.bf16.mxu1 %v11829_v58  ;;  %vm12842_vm7 = vmpackc.low %vm12840_vm12, %vm12841_vm10  ;;  %vm12862_vm12 = vnez %v12861_v40  ;;  %v12895_v57 = vpack.c.bf16 %v12893_v27, %v12894_v56  ;;  %v12898_v33 = vld [vmem:[#allocation38_spill] sm:$0xff]  ;;  %v12906_v28 = vld [vmem:[#allocation76_spill] sm:$0xff] }
 0x373   : > { %v12907_v11 = vpack.c.bf16 %v10325_v59, %v12906_v28 }
 0x375   : > { %5412 = vmatmul.mubr.msk.bf16.gmra.mrb[148].mxu0 %vm12828_vm5, %v9826_v37  ;;  %vm12846_vm5 = vmpackc.low %vm12844_vm15, %vm12845_vm1  ;;  %vm12872_vm15 = vnez %v12871_v42  ;;  %vm12874_vm1 = vnez %v12873_v6 }
 0x376   : > { %4441 = vmatprep.mubr.bf16.mxu0 %v11829_v58 }
 0x379   : > { %5413 = vmatmul.mubr.msk.bf16.vlgmr.msra.gmra.mrb[152].mxu1 %vm12829_vm0, %v9493_v13  ;;  %vm12848_vm0 = vnez %v12679_v25  ;;  %v12886_v25 = vld [vmem:[#allocation60_spill] sm:$0xff] }
 0x37a   : > { %4380 = vmatprep.mubr.bf16.mxu1 %v11829_v58  ;;  %5608 = vmatpush1.bf16.msk.msra.mxu1 %vm12833_vm8, %v12830_v21  ;;  %vm12850_vm9 = vmpackc.low %vm12848_vm0, %vm12849_vm2  ;;  %vm12852_vm8 = vnez %v12663_v30  ;;  %vm12880_vm0 = vnez %v12879_v44  ;;  %vm12882_vm2 = vnez %v12881_v53  ;;  %v12885_v30 = vld [vmem:[#allocation75_spill] sm:$0xff] }
 0x37b   : > { %5611 = vmatprep.subr.msk.bf16.mxu1 %vm12837_vm13, %v12834_v7  ;;  %vm12854_vm4 = vmpackc.low %vm12852_vm8, %vm12853_vm3  ;;  %v12887_v41 = vpack.c.bf16 %v12885_v30, %v12886_v25  ;;  %vm12891_vm8 = vnez %v12890_v22 }
 0x37c   : > { %vm12855_vm13 = vmmov %vm12838_vm6 }
 0x37d   : > { %5417 = vmatmul.mubr.msk.bf16.vlgmr.msra.gmra.mrb[152].mxu0 %vm12838_vm6, %v9493_v13  ;;  %vm12860_vm6 = vnez %v12859_v12 }
 0x37e   : > { %5614 = vmatpush1.bf16.msk.msra.mxu1 %vm12842_vm7, %v12839_v4  ;;  %5632 = vmatpush1.bf16.msk.msra.mxu0 %vm12846_vm5, %v12843_v15  ;;  %vm12863_vm10 = vmpackc.low %vm12860_vm6, %vm12862_vm12  ;;  %vm12902_vm12 = vnez %v12760_v5 }
 0x37f   : > { %5617 = vmatprep.subr.msk.bf16.mxu1 %vm12850_vm9, %v12847_v52  ;;  %5635 = vmatprep.subr.msk.bf16.mxu0 %vm12854_vm4, %v12851_v32  ;;  %vm12867_vm7 = vmpackc.low %vm10334_vm14, %vm10309_vm11  ;;  %vm12889_vm14 = vnez %v12888_v45  ;;  %vm12897_vm4 = vnez %v12896_v1 }
 0x380   : > { %4451 = vmatprep.mubr.bf16.mxu0 %v11829_v58  ;;  %vm12875_vm5 = vmpackc.low %vm12872_vm15, %vm12874_vm1  ;;  %vm12908_vm1 = vnez %v12750_v38 }
 0x381   : > { %5414 = vmatmul.mubr.msk.bf16.gmra.mrb[156].mxu1 %vm12855_vm13, %v9640_v26  ;;  %vm12883_vm9 = vmpackc.low %vm12880_vm0, %vm12882_vm2 }
 0x382   : > { %4390 = vmatprep.mubr.bf16.mxu1 %v11829_v58  ;;  %5620 = vmatpush1.bf16.msk.msra.mxu1 %vm12863_vm10, %v12858_v35  ;;  %vm12884_vm11 = vmmov %vm12855_vm13  ;;  %vm12899_vm13 = vnez %v12898_v33  ;;  %vm12903_vm10 = vnez %v12740_v43 }
 0x383   : > { %5623 = vmatprep.subr.msk.bf16.mxu1 %vm12867_vm7, %v12866_v62  ;;  %5638 = vmatpush1.bf16.msk.msra.mxu0 %vm12875_vm5, %v12870_v19  ;;  %vm12892_vm3 = vmpackc.low %vm12889_vm14, %vm12891_vm8  ;;  %vm12909_vm5 = vnez %v12722_v24 }
 0x384   : > { %5641 = vmatprep.subr.msk.bf16.mxu0 %vm12883_vm9, %v12878_v10  ;;  %vm12900_vm6 = vmpackc.low %vm12897_vm4, %vm12899_vm13 }
 0x385   : > { %5418 = vmatmul.mubr.msk.bf16.gmra.mrb[156].mxu0 %vm12884_vm11, %v9640_v26  ;;  %vm12904_vm7 = vmpackc.low %vm12902_vm12, %vm12903_vm10 }
 0x386   : > { %5626 = vmatpush1.bf16.msk.msra.mxu1 %vm12892_vm3, %v12887_v41  ;;  %4461 = vmatprep.mubr.bf16.mxu0 %v11829_v58  ;;  %vm12905_vm15 = vmmov %vm12884_vm11 }
 0x387   : > { %5644 = vmatpush1.bf16.msk.msra.mxu0 %vm12900_vm6, %v12895_v57  ;;  %vm12910_vm0 = vmpackc.low %vm12908_vm1, %vm12909_vm5 }
 0x388   : > { %5647 = vmatprep.subr.msk.bf16.mxu0 %vm12904_vm7, %v12901_v48  ;;  %vm12911_vm2 = vmmov %vm12884_vm11 }
 0x389   : > { %5415 = vmatmul.mubr.msk.bf16.gmra.mrb[160].mxu1 %vm12905_vm15, %v9795_v3  ;;  %vm12912_vm9 = vmmov %vm12911_vm2 }
 0x38a   : > { %4400 = vmatprep.mubr.bf16.mxu1 %v11829_v58  ;;  %vm12913_vm11 = vmmov %vm12911_vm2 }
 0x38b   : > { %5650 = vmatpush1.bf16.msk.msra.mxu0 %vm12910_vm0, %v12907_v11  ;;  %vm12914_vm14 = vmmov %vm12911_vm2 }
 0x38c   : > { %vm12915_vm8 = vmmov %vm12911_vm2 }
 0x38d   : > { %5419 = vmatmul.mubr.msk.bf16.gmra.mrb[160].mxu0 %vm12911_vm2, %v9795_v3  ;;  %vm12916_vm3 = vmmov %vm12911_vm2 }
 0x38e   : > { %4471 = vmatprep.mubr.bf16.mxu0 %v11829_v58  ;;  %vm12917_vm4 = vmmov %vm12911_vm2 }
 0x38f   : > { %vm12918_vm13 = vmmov %vm12911_vm2 }
 0x390   : > { %vm12919_vm6 = vmmov %vm12911_vm2 }
 0x391   : > { %5416 = vmatmul.mubr.msk.bf16.gmra.mrb[164].mxu1 %vm12912_vm9, %v9826_v37  ;;  %vm12920_vm12 = vmmov %vm12911_vm2 }
 0x392   : > { %4512 = vmatprep.mubr.bf16.mxu1 %v11829_v58  ;;  %vm12921_vm10 = vmmov %vm12911_vm2 }
 0x395   : > { %5420 = vmatmul.mubr.msk.bf16.gmra.mrb[164].mxu0 %vm12913_vm11, %v9826_v37 }
 0x396   : > { %4583 = vmatprep.mubr.bf16.mxu0 %v11829_v58 }
 0x399   : > { %5421 = vmatmul.mubr.msk.bf16.vlgmr.msra.gmra.mrb[168].mxu1 %vm12914_vm14, %v9493_v13 }
 0x39a   : > { %4522 = vmatprep.mubr.bf16.mxu1 %v11829_v58 }
 0x39d   : > { %5425 = vmatmul.mubr.msk.bf16.vlgmr.msra.gmra.mrb[168].mxu0 %vm12915_vm8, %v9493_v13 }
 0x39e   : > { %4591 = vmatprep.mubr.bf16.mxu0 %v11829_v58 }
 0x3a1   : > { %5422 = vmatmul.mubr.msk.bf16.gmra.mrb[172].mxu1 %vm12916_vm3, %v9640_v26 }
 0x3a2   : > { %4532 = vmatprep.mubr.bf16.mxu1 %v11829_v58 }
 0x3a5   : > { %5426 = vmatmul.mubr.msk.bf16.gmra.mrb[172].mxu0 %vm12917_vm4, %v9640_v26 }
 0x3a6   : > { %4599 = vmatprep.mubr.bf16.mxu0 %v11829_v58 }
 0x3a9   : > { %5423 = vmatmul.mubr.msk.bf16.gmra.mrb[176].mxu1 %vm12918_vm13, %v9795_v3 }
 0x3aa   : > { %4542 = vmatprep.mubr.bf16.mxu1 %v11829_v58 }
 0x3ad   : > { %5427 = vmatmul.mubr.msk.bf16.gmra.mrb[176].mxu0 %vm12919_vm6, %v9795_v3 }
 0x3ae   : > { %4609 = vmatprep.mubr.bf16.mxu0 %v11829_v58 }
 0x3b1   : > { %5424 = vmatmul.mubr.msk.bf16.gmra.mrb[180].mxu1 %vm12920_vm12, %v9826_v37 }
 0x3b5   : > { %5428 = vmatmul.mubr.msk.bf16.gmra.mrb[180].mxu0 %vm12921_vm10, %v9826_v37  ;;  %v2384_v13 = vpop.f32.mrb[88].mxu1 }
 0x3b6   : > { %v2386_v26 = vpop.f32.mrb[89].mxu1 }
 0x3b7   : > { %v2388_v61 = vpop.f32.mrb[90].mxu1 }
 0x3b8   : > { %v2390_v59 = vpop.f32.mrb[91].mxu1 }
 0x3ba   : > { %v2457_v24 = vpop.f32.mrb[88].mxu0 }
 0x3bb   : > { %v2459_v47 = vpop.f32.mrb[89].mxu0 }
 0x3bc   : > { %v2461_v43 = vpop.f32.mrb[90].mxu0 }
 0x3bd   : > { %v2463_v38 = vpop.f32.mrb[91].mxu0  ;;  %v2394_v5 = vpop.f32.mrb[92].mxu1 }
 0x3be   : > { %v2396_v29 = vpop.f32.mrb[93].mxu1 }
 0x3bf   : > { %v2398_v8 = vpop.f32.mrb[94].mxu1 }
 0x3c0   : > { %v2400_v3 = vpop.f32.mrb[95].mxu1 }
 0x3c2   : > { %v2467_v20 = vpop.f32.mrb[92].mxu0 }
 0x3c3   : > { %v2469_v58 = vpop.f32.mrb[93].mxu0 }
 0x3c4   : > { %v2471_v14 = vpop.f32.mrb[94].mxu0 }
 0x3c5   : > { %v2473_v60 = vpop.f32.mrb[95].mxu0 }
 0x3c6   : > { %v2404_v55 = vpop.f32.mrb[96].mxu1 }
 0x3c7   : > { %v2406_v23 = vpop.f32.mrb[97].mxu1 }
 0x3c8   : > { %v2408_v54 = vpop.f32.mrb[98].mxu1 }
 0x3c9   : > { %v2410_v37 = vpop.f32.mrb[99].mxu1 }
 0x3ca   : > { %v2477_v50 = vpop.f32.mrb[96].mxu0 }
 0x3cb   : > { %v2479_v31 = vpop.f32.mrb[97].mxu0 }
 0x3cc   : > { %v2481_v18 = vpop.f32.mrb[98].mxu0 }
 0x3cd   : > { %v2483_v0 = vpop.f32.mrb[99].mxu0 }
 0x3ce   : > { %v2414_v17 = vpop.f32.mrb[100].mxu1 }
 0x3cf   : > { %v2416_v9 = vpop.f32.mrb[101].mxu1 }
 0x3d0   : > { %v2418_v21 = vpop.f32.mrb[102].mxu1 }
 0x3d1   : > { %v2420_v49 = vpop.f32.mrb[103].mxu1 }
 0x3d2   : > { %v2487_v7 = vpop.f32.mrb[100].mxu0 }
 0x3d3   : > { %v2489_v4 = vpop.f32.mrb[101].mxu0 }
 0x3d4   : > { %v2491_v15 = vpop.f32.mrb[102].mxu0 }
 0x3d5   : > { %v2493_v52 = vpop.f32.mrb[103].mxu0 }
 0x3d6   : > { %v2530_v32 = vpop.f32.mrb[104].mxu1 }
 0x3d7   : > { %v2532_v63 = vpop.f32.mrb[105].mxu1 }
 0x3d8   : > { %v2534_v51 = vpop.f32.mrb[106].mxu1 }
 0x3d9   : > { %v2536_v35 = vpop.f32.mrb[107].mxu1 }
 0x3de   : > { %v4021_v12 = vpop.f32.mrb[104].mxu0 }
 0x3df   : > { %4618 = vrot.lane.b32.xlu1 %v4021_v12, %s6376_s9  ;;  %v4023_v40 = vpop.f32.mrb[105].mxu0 }
 0x3e0   : > { %4620 = vrot.lane.b32.xlu0 %v4023_v40, %s6376_s9  ;;  %v4025_v39 = vpop.f32.mrb[106].mxu0 }
 0x3e1   : > { %v4027_v2 = vpop.f32.mrb[107].mxu0 }
 0x3e4   : > { %v2540_v62 = vpop.f32.mrb[108].mxu1 }
 0x3e5   : > { %v2542_v16 = vpop.f32.mrb[109].mxu1 }
 0x3e6   : > { %v2544_v46 = vpop.f32.mrb[110].mxu1 }
 0x3e7   : > { %v2546_v19 = vpop.f32.mrb[111].mxu1 }
 0x3ed   : > { %v4031_v42 = vpop.f32.mrb[108].mxu0 }
 0x3ee   : > { %v4033_v6 = vpop.f32.mrb[109].mxu0 }
 0x3ef   : > { %v4035_v34 = vpop.f32.mrb[110].mxu0 }
 0x3f0   : > { %v10669_v36 = vpop.f32.mrb[111].mxu0 }
 0x3f3   : > { %v2550_v10 = vpop.f32.mrb[112].mxu1 }
 0x3f4   : > { %v2552_v44 = vpop.f32.mrb[113].mxu1 }
 0x3f5   : > { %v2554_v53 = vpop.f32.mrb[114].mxu1  ;;  %v4040_v25 = vpop.f32.mrb[112].mxu0 }
 0x3f6   : > { %v2556_v30 = vpop.f32.mrb[115].mxu1  ;;  %v4041_v41 = vpop.f32.mrb[113].mxu0 }
 0x3f7   : > { %v4043_v45 = vpop.f32.mrb[114].mxu0 }
 0x3f8   : > { %v4044_v22 = vpop.f32.mrb[115].mxu0 }
 0x3fb   : > { %v2560_v27 = vpop.f32.mrb[116].mxu1 }
 0x3fc   : > { %v2562_v56 = vpop.f32.mrb[117].mxu1 }
 0x3fd   : > { %v2564_v57 = vpop.f32.mrb[118].mxu1  ;;  %v4048_v33 = vpop.f32.mrb[116].mxu0 }
 0x3fe   : > { %v2566_v1 = vpop.f32.mrb[119].mxu1  ;;  %v4049_v48 = vpop.f32.mrb[117].mxu0 }
 0x3ff   : > { %v4051_v28 = vpop.f32.mrb[118].mxu0 }
 0x400   : > { %v4052_v11 = vpop.f32.mrb[119].mxu0 }
 0x403   : > { %v4088_v13 = vpop.f32.mrb[120].mxu1 }
 0x404   : > { %v4090_v26 = vpop.f32.mrb[121].mxu1  ;;  %4622 = vrot.lane.b32.xlu1 %v4088_v13, %s6376_s9 }
 0x405   : > { %4624 = vrot.lane.b32.xlu0 %v4090_v26, %s6376_s9  ;;  %v4092_v61 = vpop.f32.mrb[122].mxu1  ;;  %v4159_v24 = vpop.f32.mrb[120].mxu0 }
 0x406   : > { %v4094_v59 = vpop.f32.mrb[123].mxu1  ;;  %v4161_v47 = vpop.f32.mrb[121].mxu0 }
 0x407   : > { %v10675_v43 = vpop.f32.mrb[122].mxu0 }
 0x408   : > { %4670 = vrot.lane.b32.xlu1 %v4027_v2, %s6381_s14  ;;  %v4165_v38 = vpop.f32.mrb[123].mxu0 }
 0x409   : > { %4668 = vrot.lane.b32.xlu0 %v4025_v39, %s6381_s14 }
 0x40b   : > { %v4098_v5 = vpop.f32.mrb[124].mxu1 }
 0x40c   : > { %4674 = vrot.lane.b32.xlu1 %v4094_v59, %s6381_s14  ;;  %v4100_v29 = vpop.f32.mrb[125].mxu1 }
 0x40d   : > { %4672 = vrot.lane.b32.xlu0 %v4092_v61, %s6381_s14  ;;  %v10679_v8 = vpop.f32.mrb[126].mxu1 }
 0x40e   : > { %v10681_v3 = vpop.f32.mrb[127].mxu1 }
 0x40f   : > { %v4169_v20 = vpop.f32.mrb[124].mxu0 }
 0x410   : > { %4719 = vrot.lane.b32.xlu1 %v4031_v42, %s6377_s10  ;;  %v10684_v58 = vpop.f32.mrb[125].mxu0 }
 0x411   : > { %4721 = vrot.lane.b32.xlu0 %v4033_v6, %s6377_s10  ;;  %v10687_v14 = vpop.f32.mrb[126].mxu0 }
 0x412   : > { %v10689_v60 = vpop.f32.mrb[127].mxu0 }
 0x414   : > { %v4108_v55 = vpop.f32.mrb[128].mxu1  ;;  %4723 = vrot.lane.b32.xlu1 %v4098_v5, %s6377_s10 }
 0x415   : > { %v4110_v23 = vpop.f32.mrb[129].mxu1  ;;  %4725 = vrot.lane.b32.xlu0 %v4100_v29, %s6377_s10 }
 0x416   : > { %v4112_v54 = vpop.f32.mrb[130].mxu1 }
 0x417   : > { %v4114_v37 = vpop.f32.mrb[131].mxu1 }
 0x418   : > { %4803 = vrot.lane.b32.xlu1 %v4108_v55, %s6375_s8 }
 0x419   : > { %v4179_v50 = vpop.f32.mrb[128].mxu0  ;;  %4801 = vrot.lane.b32.xlu0 %v4041_v41, %s6375_s8 }
 0x41a   : > { %v10694_v31 = vpop.f32.mrb[129].mxu0 }
 0x41b   : > { %v10697_v18 = vpop.f32.mrb[130].mxu0 }
 0x41c   : > { %v10699_v0 = vpop.f32.mrb[131].mxu0  ;;  %v4118_v17 = vpop.f32.mrb[132].mxu1  ;;  %4867 = vrot.lane.b32.xlu1 %v4044_v22, %s6382_s21 }
 0x41d   : > { %v4120_v9 = vpop.f32.mrb[133].mxu1  ;;  %4805 = vrot.lane.b32.xlu0 %v4110_v23, %s6375_s8 }
 0x41e   : > { %v4122_v21 = vpop.f32.mrb[134].mxu1 }
 0x41f   : > { %v4123_v49 = vpop.f32.mrb[135].mxu1 }
 0x420   : > { %4871 = vrot.lane.b32.xlu1 %v4114_v37, %s6382_s21 }
 0x421   : > { %v10703_v7 = vpop.f32.mrb[132].mxu0  ;;  %4869 = vrot.lane.b32.xlu0 %v4112_v54, %s6382_s21 }
 0x422   : > { %v10706_v4 = vpop.f32.mrb[133].mxu0 }
 0x423   : > { %v4193_v15 = vpop.f32.mrb[134].mxu0 }
 0x424   : > { %v4194_v52 = vpop.f32.mrb[135].mxu0  ;;  %v4230_v32 = vpop.f32.mrb[136].mxu1  ;;  %4936 = vrot.lane.b32.xlu1 %v4118_v17, %s6378_s11 }
 0x425   : > { %v4232_v63 = vpop.f32.mrb[137].mxu1  ;;  %4934 = vrot.lane.b32.xlu0 %v4049_v48, %s6378_s11 }
 0x426   : > { %v4234_v51 = vpop.f32.mrb[138].mxu1 }
 0x427   : > { %v4236_v35 = vpop.f32.mrb[139].mxu1 }
 0x428   : > { %4626 = vrot.lane.b32.xlu1 %v4159_v24, %s6376_s9 }
 0x429   : > { %4938 = vrot.lane.b32.xlu0 %v4120_v9, %s6378_s11 }
 0x42a   : > { %v10711_v12 = vpop.f32.mrb[136].mxu0 }
 0x42b   : > { %v10714_v40 = vpop.f32.mrb[137].mxu0 }
 0x42c   : > { %v10717_v39 = vpop.f32.mrb[138].mxu0  ;;  %4630 = vrot.lane.b32.xlu1 %v4230_v32, %s6376_s9 }
 0x42d   : > { %v10719_v2 = vpop.f32.mrb[139].mxu0  ;;  %4628 = vrot.lane.b32.xlu0 %v4161_v47, %s6376_s9 }
 0x430   : > { %4678 = vrot.lane.b32.xlu1 %v4165_v38, %s6381_s14 }
 0x431   : > { %4632 = vrot.lane.b32.xlu0 %v4232_v63, %s6376_s9 }
 0x434   : > { %v4240_v62 = vpop.f32.mrb[140].mxu1  ;;  %4682 = vrot.lane.b32.xlu1 %v4236_v35, %s6381_s14 }
 0x435   : > { %v4242_v16 = vpop.f32.mrb[141].mxu1  ;;  %4676 = vrot.lane.b32.xlu0 %v10675_v43, %s6381_s14 }
 0x436   : > { %v10723_v46 = vpop.f32.mrb[142].mxu1 }
 0x437   : > { %v10725_v19 = vpop.f32.mrb[143].mxu1 }
 0x438   : > { %v10727_v42 = vpop.f32.mrb[140].mxu0  ;;  %4727 = vrot.lane.b32.xlu1 %v4169_v20, %s6377_s10 }
 0x439   : > { %v10730_v6 = vpop.f32.mrb[141].mxu0  ;;  %4680 = vrot.lane.b32.xlu0 %v4234_v51, %s6381_s14 }
 0x43a   : > { %v10733_v34 = vpop.f32.mrb[142].mxu0 }
 0x43b   : > { %v10735_v10 = vpop.f32.mrb[143].mxu0 }
 0x43c   : > { %v4250_v44 = vpop.f32.mrb[144].mxu1  ;;  %4731 = vrot.lane.b32.xlu1 %v4240_v62, %s6377_s10 }
 0x43d   : > { %v4252_v53 = vpop.f32.mrb[145].mxu1  ;;  %4729 = vrot.lane.b32.xlu0 %v10684_v58, %s6377_s10 }
 0x43e   : > { %v4254_v30 = vpop.f32.mrb[146].mxu1 }
 0x43f   : > { %v4256_v25 = vpop.f32.mrb[147].mxu1 }
 0x440   : > { %v10740_v41 = vpop.f32.mrb[144].mxu0  ;;  %4807 = vrot.lane.b32.xlu1 %v4179_v50, %s6375_s8 }
 0x441   : > { %v10743_v45 = vpop.f32.mrb[145].mxu0  ;;  %4733 = vrot.lane.b32.xlu0 %v4242_v16, %s6377_s10 }
 0x442   : > { %v10746_v22 = vpop.f32.mrb[146].mxu0 }
 0x443   : > { %v10748_v27 = vpop.f32.mrb[147].mxu0 }
 0x444   : > { %v4260_v56 = vpop.f32.mrb[148].mxu1  ;;  %4811 = vrot.lane.b32.xlu1 %v4250_v44, %s6375_s8 }
 0x445   : > { %v4262_v57 = vpop.f32.mrb[149].mxu1  ;;  %4809 = vrot.lane.b32.xlu0 %v10694_v31, %s6375_s8 }
 0x446   : > { %v4264_v1 = vpop.f32.mrb[150].mxu1 }
 0x447   : > { %v4265_v33 = vpop.f32.mrb[151].mxu1 }
 0x448   : > { %v10753_v48 = vpop.f32.mrb[148].mxu0  ;;  %4875 = vrot.lane.b32.xlu1 %v10699_v0, %s6382_s21 }
 0x449   : > { %v10756_v28 = vpop.f32.mrb[149].mxu0  ;;  %4813 = vrot.lane.b32.xlu0 %v4252_v53, %s6375_s8 }
 0x44a   : > { %v4335_v11 = vpop.f32.mrb[150].mxu0 }
 0x44b   : > { %v4336_v13 = vpop.f32.mrb[151].mxu0 }
 0x44c   : > { %v4372_v26 = vpop.f32.mrb[152].mxu1  ;;  %4879 = vrot.lane.b32.xlu1 %v4256_v25, %s6382_s21 }
 0x44d   : > { %v4374_v61 = vpop.f32.mrb[153].mxu1  ;;  %4873 = vrot.lane.b32.xlu0 %v10697_v18, %s6382_s21 }
 0x44e   : > { %v4376_v59 = vpop.f32.mrb[154].mxu1 }
 0x44f   : > { %v4378_v24 = vpop.f32.mrb[155].mxu1 }
 0x450   : > { %v10762_v47 = vpop.f32.mrb[152].mxu0  ;;  %4940 = vrot.lane.b32.xlu1 %v10703_v7, %s6378_s11 }
 0x451   : > { %v10766_v43 = vpop.f32.mrb[153].mxu0  ;;  %4877 = vrot.lane.b32.xlu0 %v4254_v30, %s6382_s21  ;;  %v4619_v33 = vpop.permute.xlu1 %4618 }
 0x452   : > { %v10769_v38 = vpop.f32.mrb[154].mxu0  ;;  %v4621_v13 = vpop.permute.xlu0 %4620 }
 0x453   : > { %v10771_v5 = vpop.f32.mrb[155].mxu0 }
 0x454   : > { %v4382_v29 = vpop.f32.mrb[156].mxu1  ;;  %4944 = vrot.lane.b32.xlu1 %v4260_v56, %s6378_s11 }
 0x455   : > { %v4384_v20 = vpop.f32.mrb[157].mxu1  ;;  %4942 = vrot.lane.b32.xlu0 %v10706_v4, %s6378_s11 }
 0x456   : > { %v10776_v58 = vpop.f32.mrb[158].mxu1 }
 0x457   : > { %v10778_v55 = vpop.f32.mrb[159].mxu1 }
 0x458   : > { %12922 = vst [vmem:[#allocation85_spill] sm:$0xff] %v10778_v55  ;;  %v10780_v23 = vpop.f32.mrb[156].mxu0  ;;  %4634 = vrot.lane.b32.xlu1 %v10711_v12, %s6376_s9 }
 0x459   : > { %v10784_v54 = vpop.f32.mrb[157].mxu0  ;;  %4946 = vrot.lane.b32.xlu0 %v4262_v57, %s6378_s11 }
 0x45a   : > { %v10787_v37 = vpop.f32.mrb[158].mxu0 }
 0x45b   : > { %12923 = vst [vmem:[#allocation97_spill] sm:$0xff] %v10787_v37  ;;  %v10789_v50 = vpop.f32.mrb[159].mxu0 }
 0x45c   : > { %12924 = vst [vmem:[#allocation94_spill] sm:$0xff] %v10789_v50  ;;  %v4392_v31 = vpop.f32.mrb[160].mxu1  ;;  %4638 = vrot.lane.b32.xlu1 %v4372_v26, %s6376_s9 }
 0x45d   : > { %v4394_v18 = vpop.f32.mrb[161].mxu1  ;;  %4636 = vrot.lane.b32.xlu0 %v10714_v40, %s6376_s9 }
 0x45e   : > { %v10794_v0 = vpop.f32.mrb[162].mxu1 }
 0x45f   : > { %v10796_v17 = vpop.f32.mrb[163].mxu1 }
 0x460   : > { %v10798_v9 = vpop.f32.mrb[160].mxu0  ;;  %4686 = vrot.lane.b32.xlu1 %v10719_v2, %s6381_s14 }
 0x461   : > { %v10802_v21 = vpop.f32.mrb[161].mxu0  ;;  %4640 = vrot.lane.b32.xlu0 %v4374_v61, %s6376_s9 }
 0x462   : > { %v10805_v49 = vpop.f32.mrb[162].mxu0 }
 0x463   : > { %v10807_v7 = vpop.f32.mrb[163].mxu0 }
 0x464   : > { %v10809_v15 = vpop.f32.mrb[164].mxu1  ;;  %4690 = vrot.lane.b32.xlu1 %v4378_v24, %s6381_s14 }
 0x465   : > { %v10812_v4 = vpop.f32.mrb[165].mxu1  ;;  %4684 = vrot.lane.b32.xlu0 %v10717_v39, %s6381_s14 }
 0x466   : > { %v4406_v52 = vpop.f32.mrb[166].mxu1 }
 0x467   : > { %v4407_v32 = vpop.f32.mrb[167].mxu1 }
 0x468   : > { %v10816_v63 = vpop.f32.mrb[164].mxu0  ;;  %4735 = vrot.lane.b32.xlu1 %v10727_v42, %s6377_s10 }
 0x469   : > { %v10820_v51 = vpop.f32.mrb[165].mxu0  ;;  %4688 = vrot.lane.b32.xlu0 %v4376_v59, %s6381_s14 }
 0x46a   : > { %v4477_v35 = vpop.f32.mrb[166].mxu0 }
 0x46b   : > { %v4478_v12 = vpop.f32.mrb[167].mxu0 }
 0x46c   : > { %v10823_v62 = vpop.f32.mrb[168].mxu1  ;;  %4739 = vrot.lane.b32.xlu1 %v4382_v29, %s6377_s10 }
 0x46d   : > { %v10826_v16 = vpop.f32.mrb[169].mxu1  ;;  %4737 = vrot.lane.b32.xlu0 %v10730_v6, %s6377_s10 }
 0x46e   : > { %v10830_v40 = vpop.f32.mrb[170].mxu1 }
 0x46f   : > { %v10832_v44 = vpop.f32.mrb[171].mxu1 }
 0x470   : > { %v10834_v2 = vpop.f32.mrb[168].mxu0  ;;  %4815 = vrot.lane.b32.xlu1 %v10740_v41, %s6375_s8 }
 0x471   : > { %v4587_v53 = vpop.f32.mrb[169].mxu0  ;;  %4741 = vrot.lane.b32.xlu0 %v4384_v20, %s6377_s10 }
 0x472   : > { %v10839_v30 = vpop.f32.mrb[170].mxu0 }
 0x473   : > { %v4590_v25 = vpop.f32.mrb[171].mxu0 }
 0x474   : > { %v10841_v56 = vpop.f32.mrb[172].mxu1  ;;  %4819 = vrot.lane.b32.xlu1 %v4392_v31, %s6375_s8  ;;  %v12928_v31 = vld [vmem:[#allocation10_spill] sm:$0xff] }
 0x475   : > { %v10844_v39 = vpop.f32.mrb[173].mxu1  ;;  %4817 = vrot.lane.b32.xlu0 %v10743_v45, %s6375_s8  ;;  %vm4702_vm7 = vcmp.lt.s32.totalorder %v12928_v31, 2  ;;  %vm12929_vm15 = vcmp.lt.s32.totalorder %v12928_v31, 1  ;;  %vm12932_vm0 = vcmp.lt.s32.totalorder %v12928_v31, 3  ;;  %vm12933_vm2 = vcmp.lt.s32.totalorder %v12928_v31, 127 }
 0x476   : > { %v10848_v57 = vpop.f32.mrb[174].mxu1  ;;  %v10868_v41 = vpop.permute.xlu1 %4622  ;;  %vm12930_vm1 = vmmov %vm12929_vm15  ;;  %vm4901_vm14 = vcmp.lt.s32.totalorder %v12928_v31, 126  ;;  %vm12936_vm8 = vcmp.lt.s32.totalorder %v12928_v31, 125 }
 0x477   : > { %12925 = vst [vmem:[#allocation57_spill] sm:$0xff] %v10848_v57  ;;  %v10850_v1 = vpop.f32.mrb[175].mxu1  ;;  %v10872_v20 = vpop.permute.xlu0 %4624  ;;  %vm12931_vm5 = vmmov %vm12930_vm1 }
 0x478   : > { %12926 = vst [vmem:[#allocation54_spill] sm:$0xff] %v10850_v1  ;;  %v10852_v42 = vpop.f32.mrb[172].mxu0  ;;  %4883 = vrot.lane.b32.xlu1 %v10748_v27, %s6382_s21  ;;  %vm12934_vm9 = vmmov %vm12932_vm0 }
 0x479   : > { %v4595_v11 = vpop.f32.mrb[173].mxu0  ;;  %4821 = vrot.lane.b32.xlu0 %v4394_v18, %s6375_s8  ;;  %vm12935_vm11 = vmmov %vm12933_vm2 }
 0x47a   : > { %v10857_v26 = vpop.f32.mrb[174].mxu0  ;;  %v4671_v35 = vpop.permute.xlu1 %4670  ;;  %vm12937_vm3 = vmmov %vm12936_vm8 }
 0x47b   : > { %12927 = vst [vmem:[#allocation62_spill] sm:$0xff] %v10857_v26  ;;  %v4598_v61 = vpop.f32.mrb[175].mxu0  ;;  %v4669_v53 = vpop.permute.xlu0 %4668  ;;  %vm12938_vm4 = vmmov %vm12932_vm0 }
 0x47c   : > { %v10859_v59 = vpop.f32.mrb[176].mxu1  ;;  %v4718_v11 = vsel %vm4702_vm7, %v4669_v53, %v4671_v35  ;;  %4887 = vrot.lane.b32.xlu1 %v10796_v17, %s6382_s21  ;;  %vm12939_vm13 = vmmov %vm12932_vm0 }
 0x47d   : > { %v10862_v6 = vpop.f32.mrb[177].mxu1  ;;  %v4785_v18 = vadd.f32 %v4718_v11, %v10669_v36  ;;  %4881 = vrot.lane.b32.xlu0 %v10746_v22, %s6382_s21  ;;  %vm12940_vm6 = vmmov %vm12932_vm0 }
 0x47e   : > { %v10866_v24 = vpop.f32.mrb[178].mxu1  ;;  %v10897_v26 = vpop.permute.xlu1 %4674  ;;  %vm12941_vm12 = vmmov %vm12932_vm0 }
 0x47f   : > { %v10870_v29 = vpop.f32.mrb[179].mxu1  ;;  %v4673_v57 = vpop.permute.xlu0 %4672  ;;  %vm12942_vm10 = vmmov %vm12930_vm1 }
 0x480   : > { %v10874_v52 = vpop.f32.mrb[176].mxu0  ;;  %v4716_v53 = vsel %vm4702_vm7, %v4673_v57, %v10897_v26  ;;  %v4717_v17 = vsel %vm4702_vm7, %v4671_v35, %v4673_v57  ;;  %4948 = vrot.lane.b32.xlu1 %v10753_v48, %s6378_s11 }
 0x481   : > { %v10878_v32 = vpop.f32.mrb[177].mxu0  ;;  %v4786_v22 = vadd.f32 %v4717_v17, %v10679_v8  ;;  %v10912_v11 = vadd.f32 %v4716_v53, %v10681_v3  ;;  %4885 = vrot.lane.b32.xlu0 %v10794_v0, %s6382_s21 }
 0x482   : > { %v10882_v45 = vpop.f32.mrb[178].mxu0 }
 0x483   : > { %v10884_v12 = vpop.f32.mrb[179].mxu0  ;;  %v4722_v55 = vpop.permute.xlu0 %4721 }
 0x484   : > { %v10886_v25 = vpop.f32.mrb[180].mxu1  ;;  %4952 = vrot.lane.b32.xlu1 %v10809_v15, %s6378_s11 }
 0x485   : > { %v10892_v27 = vpop.f32.mrb[181].mxu1  ;;  %4950 = vrot.lane.b32.xlu0 %v10756_v28, %s6378_s11  ;;  %v4667_v28 = vsel %vm12932_vm0, %v4619_v33, %v4621_v13 }
 0x486   : > { %v4548_v61 = vpop.f32.mrb[182].mxu1 }
 0x487   : > { %v4549_v1 = vpop.f32.mrb[183].mxu1  ;;  %v4720_v61 = vpop.permute.xlu1 %4719 }
 0x488   : > { %v10899_v50 = vpop.f32.mrb[180].mxu0  ;;  %v4768_v57 = vsel %vm12929_vm15, %v4720_v61, %v4722_v55  ;;  %v10924_v48 = vpop.permute.xlu0 %4725  ;;  %4642 = vrot.lane.b32.xlu1 %v10762_v47, %s6376_s9  ;;  %v4666_v47 = vsel %vm12934_vm9, %v4621_v13, %v10868_v41  ;;  %vm12943_vm15 = vmmov %vm12930_vm1 }
 0x489   : > { %v10908_v36 = vpop.f32.mrb[181].mxu0  ;;  %4954 = vrot.lane.b32.xlu0 %v10812_v4, %s6378_s11  ;;  %v4769_v15 = vadd.f32 %v4768_v57, %v4667_v28 }
 0x48a   : > { %v4615_v1 = vpop.f32.mrb[182].mxu0 }
 0x48b   : > { %v4616_v37 = vpop.f32.mrb[183].mxu0  ;;  %v4724_v8 = vpop.permute.xlu1 %4723 }
 0x48c   : > { %v4767_v3 = vsel %vm12930_vm1, %v4722_v55, %v4724_v8  ;;  %v10929_v37 = vsel %vm12931_vm5, %v4724_v8, %v10924_v48  ;;  %v4802_v35 = vpop.permute.xlu0 %4801  ;;  %4646 = vrot.lane.b32.xlu1 %v10823_v62, %s6376_s9  ;;  %vm12944_vm5 = vmmov %vm12932_vm0 }
 0x48d   : > { %4644 = vrot.lane.b32.xlu0 %v10766_v43, %s6376_s9  ;;  %v4770_v17 = vadd.f32 %v4767_v3, %v4666_v47  ;;  %vm12945_vm0 = vmmov %vm12933_vm2 }
 0x48e   : > { %vm12947_vm9 = vmmov %vm12945_vm0 }
 0x48f   : > { %v4804_v0 = vpop.permute.xlu1 %4803 }
 0x490   : > { %v4850_v55 = vsel %vm12933_vm2, %v4802_v35, %v4804_v0  ;;  %v10946_v33 = vpop.permute.xlu0 %4805  ;;  %4694 = vrot.lane.b32.xlu1 %v10771_v5, %s6381_s14  ;;  %vm12946_vm2 = vmmov %vm12930_vm1 }
 0x491   : > { %v4851_v53 = vadd.f32 %v4850_v55, %v4769_v15  ;;  %v4849_v1 = vsel %vm12935_vm11, %v4804_v0, %v10946_v33  ;;  %4648 = vrot.lane.b32.xlu0 %v10826_v16, %s6376_s9  ;;  %vm12948_vm11 = vmmov %vm12937_vm3 }
 0x492   : > { %v4852_v62 = vadd.f32 %v4849_v1, %v4770_v17 }
 0x493   : > { %v4868_v4 = vpop.permute.xlu1 %4867 }
 0x494   : > { %v4870_v13 = vpop.permute.xlu0 %4869  ;;  %4698 = vrot.lane.b32.xlu1 %v10832_v44, %s6381_s14 }
 0x495   : > { %v4917_v57 = vsel %vm4901_vm14, %v4868_v4, %v4870_v13  ;;  %4692 = vrot.lane.b32.xlu0 %v10769_v38, %s6381_s14 }
 0x496   : > { %v4918_v5 = vadd.f32 %v4917_v57, %v4785_v18 }
 0x497   : > { %v10956_v43 = vpop.permute.xlu1 %4871 }
 0x498   : > { %v4916_v61 = vsel %vm4901_vm14, %v4870_v13, %v10956_v43  ;;  %v4935_v3 = vpop.permute.xlu0 %4934  ;;  %4743 = vrot.lane.b32.xlu1 %v10780_v23, %s6377_s10 }
 0x499   : > { %v4919_v8 = vadd.f32 %v4916_v61, %v4786_v22  ;;  %4696 = vrot.lane.b32.xlu0 %v10830_v40, %s6381_s14 }
 0x49b   : > { %v4937_v16 = vpop.permute.xlu1 %4936 }
 0x49c   : > { %v4983_v28 = vsel %vm12936_vm8, %v4935_v3, %v4937_v16  ;;  %v10973_v44 = vpop.permute.xlu0 %4938  ;;  %4747 = vrot.lane.b32.xlu1 %v10841_v56, %s6377_s10  ;;  %vm12949_vm8 = vmmov %vm12945_vm0 }
 0x49d   : > { %v4984_v0 = vadd.f32 %v4983_v28, %v4851_v53  ;;  %v4982_v38 = vsel %vm12937_vm3, %v4937_v16, %v10973_v44  ;;  %4745 = vrot.lane.b32.xlu0 %v10784_v54, %s6377_s10  ;;  %vm12950_vm3 = vmmov %vm12945_vm0 }
 0x49e   : > { %v4985_v22 = vadd.f32 %v4982_v38, %v4852_v62 }
 0x49f   : > { %v4627_v15 = vpop.permute.xlu1 %4626  ;;  %v5000_v35 = vadd.f32 %v4984_v0, %v4918_v5 }
 0x4a0   : > { %v5001_v53 = vadd.f32 %v4985_v22, %v4919_v8  ;;  %v4629_v40 = vpop.permute.xlu0 %4628  ;;  %4823 = vrot.lane.b32.xlu1 %v10798_v9, %s6375_s8 }
 0x4a1   : > { %v5016_v18 = vrot.slane %v5000_v35, 4  ;;  %v4663_v4 = vsel %vm12939_vm13, %v4627_v15, %v4629_v40  ;;  %4749 = vrot.lane.b32.xlu0 %v10844_v39, %s6377_s10 }
 0x4a2   : > { %v5022_v56 = vrot.slane %v5001_v53, 4 }
 0x4a3   : > { %v4631_v23 = vpop.permute.xlu1 %4630  ;;  %v5017_v55 = vadd.f32 %v5016_v18, %v5000_v35 }
 0x4a4   : > { %v4662_v47 = vsel %vm12938_vm4, %v4629_v40, %v4631_v23  ;;  %v5023_v62 = vadd.f32 %v5022_v56, %v5001_v53  ;;  %v10990_v13 = vpop.permute.xlu0 %4632  ;;  %4827 = vrot.lane.b32.xlu1 %v10859_v59, %s6375_s8  ;;  %vm12951_vm4 = vmmov %vm12948_vm11 }
 0x4a5   : > { %v5018_v17 = vrot.slane %v5017_v55, 2  ;;  %v4661_v61 = vsel %vm12940_vm6, %v4631_v23, %v10990_v13  ;;  %4825 = vrot.lane.b32.xlu0 %v10802_v21, %s6375_s8  ;;  %vm12952_vm13 = vmmov %vm12951_vm4 }
 0x4a6   : > { %v5024_v57 = vrot.slane %v5023_v62, 2  ;;  %vm12953_vm6 = vmmov %vm12951_vm4 }
 0x4a7   : > { %v4679_v1 = vpop.permute.xlu1 %4678  ;;  %v5019_v54 = vadd.f32 %v5018_v17, %v5017_v55 }
 0x4a8   : > { %v5025_v39 = vadd.f32 %v5024_v57, %v5023_v62  ;;  %v4677_v8 = vpop.permute.xlu0 %4676  ;;  %4891 = vrot.lane.b32.xlu1 %v10807_v7, %s6382_s21 }
 0x4a9   : > { %v5020_v5 = vrot.slane %v5019_v54, 1  ;;  %v4714_v16 = vsel %vm4702_vm7, %v4677_v8, %v4679_v1  ;;  %v4715_v3 = vsel %vm4702_vm7, %v10897_v26, %v4677_v8  ;;  %4829 = vrot.lane.b32.xlu0 %v10862_v6, %s6375_s8  ;;  %v4664_v26 = vsel %vm12941_vm12, %v10872_v20, %v4627_v15  ;;  %vm12954_vm12 = vmmov %vm12944_vm5 }
 0x4aa   : > { %v5026_v59 = vrot.slane %v5025_v39, 1  ;;  %v11009_v28 = vadd.f32 %v4715_v3, %v10687_v14  ;;  %v11012_v21 = vadd.f32 %v4714_v16, %v10689_v60 }
 0x4ab   : > { %v10999_v9 = vpop.permute.xlu1 %4682  ;;  %v11016_v35 = vadd.f32 %v5020_v5, %v5019_v54 }
 0x4ac   : > { %v11021_v38 = vadd.f32 %v5026_v59, %v5025_v39  ;;  %v4681_v7 = vpop.permute.xlu0 %4680  ;;  %4895 = vrot.lane.b32.xlu1 %v10870_v29, %s6382_s21 }
 0x4ad   : > { %v4712_v60 = vsel %vm4702_vm7, %v4681_v7, %v10999_v9  ;;  %v4713_v6 = vsel %vm4702_vm7, %v4679_v1, %v4681_v7  ;;  %4889 = vrot.lane.b32.xlu0 %v10805_v49, %s6382_s21 }
 0x4ae   : > { %v5128_v15 = vcombine.low %v11016_v35, %v11021_v38  ;;  %v11036_v22 = vadd.f32 %v4713_v6, %v10723_v46  ;;  %v4665_v46 = vsel %vm12944_vm5, %v10868_v41, %v10872_v20 }
 0x4af   : > { %v4728_v0 = vpop.permute.xlu1 %4727  ;;  %v4771_v49 = vadd.f32 %v10929_v37, %v4665_v46  ;;  %v6383_v46 = vmov 1966171168  }
 0x4b0   : > { %v4765_v14 = vsel %vm12942_vm10, %v10924_v48, %v4728_v0  ;;  %v11039_v48 = vadd.f32 %v4712_v60, %v10725_v19  ;;  %v4730_v55 = vpop.permute.xlu0 %4729  ;;  %4956 = vrot.lane.b32.xlu1 %v10816_v63, %s6378_s11  ;;  %vm12955_vm10 = vmmov %vm12944_vm5 }
 0x4b1   : > { %v4772_v18 = vadd.f32 %v4765_v14, %v4664_v26  ;;  %v4764_v29 = vsel %vm12930_vm1, %v4728_v0, %v4730_v55  ;;  %4893 = vrot.lane.b32.xlu0 %v10866_v24, %s6382_s21  ;;  %vm12958_vm1 = vmmov %vm12944_vm5 }
 0x4b2   : > { %v4773_v19 = vadd.f32 %v4764_v29, %v4663_v4 }
 0x4b3   : > { %v4732_v23 = vpop.permute.xlu1 %4731 }
 0x4b4   : > { %v4763_v53 = vsel %vm12943_vm15, %v4730_v55, %v4732_v23  ;;  %v11059_v1 = vpop.permute.xlu0 %4733  ;;  %4960 = vrot.lane.b32.xlu1 %v10886_v25, %s6378_s11  ;;  %vm12956_vm15 = vmmov %vm12944_vm5 }
 0x4b5   : > { %v4774_v40 = vadd.f32 %v4763_v53, %v4662_v47  ;;  %v4762_v54 = vsel %vm12946_vm2, %v4732_v23, %v11059_v1  ;;  %4958 = vrot.lane.b32.xlu0 %v10820_v51, %s6378_s11  ;;  %vm12959_vm5 = vmmov %vm12946_vm2 }
 0x4b6   : > { %v11066_v41 = vadd.f32 %v4762_v54, %v4661_v61 }
 0x4b7   : > { %v4808_v17 = vpop.permute.xlu1 %4807 }
 0x4b8   : > { %v4848_v56 = vsel %vm12945_vm0, %v10946_v33, %v4808_v17  ;;  %v4810_v20 = vpop.permute.xlu0 %4809  ;;  %4650 = vrot.lane.b32.xlu1 %v10834_v2, %s6376_s9  ;;  %vm12961_vm0 = vmmov %vm12946_vm2 }
 0x4b9   : > { %v4853_v63 = vadd.f32 %v4848_v56, %v4771_v49  ;;  %v4847_v37 = vsel %vm12947_vm9, %v4808_v17, %v4810_v20  ;;  %4962 = vrot.lane.b32.xlu0 %v10892_v27, %s6378_s11  ;;  %vm12962_vm2 = vmmov %vm12961_vm0 }
 0x4ba   : > { %v4854_v33 = vadd.f32 %v4847_v37, %v4772_v18  ;;  %vm12963_vm9 = vmmov %vm12961_vm0 }
 0x4bb   : > { %v4812_v24 = vpop.permute.xlu1 %4811 }
 0x4bc   : > { %v11076_v4 = vpop.permute.xlu0 %4813  ;;  %4751 = vrot.lane.b32.xlu1 %v10852_v42, %s6377_s10  ;;  %v4846_v61 = vsel %vm12949_vm8, %v4810_v20, %v4812_v24  ;;  %vm12965_vm8 = vmmov %vm12950_vm3 }
 0x4bd   : > { %4700 = vrot.lane.b32.xlu0 %v10839_v30, %s6381_s14  ;;  %v4845_v39 = vsel %vm12950_vm3, %v4812_v24, %v11076_v4 }
 0x4be   : > { %v4856_v18 = vadd.f32 %v4845_v39, %v4774_v40 }
 0x4bf   : > { %v4876_v47 = vpop.permute.xlu1 %4875 }
 0x4c0   : > { %v4874_v25 = vpop.permute.xlu0 %4873  ;;  %4831 = vrot.lane.b32.xlu1 %v10874_v52, %s6375_s8 }
 0x4c1   : > { %v4915_v2 = vsel %vm4901_vm14, %v10956_v43, %v4874_v25  ;;  %4833 = vrot.lane.b32.xlu0 %v10878_v32, %s6375_s8  ;;  %v4914_v52 = vsel %vm4901_vm14, %v4874_v25, %v4876_v47  ;;  %s210_s8 = sand.u32 1, %s6357_s16  }
 0x4c2   : > { %v4920_v27 = vadd.f32 %v4915_v2, %v10912_v11  ;;  %v4921_v16 = vadd.f32 %v4914_v52, %v11009_v28  ;;  %s5328_s9 = sshll.u32 %s210_s8, 4  ;;  %s5231_s30 = scalar_lea.sflag [#allocation4], %s210_s8 }
 0x4c3   : > { %v11082_v51 = vpop.permute.xlu1 %4879  ;;  %s11280_s10 = scalar_lea.vmem [#allocation3], %s5328_s9 }
 0x4c4   : > { %v4878_v42 = vpop.permute.xlu0 %4877  ;;  %4899 = vrot.lane.b32.xlu1 %v10884_v12, %s6382_s21  ;;  %s5247_s22 = sshll.u32 %s11280_s10, 4  ;;  %s11390_s22 = int_to_ptr.vmem [resolvable:$true] %s5247_s22 }
 0x4c5   : > { %4897 = vrot.lane.b32.xlu0 %v10882_v45, %s6382_s21  ;;  %v4913_v11 = vsel %vm4901_vm14, %v4876_v47, %v4878_v42  ;;  %v4912_v14 = vsel %vm4901_vm14, %v4878_v42, %v11082_v51  ;;  %p6302_p1 = scmp.lt.s32.totalorder %s11390_s22, %s6300_s6 }
 0x4c6   : > { %v4922_v3 = vadd.f32 %v4913_v11, %v11012_v21  ;;  %v4923_v21 = vadd.f32 %v4912_v14, %v11036_v22 }
 0x4c7   : > { %v4941_v62 = vpop.permute.xlu1 %4940 }
 0x4c8   : > { %v4981_v30 = vsel %vm12948_vm11, %v10973_v44, %v4941_v62  ;;  %v4855_v44 = vadd.f32 %v4846_v61, %v4773_v19  ;;  %v4943_v5 = vpop.permute.xlu0 %4942  ;;  %4964 = vrot.lane.b32.xlu1 %v10899_v50, %s6378_s11  ;;  %v5133_v19 = vunpack.c.l.s4 %v6383_v46  ;;  %vm12964_vm11 = vmmov %vm12950_vm3 }
 0x4c9   : > { %v4986_v57 = vadd.f32 %v4981_v30, %v4853_v63  ;;  %v4980_v45 = vsel %vm12952_vm13, %v4941_v62, %v4943_v5  ;;  %4966 = vrot.lane.b32.xlu0 %v10908_v36, %s6378_s11  ;;  %vm12967_vm13 = vmmov %vm12953_vm6  ;;  %s5434_s11 = sshll.u32 %s6365_s18, 8  ;;  %s6295_s18 = scalar_lea.vmem %s11390_s22, 256 }
 0x4ca   : > { %v4987_v59 = vadd.f32 %v4980_v45, %v4854_v33  ;;  %v5134_v47 = vunpack.c.0.s8 %v5133_v19  ;;  %s11388_s29 = scalar_lea.hbm %s11442_s4, %s5434_s11  ;;  %p6296_p12 = scmp.ne.s32.totalorder %s11390_s22, %s6295_s18 }
 0x4cb   : > { %v5002_v32 = vadd.f32 %v4986_v57, %v4920_v27  ;;  %v4945_v43 = vpop.permute.xlu1 %4944  ;;  %p6303_p2 = scmp.lt.s32.totalorder %s6301_s7, %s6295_s18 }
 0x4cc   : > { %v4979_v12 = vsel %vm12951_vm4, %v4943_v5, %v4945_v43  ;;  %v5003_v60 = vadd.f32 %v4987_v59, %v4921_v16  ;;  %v11121_v23 = vpop.permute.xlu0 %4946  ;;  %vm12966_vm4 = vmmov %vm12950_vm3  ;;  %p6297_p13 = pnand %p6296_p12, %p6450_p4 }
 0x4cd   : > { %v5028_v8 = vrot.slane %v5002_v32, 4  ;;  %v4988_v0 = vadd.f32 %v4979_v12, %v4855_v44  ;;  %v4978_v28 = vsel %vm12953_vm6, %v4945_v43, %v11121_v23  ;;  %p6304_p3 = por %p6303_p2, %p6302_p1 }
 0x4ce   : > { %v5034_v55 = vrot.slane %v5003_v60, 4  ;;  %v4989_v53 = vadd.f32 %v4978_v28, %v4856_v18  ;;  %p6298_p0 = pneg %p6297_p13 }
 0x4cf   : > { %v5029_v26 = vadd.f32 %v5028_v8, %v5002_v32  ;;  %v4635_v7 = vpop.permute.xlu1 %4634  ;;  %v5004_v6 = vadd.f32 %v4988_v0, %v4922_v3  ;;  %v12957_v32 = vld [vmem:[#allocation6_spill] sm:$0xff] }
 0x4d0   : > { %v5035_v17 = vadd.f32 %v5034_v55, %v5003_v60  ;;  %v5005_v56 = vadd.f32 %v4989_v53, %v4923_v21  ;;  %v4637_v63 = vpop.permute.xlu0 %4636  ;;  %v11139_v11 = vsub.s32 %v5134_v47, %v12957_v32  ;;  %p6305_p5 = pnand %p6304_p3, %p6298_p0 }
 0x4d1   : > { %v5030_v50 = vrot.slane %v5029_v26, 2  ;;  %v5040_v36 = vrot.slane %v5004_v6, 4  ;;  %v4659_v24 = vsel %vm12955_vm10, %v4635_v7, %v4637_v63  ;;  %vm12969_vm10 = vmmov %vm12953_vm6 }
 0x4d2   : > { %v5036_v20 = vrot.slane %v5035_v17, 2  ;;  %v5046_v22 = vrot.slane %v5005_v56, 4  ;;  %v11155_v18 = vrot.slane %v5128_v15, %v11139_v11 }
 0x4d3   : > { %v4639_v29 = vpop.permute.xlu1 %4638  ;;  %v5031_v49 = vadd.f32 %v5030_v50, %v5029_v26  ;;  %v5041_v40 = vadd.f32 %v5040_v36, %v5004_v6  ;;  %v4660_v26 = vsel %vm12958_vm1, %v10990_v13, %v4635_v7  ;;  %v12960_v50 = vld [vmem:[#allocation85_spill] sm:$0xff] }
 0x4d4   : > { %v4658_v54 = vsel %vm12954_vm12, %v4637_v63, %v4639_v29  ;;  %v5037_v2 = vadd.f32 %v5036_v20, %v5035_v17  ;;  %v5047_v62 = vadd.f32 %v5046_v22, %v5005_v56  ;;  %v11131_v30 = vpop.permute.xlu0 %4640  ;;  %vm12968_vm12 = vmmov %vm12953_vm6 }
 0x4d5   : > { %v5042_v37 = vrot.slane %v5041_v40, 2  ;;  %v5032_v25 = vrot.slane %v5031_v49, 1  ;;  %v4657_v42 = vsel %vm12956_vm15, %v4639_v29, %v11131_v30  ;;  %vm12971_vm15 = vmmov %vm12958_vm1 }
 0x4d6   : > { %v5038_v61 = vrot.slane %v5037_v2, 1  ;;  %v5048_v57 = vrot.slane %v5047_v62, 2  ;;  %vm12972_vm1 = vmmov %vm12961_vm0 }
 0x4d7   : > { %v4687_v33 = vpop.permute.xlu1 %4686  ;;  %v5043_v27 = vadd.f32 %v5042_v37, %v5041_v40  ;;  %v5033_v43 = vadd.f32 %v5032_v25, %v5031_v49 }
 0x4d8   : > { %v5039_v44 = vadd.f32 %v5038_v61, %v5037_v2  ;;  %v5049_v39 = vadd.f32 %v5048_v57, %v5047_v62  ;;  %v4685_v8 = vpop.permute.xlu0 %4684 }
 0x4d9   : > { %v5044_v5 = vrot.slane %v5043_v27, 1  ;;  %v4710_v12 = vsel %vm4702_vm7, %v4685_v8, %v4687_v33  ;;  %v4711_v45 = vsel %vm4702_vm7, %v10999_v9, %v4685_v8 }
 0x4da   : > { %v5129_v16 = vcombine.low %v5033_v43, %v5039_v44  ;;  %v5050_v3 = vrot.slane %v5049_v39, 1  ;;  %v4792_v59 = vadd.f32 %v4711_v45, %v10733_v34  ;;  %v4793_v0 = vadd.f32 %v4710_v12, %v10735_v10 }
 0x4db   : > { %v11136_v52 = vpop.permute.xlu1 %4690  ;;  %v11157_v60 = vadd.f32 %v5044_v5, %v5043_v27 }
 0x4dc   : > { %v11159_v9 = vadd.f32 %v5050_v3, %v5049_v39  ;;  %v4689_v10 = vpop.permute.xlu0 %4688  ;;  %v11165_v6 = vrot.slane %v5129_v16, %v11139_v11 }
 0x4dd   : > { %v4708_v7 = vsel %vm4702_vm7, %v4689_v10, %v11136_v52  ;;  %v4709_v35 = vsel %vm4702_vm7, %v4687_v33, %v4689_v10 }
 0x4de   : > { %v5130_v38 = vcombine.low %v11157_v60, %v11159_v9  ;;  %v4794_v15 = vadd.f32 %v4709_v35, %v10776_v58  ;;  %v11176_v28 = vadd.f32 %v4708_v7, %v12960_v50 }
 0x4df   : > { %v4736_v14 = vpop.permute.xlu1 %4735 }
 0x4e0   : > { %v4761_v34 = vsel %vm12959_vm5, %v11059_v1, %v4736_v14  ;;  %v5160_v1 = vcombine.low %v11155_v18, %v11165_v6  ;;  %v4738_v55 = vpop.permute.xlu0 %4737  ;;  %vm12973_vm5 = vmmov %vm12950_vm3 }
 0x4e1   : > { %v4776_v13 = vadd.f32 %v4761_v34, %v4660_v26  ;;  %v4760_v53 = vsel %vm12962_vm2, %v4736_v14, %v4738_v55  ;;  %vm12974_vm2 = vmmov %vm12971_vm15 }
 0x4e2   : > { %v4777_v29 = vadd.f32 %v4760_v53, %v4659_v24 }
 0x4e3   : > { %v4740_v21 = vpop.permute.xlu1 %4739 }
 0x4e4   : > { %v4759_v36 = vsel %vm12961_vm0, %v4738_v55, %v4740_v21  ;;  %v11184_v49 = vpop.permute.xlu0 %4741 }
 0x4e5   : > { %v4778_v46 = vadd.f32 %v4759_v36, %v4658_v54  ;;  %v4758_v58 = vsel %vm12963_vm9, %v4740_v21, %v11184_v49  ;;  %vm12975_vm9 = vmmov %vm12953_vm6 }
 0x4e6   : > { %v11189_v17 = vadd.f32 %v4758_v58, %v4657_v42 }
 0x4e7   : > { %v4816_v19 = vpop.permute.xlu1 %4815 }
 0x4e8   : > { %v4818_v56 = vpop.permute.xlu0 %4817  ;;  %v4844_v47 = vsel %vm12950_vm3, %v11076_v4, %v4816_v19 }
 0x4e9   : > { %v4857_v27 = vadd.f32 %v4844_v47, %v11066_v41  ;;  %v4843_v42 = vsel %vm12966_vm4, %v4816_v19, %v4818_v56  ;;  %vm12978_vm4 = vmmov %vm12974_vm2 }
 0x4ea   : > { %v4858_v12 = vadd.f32 %v4843_v42, %v4776_v13 }
 0x4eb   : > { %v4820_v40 = vpop.permute.xlu1 %4819 }
 0x4ec   : > { %v4842_v63 = vsel %vm12964_vm11, %v4818_v56, %v4820_v40  ;;  %v11193_v22 = vpop.permute.xlu0 %4821  ;;  %vm12976_vm11 = vmmov %vm12961_vm0 }
 0x4ed   : > { %v4859_v20 = vadd.f32 %v4842_v63, %v4777_v29  ;;  %v4841_v54 = vsel %vm12965_vm8, %v4820_v40, %v11193_v22  ;;  %vm12977_vm8 = vmmov %vm12950_vm3 }
 0x4ee   : > { %v4860_v24 = vadd.f32 %v4841_v54, %v4778_v46 }
 0x4ef   : > { %v4884_v37 = vpop.permute.xlu1 %4883 }
 0x4f0   : > { %v4882_v25 = vpop.permute.xlu0 %4881 }
 0x4f1   : > { %v4911_v2 = vsel %vm4901_vm14, %v11082_v51, %v4882_v25  ;;  %v4910_v5 = vsel %vm4901_vm14, %v4882_v25, %v4884_v37 }
 0x4f2   : > { %v4924_v32 = vadd.f32 %v4911_v2, %v11039_v48  ;;  %v4925_v3 = vadd.f32 %v4910_v5, %v4792_v59 }
 0x4f3   : > { %v11198_v33 = vpop.permute.xlu1 %4887 }
 0x4f4   : > { %v4886_v57 = vpop.permute.xlu0 %4885 }
 0x4f5   : > { %v4908_v4 = vsel %vm4901_vm14, %v4886_v57, %v11198_v33  ;;  %v4909_v51 = vsel %vm4901_vm14, %v4884_v37, %v4886_v57 }
 0x4f6   : > { %v4926_v41 = vadd.f32 %v4909_v51, %v4793_v0  ;;  %v4927_v44 = vadd.f32 %v4908_v4, %v4794_v15 }
 0x4f7   : > { %v4949_v62 = vpop.permute.xlu1 %4948 }
 0x4f8   : > { %v4977_v61 = vsel %vm12967_vm13, %v11121_v23, %v4949_v62  ;;  %v4951_v23 = vpop.permute.xlu0 %4950  ;;  %vm12980_vm13 = vmmov %vm12950_vm3 }
 0x4f9   : > { %v4990_v43 = vadd.f32 %v4977_v61, %v4857_v27  ;;  %v4976_v16 = vsel %vm12968_vm12, %v4949_v62, %v4951_v23  ;;  %vm12981_vm12 = vmmov %vm12953_vm6 }
 0x4fa   : > { %v4991_v26 = vadd.f32 %v4976_v16, %v4858_v12 }
 0x4fb   : > { %v5006_v39 = vadd.f32 %v4990_v43, %v4924_v32  ;;  %v4953_v8 = vpop.permute.xlu1 %4952 }
 0x4fc   : > { %v4975_v48 = vsel %vm12953_vm6, %v4951_v23, %v4953_v8  ;;  %v5007_v10 = vadd.f32 %v4991_v26, %v4925_v3  ;;  %v11226_v35 = vpop.permute.xlu0 %4954  ;;  %v5168_v3 = vrot.slane %v5160_v1, %v11139_v11 }
 0x4fd   : > { %v5052_v45 = vrot.slane %v5006_v39, 4  ;;  %v4992_v14 = vadd.f32 %v4975_v48, %v4859_v20  ;;  %v4974_v13 = vsel %vm12969_vm10, %v4953_v8, %v11226_v35  ;;  %v5152_v8 = vrot.slane %v5130_v38, %v11139_v11  ;;  %vm12983_vm10 = vmmov %vm12953_vm6 }
 0x4fe   : > { %v5058_v50 = vrot.slane %v5007_v10, 4  ;;  %v4993_v55 = vadd.f32 %v4974_v13, %v4860_v24 }
 0x4ff   : > { %v5053_v34 = vadd.f32 %v5052_v45, %v5006_v39  ;;  %v11224_v0 = vpop.permute.xlu1 %4642  ;;  %v5008_v7 = vadd.f32 %v4992_v14, %v4926_v41  ;;  %v12970_v41 = vld [vmem:[#allocation97_spill] sm:$0xff] }
 0x500   : > { %v5059_v53 = vadd.f32 %v5058_v50, %v5007_v10  ;;  %v5009_v46 = vadd.f32 %v4993_v55, %v4927_v44  ;;  %v11233_v19 = vpop.permute.xlu0 %4644  ;;  %v4656_v5 = vsel %vm12971_vm15, %v11131_v30, %v11224_v0  ;;  %vm12984_vm15 = vmmov %vm12974_vm2 }
 0x501   : > { %v5054_v15 = vrot.slane %v5053_v34, 2  ;;  %v5064_v21 = vrot.slane %v5008_v7, 4 }
 0x502   : > { %v5060_v58 = vrot.slane %v5059_v53, 2  ;;  %v5070_v56 = vrot.slane %v5009_v46, 4 }
 0x503   : > { %v11231_v36 = vpop.permute.xlu1 %4646  ;;  %v5055_v59 = vadd.f32 %v5054_v15, %v5053_v34  ;;  %v5065_v29 = vadd.f32 %v5064_v21, %v5008_v7 }
 0x504   : > { %v5061_v37 = vadd.f32 %v5060_v58, %v5059_v53  ;;  %v5071_v47 = vadd.f32 %v5070_v56, %v5009_v46  ;;  %v11237_v25 = vpop.permute.xlu0 %4648 }
 0x505   : > { %v5066_v40 = vrot.slane %v5065_v29, 2  ;;  %v5056_v20 = vrot.slane %v5055_v59, 1 }
 0x506   : > { %v5062_v24 = vrot.slane %v5061_v37, 1  ;;  %v5072_v2 = vrot.slane %v5071_v47, 2 }
 0x507   : > { %v11235_v63 = vpop.permute.xlu1 %4694  ;;  %v5067_v54 = vadd.f32 %v5066_v40, %v5065_v29  ;;  %v5057_v62 = vadd.f32 %v5056_v20, %v5055_v59  ;;  %v4654_v40 = vsel %vm12978_vm4, %v11233_v19, %v11231_v36  ;;  %v12979_v20 = vld [vmem:[#allocation94_spill] sm:$0xff] }
 0x508   : > { %v5063_v42 = vadd.f32 %v5062_v24, %v5061_v37  ;;  %v5073_v57 = vadd.f32 %v5072_v2, %v5071_v47  ;;  %v4693_v32 = vpop.permute.xlu0 %4692 }
 0x509   : > { %v5068_v61 = vrot.slane %v5067_v54, 1  ;;  %v4707_v43 = vsel %vm4702_vm7, %v11136_v52, %v4693_v32  ;;  %v4706_v53 = vsel %vm4702_vm7, %v4693_v32, %v11235_v63 }
 0x50a   : > { %v5131_v4 = vcombine.low %v5057_v62, %v5063_v42  ;;  %v5074_v51 = vrot.slane %v5073_v57, 1  ;;  %v4796_v44 = vadd.f32 %v4707_v43, %v12970_v41 }
 0x50b   : > { %v11239_v27 = vpop.permute.xlu1 %4698  ;;  %v11254_v12 = vadd.f32 %v5068_v61, %v5067_v54 }
 0x50c   : > { %v11256_v23 = vadd.f32 %v5074_v51, %v5073_v57  ;;  %v11261_v45 = vpop.permute.xlu0 %4696  ;;  %v5159_v48 = vrot.slane %v5131_v4, %v11139_v11 }
 0x50d   : > { %v4705_v2 = vsel %vm4702_vm7, %v11235_v63, %v11261_v45 }
 0x50e   : > { %v5177_v16 = vcombine.low %v11254_v12, %v11256_v23  ;;  %v5161_v60 = vcombine.low %v5152_v8, %v5159_v48  ;;  %v12982_v48 = vld [vmem:[#allocation57_spill] sm:$0xff] }
 0x50f   : > { %v4744_v39 = vpop.permute.xlu1 %4743 }
 0x510   : > { %v4757_v52 = vsel %vm12972_vm1, %v11184_v49, %v4744_v39  ;;  %v4746_v38 = vpop.permute.xlu0 %4745  ;;  %v5175_v49 = vrot.slane %v5161_v60, %v11139_v11  ;;  %vm12985_vm1 = vmmov %vm12961_vm0 }
 0x511   : > { %v4780_v30 = vadd.f32 %v4757_v52, %v4656_v5  ;;  %v4756_v55 = vsel %vm12961_vm0, %v4744_v39, %v4746_v38 }
 0x512   : > { %v5176_v26 = vcombine.low %v5168_v3, %v5175_v49 }
 0x513   : > { %v11268_v9 = vpop.permute.xlu1 %4747 }
 0x514   : > { %v11278_v10 = vpop.permute.xlu0 %4749  ;;  %5228 = vst [vmem:[%s11280_s10] sm:$0xff] %v5176_v26 }
 0x517   : > { %v4824_v14 = vpop.permute.xlu1 %4823 }
 0x518   : > { %v4840_v34 = vsel %vm12973_vm5, %v11193_v22, %v4824_v14  ;;  %v4826_v13 = vpop.permute.xlu0 %4825  ;;  %vm12986_vm5 = vmmov %vm12961_vm0 }
 0x519   : > { %v4861_v7 = vadd.f32 %v4840_v34, %v11189_v17  ;;  %v4655_v17 = vsel %vm12974_vm2, %v11224_v0, %v11233_v19  ;;  %v4839_v58 = vsel %vm12950_vm3, %v4824_v14, %v4826_v13  ;;  %vm12987_vm0 = vmmov %vm12974_vm2 }
 0x51a   : > { %v4781_v56 = vadd.f32 %v4756_v55, %v4655_v17  ;;  %v4862_v42 = vadd.f32 %v4839_v58, %v4780_v30  ;;  %v4798_v30 = vadd.f32 %v4705_v2, %v12982_v48  ;;  %vm12988_vm2 = vmmov %vm12950_vm3 }
 0x51b   : > { %v4828_v15 = vpop.permute.xlu1 %4827 }
 0x51c   : > { %v11284_v6 = vpop.permute.xlu0 %4829  ;;  %v4838_v46 = vsel %vm12977_vm8, %v4826_v13, %v4828_v15 }
 0x51d   : > { %v4863_v61 = vadd.f32 %v4838_v46, %v4781_v56  ;;  %v4837_v57 = vsel %vm12980_vm13, %v4828_v15, %v11284_v6  ;;  %v4704_v56 = vsel %vm4702_vm7, %v11261_v45, %v11239_v27 }
 0x51f   : > { %v4892_v18 = vpop.permute.xlu1 %4891 }
 0x520   : > { %v4890_v50 = vpop.permute.xlu0 %4889 }
 0x521   : > { %v4907_v22 = vsel %vm4901_vm14, %v11198_v33, %v4890_v50  ;;  %v4906_v37 = vsel %vm4901_vm14, %v4890_v50, %v4892_v18 }
 0x522   : > { %v4928_v21 = vadd.f32 %v4907_v22, %v11176_v28  ;;  %v4755_v28 = vsel %vm12976_vm11, %v4746_v38, %v11268_v9  ;;  %v4929_v51 = vadd.f32 %v4906_v37, %v4796_v44  ;;  %vm12993_vm11 = vmmov %vm12953_vm6 }
 0x523   : > { %v11286_v1 = vpop.permute.xlu1 %4895  ;;  %v4782_v62 = vadd.f32 %v4755_v28, %v4654_v40  ;;  %v4653_v40 = vsel %vm12984_vm15, %v11231_v36, %v11237_v25 }
 0x524   : > { %v4894_v33 = vpop.permute.xlu0 %4893 }
 0x525   : > { %v4905_v47 = vsel %vm4901_vm14, %v4892_v18, %v4894_v33  ;;  %v4904_v8 = vsel %vm4901_vm14, %v4894_v33, %v11286_v1  ;;  %v4864_v60 = vadd.f32 %v4837_v57, %v4782_v62 }
 0x526   : > { %v4931_v44 = vadd.f32 %v4904_v8, %v4798_v30 }
 0x527   : > { %v4957_v59 = vpop.permute.xlu1 %4956 }
 0x528   : > { %v4973_v29 = vsel %vm12975_vm9, %v11226_v35, %v4957_v59  ;;  %v4797_v35 = vadd.f32 %v4706_v53, %v12979_v20  ;;  %v4959_v19 = vpop.permute.xlu0 %4958  ;;  %v4754_v20 = vsel %vm12985_vm1, %v11268_v9, %v11278_v10  ;;  %vm12989_vm9 = vmmov %vm12988_vm2 }
 0x529   : > { %v4994_v0 = vadd.f32 %v4973_v29, %v4861_v7  ;;  %v4972_v4 = vsel %vm12981_vm12, %v4957_v59, %v4959_v19 }
 0x52a   : > { %v4930_v41 = vadd.f32 %v4905_v47, %v4797_v35  ;;  %v4995_v5 = vadd.f32 %v4972_v4, %v4862_v42 }
 0x52b   : > { %v5010_v54 = vadd.f32 %v4994_v0, %v4928_v21  ;;  %v4961_v24 = vpop.permute.xlu1 %4960 }
 0x52c   : > { %v4971_v43 = vsel %vm12953_vm6, %v4959_v19, %v4961_v24  ;;  %v5011_v38 = vadd.f32 %v4995_v5, %v4929_v51  ;;  %v4963_v49 = vpop.permute.xlu0 %4962  ;;  %v12990_v19 = vld [vmem:[#allocation54_spill] sm:$0xff] }
 0x52d   : > { %v5076_v32 = vrot.slane %v5010_v54, 4  ;;  %v4996_v39 = vadd.f32 %v4971_v43, %v4863_v61  ;;  %v4970_v14 = vsel %vm12983_vm10, %v4961_v24, %v4963_v49  ;;  %v4799_v57 = vadd.f32 %v4704_v56, %v12990_v19  ;;  %v12991_v51 = vld [vmem:[#allocation62_spill] sm:$0xff] }
 0x52e   : > { %v5082_v34 = vrot.slane %v5011_v38, 4  ;;  %v4997_v15 = vadd.f32 %v4970_v14, %v4864_v60 }
 0x52f   : > { %v5077_v63 = vadd.f32 %v5076_v32, %v5010_v54  ;;  %v4651_v52 = vpop.permute.xlu1 %4650  ;;  %v5012_v3 = vadd.f32 %v4996_v39, %v4930_v41  ;;  %v4783_v32 = vadd.f32 %v4754_v20, %v4653_v40 }
 0x530   : > { %v5083_v50 = vadd.f32 %v5082_v34, %v5011_v38  ;;  %v5013_v21 = vadd.f32 %v4997_v15, %v4931_v44  ;;  %v4701_v55 = vpop.permute.xlu0 %4700  ;;  %v4652_v36 = vsel %vm12987_vm0, %v11237_v25, %v4651_v52 }
 0x531   : > { %v5078_v26 = vrot.slane %v5077_v63, 2  ;;  %v5088_v7 = vrot.slane %v5012_v3, 4  ;;  %v4703_v45 = vsel %vm4702_vm7, %v11239_v27, %v4701_v55  ;;  %vm12992_vm7 = vmmov %vm12953_vm6 }
 0x532   : > { %v5084_v59 = vrot.slane %v5083_v50, 2  ;;  %v5094_v53 = vrot.slane %v5013_v21, 4  ;;  %v4800_v41 = vadd.f32 %v4703_v45, %v12991_v51 }
 0x533   : > { %v5079_v13 = vadd.f32 %v5078_v26, %v5077_v63  ;;  %v4752_v18 = vpop.permute.xlu1 %4751  ;;  %v5089_v22 = vadd.f32 %v5088_v7, %v5012_v3 }
 0x534   : > { %v5085_v28 = vadd.f32 %v5084_v59, %v5083_v50  ;;  %v5095_v58 = vadd.f32 %v5094_v53, %v5013_v21  ;;  %v4834_v0 = vpop.permute.xlu0 %4833  ;;  %v4753_v54 = vsel %vm12986_vm5, %v11278_v10, %v4752_v18 }
 0x535   : > { %v5090_v17 = vrot.slane %v5089_v22, 2  ;;  %v5080_v29 = vrot.slane %v5079_v13, 1  ;;  %v4784_v25 = vadd.f32 %v4753_v54, %v4652_v36 }
 0x536   : > { %v5086_v35 = vrot.slane %v5085_v28, 1  ;;  %v5096_v37 = vrot.slane %v5095_v58, 2 }
 0x537   : > { %v4832_v33 = vpop.permute.xlu1 %4831  ;;  %v5091_v46 = vadd.f32 %v5090_v17, %v5089_v22  ;;  %v5081_v47 = vadd.f32 %v5080_v29, %v5079_v13 }
 0x538   : > { %v4836_v24 = vsel %vm12988_vm2, %v11284_v6, %v4832_v33  ;;  %v5087_v2 = vadd.f32 %v5086_v35, %v5085_v28  ;;  %v5097_v42 = vadd.f32 %v5096_v37, %v5095_v58  ;;  %v4835_v10 = vsel %vm12989_vm9, %v4832_v33, %v4834_v0  ;;  %v4898_v61 = vpop.permute.xlu0 %4897 }
 0x539   : > { %v5092_v62 = vrot.slane %v5091_v46, 1  ;;  %v4903_v27 = vsel %vm4901_vm14, %v11286_v1, %v4898_v61  ;;  %v5187_v6 = vrot.slane %v5177_v16, %v11139_v11  ;;  %v4865_v5 = vadd.f32 %v4836_v24, %v4783_v32 }
 0x53a   : > { %v5178_v43 = vcombine.low %v5081_v47, %v5087_v2  ;;  %v5098_v4 = vrot.slane %v5097_v42, 1  ;;  %v4866_v39 = vadd.f32 %v4835_v10, %v4784_v25  ;;  %v4932_v38 = vadd.f32 %v4903_v27, %v4799_v57 }
 0x53b   : > { %v4900_v9 = vpop.permute.xlu1 %4899  ;;  %v5093_v52 = vadd.f32 %v5092_v62, %v5091_v46 }
 0x53c   : > { %v4902_v63 = vsel %vm4901_vm14, %v4898_v61, %v4900_v9  ;;  %v5099_v48 = vadd.f32 %v5098_v4, %v5097_v42  ;;  %v4967_v60 = vpop.permute.xlu0 %4966  ;;  %v5194_v1 = vrot.slane %v5178_v43, %v11139_v11 }
 0x53d   : > { %v4933_v16 = vadd.f32 %v4902_v63, %v4800_v41 }
 0x53e   : > { %v5179_v23 = vcombine.low %v5093_v52, %v5099_v48  ;;  %v5209_v14 = vcombine.low %v5187_v6, %v5194_v1 }
 0x53f   : > { %v4965_v8 = vpop.permute.xlu1 %4964 }
 0x540   : > { %v4969_v30 = vsel %vm12992_vm7, %v4963_v49, %v4965_v8  ;;  %v4968_v12 = vsel %vm12993_vm11, %v4965_v8, %v4967_v60  ;;  %v5201_v29 = vrot.slane %v5179_v23, %v11139_v11  ;;  %v5217_v46 = vrot.slane %v5209_v14, %v11139_v11 }
 0x541   : > { %v4998_v3 = vadd.f32 %v4969_v30, %v4865_v5  ;;  %v4999_v26 = vadd.f32 %v4968_v12, %v4866_v39 }
 0x543   : > { %v5014_v44 = vadd.f32 %v4998_v3, %v4932_v38  ;;  %v5015_v34 = vadd.f32 %v4999_v26, %v4933_v16 }
 0x545   : > { %v5100_v7 = vrot.slane %v5014_v44, 4  ;;  %v5106_v15 = vrot.slane %v5015_v34, 4 }
 0x547   : > { %v5101_v13 = vadd.f32 %v5100_v7, %v5014_v44  ;;  %v5107_v49 = vadd.f32 %v5106_v15, %v5015_v34 }
 0x549   : > { %v5102_v18 = vrot.slane %v5101_v13, 2  ;;  %v5108_v50 = vrot.slane %v5107_v49, 2 }
 0x54b   : > { %v5103_v22 = vadd.f32 %v5102_v18, %v5101_v13  ;;  %v5109_v21 = vadd.f32 %v5108_v50, %v5107_v49 }
 0x54d   : > { %v5104_v55 = vrot.slane %v5103_v22, 1  ;;  %v5110_v31 = vrot.slane %v5109_v21, 1 }
 0x54f   : > { %v5105_v59 = vadd.f32 %v5104_v55, %v5103_v22  ;;  %v5111_v17 = vadd.f32 %v5110_v31, %v5109_v21 }
 0x551   : > { %v5180_v53 = vcombine.low %v5105_v59, %v5111_v17 }
 0x553   : > { %v5208_v33 = vrot.slane %v5180_v53, %v11139_v11 }
 0x555   : > { %v5210_v28 = vcombine.low %v5201_v29, %v5208_v33 }
 0x557   : > { %v5224_v58 = vrot.slane %v5210_v28, %v11139_v11 }
 0x559   : > { %v5225_v0 = vcombine.low %v5217_v46, %v5224_v58 }
 0x55b   : > { %5229 = vst [vmem:[%s11280_s10 + $0x8] sm:$0xff] %v5225_v0 }
 0x55c   : > { %6308 = shalt.err (!%p6305_p5)
}
 0x55d   : > { %s6309_s12 = scalar_lea.hbm %s11388_s29, 256  ;;  %s6313_s21 = scalar_lea.hbm %s11442_s4, 512 }
 0x55e   : > { %p6310_p6 = scmp.ne.s32.totalorder %s11388_s29, %s6309_s12  ;;  %p6314_p10 = scmp.lt.u32.totalorder %s11388_s29, %s11442_s4 }
 0x55f   : > { %p6315_p11 = scmp.lt.u32.totalorder %s6313_s21, %s6309_s12  ;;  %p6317_p13 = scmp.lt.u32.totalorder %s6309_s12, %s11388_s29 }
 0x560   : > { %p6311_p7 = pnand %p6310_p6, %p6450_p4 }
 0x561   : > { %p6316_p12 = por %p6315_p11, %p6314_p10 }
 0x562   : > { %p6312_p9 = pneg %p6311_p7 }
 0x563   : > { %p6318_p0 = por %p6317_p13, %p6316_p12 }
 0x565   : > { %p6319_p1 = pnand %p6318_p0, %p6312_p9 }
 0x567   : > { %6322 = shalt.err (!%p6319_p1)
}
 0x568   : > { %5660 = dma.vmem_to_hbm [thread:$0]  (%p6450_p4), %s11390_s22, 256, %s11388_s29, %s5231_s30  }
 0x569 PF: > { %p5666_p2 = scmp.ge.s32.totalorder %s6373_s20, 2  ;;  %s5259_s10 = sand.u32 1, %s6353_s15  }
 0x56a   : > { %s5260_s11 = scalar_lea.sflag [#allocation4], %s5259_s10 }
 0x56b   : > { %p5663_p3 = pnand %p5666_p2, %p6457_p8 }
 0x56d   : > { %6348 = dma.done.wait (!%p5663_p3), %s5260_s11, 256  }
 0x56e   : > { %6350 = vsyncadd (!%p5663_p3), %s5260_s11, 4294967040  ;;  %s17_s20 = sadd.s32 1, %s6373_s20   ;;  %s12994_s15 = smov %s6357_s16 }
 0x56f   : > { %p14_p5 = scmp.ge.s32.totalorder %s17_s20, 4   ;;  %s12995_s16 = smov %s6361_s17 }
 0x570   : > { %s12996_s17 = smov %s6463_s28  ;;  %s12997_s18 = smov %s6369_s19 }
 0x571   : > { %s12998_s19 = smov %s13000_s23  ;;  %16 = sbr.rel (!%p14_p5) target bundleno = 4 (0x4), region = 71 }
 0x578   :  { %5265 = vsyncpa [#allocation4], 1 }
 0x579   :  { %5267 = vsyncpa [#allocation4 + $0x1], 1 }

</bundles_post_ra>
